<compile_context>
chip_gen: v7x
topology: tpu7x:2x2x1
jax: 0.10.0
libtpu: 0.0.40
codegen_flags: <defaults>
</compile_context>

<pallas_src>
import numpy as np
import jax
import jax.numpy as jnp
from jax import lax
from jax.experimental import pallas as pl
from jax.experimental.pallas import tpu as pltpu


_VMEM_LIMIT = 48 * 1024 * 1024   # fits v5e/v6e (128 MiB) and v7x (64 MiB) budgets


def _cparams(n_parallel_axes):
    return pltpu.CompilerParams(
        dimension_semantics=("parallel",) * n_parallel_axes,
        vmem_limit_bytes=_VMEM_LIMIT)


# ---------------------------------------------------------------------------
# Pallas kernels
# ---------------------------------------------------------------------------

def _entry_kernel(x_ref, w1_ref, s1_ref, b1_ref, w2_ref, s2_ref, b2_ref,
                  o1_ref, o2_ref):
    """Fused branch entries: two (1x1 conv + BN + ReLU) sharing one x tile."""
    x = x_ref[...]                                           # (TM, Cin) bf16
    y1 = jnp.dot(x, w1_ref[...], preferred_element_type=jnp.float32)
    y1 = jnp.maximum(y1 * s1_ref[...] + b1_ref[...], 0.0)
    o1_ref[...] = y1.astype(o1_ref.dtype)
    y2 = jnp.dot(x, w2_ref[...], preferred_element_type=jnp.float32)
    y2 = jnp.maximum(y2 * s2_ref[...] + b2_ref[...], 0.0)
    o2_ref[...] = y2.astype(o2_ref.dtype)


def _conv3x3_kernel(xp_ref, w_ref, s_ref, b_ref, o_ref):
    """3x3 conv (pad=1, stride=1) on one image + folded affine + ReLU.

    xp_ref : (H+2, W+2, Cin)  zero-padded image (batch dim squeezed), bf16
    w_ref  : (9, Cin, Cout)   taps in row-major (dh, dw) order, bf16
    o_ref  : (H*W, Cout)      bf16
    """
    Hp, Wp, cin = xp_ref.shape
    H, W = Hp - 2, Wp - 2
    cout = w_ref.shape[-1]
    # Single upcast; the 9 shifted slices below stay in f32 (robust layout),
    # operands are cast back to bf16 right at the MXU (exact, values are bf16).
    xp = xp_ref[...].astype(jnp.float32)
    acc = jnp.zeros((H * W, cout), jnp.float32)
    for di in range(3):
        for dj in range(3):
            patch = xp[di:di + H, dj:dj + W, :].reshape(H * W, cin)
            acc = acc + jnp.dot(patch.astype(jnp.bfloat16),
                                w_ref[di * 3 + dj],
                                preferred_element_type=jnp.float32)
    acc = acc * s_ref[...] + b_ref[...]
    acc = jnp.maximum(acc, 0.0)
    o_ref[...] = acc.astype(o_ref.dtype)


def _tail_kernel(b1_ref, b2_ref, wa_ref, wb_ref, s_ref, bz_ref, res_ref, o_ref):
    """(implicit concat) -> 1x1 conv -> BN -> +residual -> ReLU."""
    acc = jnp.dot(b1_ref[...], wa_ref[...], preferred_element_type=jnp.float32)
    acc = acc + jnp.dot(b2_ref[...], wb_ref[...],
                        preferred_element_type=jnp.float32)
    acc = acc * s_ref[...] + bz_ref[...]
    acc = acc + res_ref[...]
    o_ref[...] = jnp.maximum(acc, 0.0).astype(o_ref.dtype)


# ---------------------------------------------------------------------------
# pallas_call wrappers
# ---------------------------------------------------------------------------

def _entry_call(x_bf, w1, s1, b1, w2, s2, b2, tile_m):
    M, cin = x_bf.shape
    c1, c2 = w1.shape[1], w2.shape[1]
    grid = (pl.cdiv(M, tile_m),)
    return pl.pallas_call(
        _entry_kernel,
        out_shape=(jax.ShapeDtypeStruct((M, c1), jnp.bfloat16),
                   jax.ShapeDtypeStruct((M, c2), jnp.bfloat16)),
        grid=grid,
        in_specs=[pl.BlockSpec((tile_m, cin), lambda i: (i, 0)),
                  pl.BlockSpec((cin, c1), lambda i: (0, 0)),
                  pl.BlockSpec((1, c1), lambda i: (0, 0)),
                  pl.BlockSpec((1, c1), lambda i: (0, 0)),
                  pl.BlockSpec((cin, c2), lambda i: (0, 0)),
                  pl.BlockSpec((1, c2), lambda i: (0, 0)),
                  pl.BlockSpec((1, c2), lambda i: (0, 0))],
        out_specs=(pl.BlockSpec((tile_m, c1), lambda i: (i, 0)),
                   pl.BlockSpec((tile_m, c2), lambda i: (i, 0))),
        compiler_params=_cparams(1),
    )(x_bf, w1, s1.reshape(1, -1), b1.reshape(1, -1),
      w2, s2.reshape(1, -1), b2.reshape(1, -1))


def _conv3x3_call(x_nhwc, w9, scale, bias):
    N, H, W, cin = x_nhwc.shape
    cout = w9.shape[-1]
    # TODO(synk): halo could be written directly by the producing kernel to
    # avoid this extra HBM pass.
    xp = jnp.pad(x_nhwc, ((0, 0), (1, 1), (1, 1), (0, 0)))
    return pl.pallas_call(
        _conv3x3_kernel,
        out_shape=jax.ShapeDtypeStruct((N, H * W, cout), jnp.bfloat16),
        grid=(N,),
        in_specs=[pl.BlockSpec((None, H + 2, W + 2, cin),
                               lambda n: (n, 0, 0, 0)),
                  pl.BlockSpec((9, cin, cout), lambda n: (0, 0, 0)),
                  pl.BlockSpec((1, cout), lambda n: (0, 0)),
                  pl.BlockSpec((1, cout), lambda n: (0, 0))],
        out_specs=pl.BlockSpec((None, H * W, cout), lambda n: (n, 0, 0)),
        compiler_params=_cparams(1),
    )(xp, w9, scale.reshape(1, -1), bias.reshape(1, -1))


def _tail_call(b1, b2, wa, wb, s_out, b_out, residual, tile_m):
    M, c1 = b1.shape
    c2 = b2.shape[1]
    cexp = wa.shape[1]
    grid = (pl.cdiv(M, tile_m),)
    return pl.pallas_call(
        _tail_kernel,
        out_shape=jax.ShapeDtypeStruct((M, cexp), jnp.float32),
        grid=grid,
        in_specs=[pl.BlockSpec((tile_m, c1), lambda i: (i, 0)),
                  pl.BlockSpec((tile_m, c2), lambda i: (i, 0)),
                  pl.BlockSpec((c1, cexp), lambda i: (0, 0)),
                  pl.BlockSpec((c2, cexp), lambda i: (0, 0)),
                  pl.BlockSpec((1, cexp), lambda i: (0, 0)),
                  pl.BlockSpec((1, cexp), lambda i: (0, 0)),
                  pl.BlockSpec((tile_m, cexp), lambda i: (i, 0))],
        out_specs=pl.BlockSpec((tile_m, cexp), lambda i: (i, 0)),
        compiler_params=_cparams(1),
    )(b1, b2, wa, wb, s_out.reshape(1, -1), b_out.reshape(1, -1), residual)


def aligned_bottleneck_pallas(x_nchw, p):
    # TODO(synk): accept/return NHWC directly if the surrounding model allows,
    # to drop these two full-activation transpose passes.
    x = jnp.transpose(x_nchw, (0, 2, 3, 1))                  # NCHW -> NHWC
    N, H, W, cin = x.shape
    M = N * H * W
    width = p['w1_1'].shape[1]
    w2c = p['w2_1'].shape[1]
    cexp = p['w_out'].shape[1]
    assert cin == cexp, "identity residual requires inplanes == planes * 4"

    tile_m = M if M < 1024 else 1024

    x2d = x.reshape(M, cin)                                  # f32 residual
    x_bf = x2d.astype(jnp.bfloat16)

    bf = lambda a: a.astype(jnp.bfloat16)
    w1_1 = bf(p['w1_1'])
    w2_1 = bf(p['w2_1'])
    w1_2 = bf(p['w1_2']).reshape(9, width, width)
    w2_2 = bf(p['w2_2']).reshape(9, w2c, w2c)
    w2_3 = bf(p['w2_3']).reshape(9, w2c, w2c)
    w_a = bf(p['w_out'][:width])
    w_b = bf(p['w_out'][width:])

    # fused branch-entry 1x1 convs (+BN +ReLU): x is read from HBM once.
    b1a, b2a = _entry_call(x_bf, w1_1, p['s1_1'], p['b1_1'],
                           w2_1, p['s2_1'], p['b2_1'], tile_m)

    # branch 1: 3x3 conv with bn_concat[:width] + ReLU folded in.
    b1 = _conv3x3_call(b1a.reshape(N, H, W, width), w1_2,
                       p['s_cat'][:width], p['b_cat'][:width])

    # branch 2: 3x3 + bn2_2 + ReLU, then 3x3 with bn_concat[width:] + ReLU.
    b2 = _conv3x3_call(b2a.reshape(N, H, W, w2c), w2_2, p['s2_2'], p['b2_2'])
    b2 = _conv3x3_call(b2.reshape(N, H, W, w2c), w2_3,
                       p['s_cat'][width:], p['b_cat'][width:])

    # tail: (implicit concat) 1x1 conv + BN + residual + ReLU.
    out2d = _tail_call(b1.reshape(M, width), b2.reshape(M, w2c),
                       w_a, w_b, p['s_out'], p['b_out'], x2d, tile_m)
    out = out2d.reshape(N, H, W, cexp)
    return jnp.transpose(out, (0, 3, 1, 2))                  # NHWC -> NCHW


# ---------------------------------------------------------------------------
# Deterministic parameter init (shapes from AlignedBottleneck.__init__)
# ---------------------------------------------------------------------------

def init_params(key, inplanes, planes, base_width=64):
    width = int(planes * (base_width / 64.0))
    w2 = width // 2
    cexp = planes * 4                     # expansion = 4
    ccat = width + w2
    keys = iter(jax.random.split(key, 32))

    def wgt(shape):
        return 0.2 * jax.random.normal(next(keys), shape, jnp.float32)

    def bn(c, eps=1e-5):
        gamma = 1.0 + 0.1 * jax.random.normal(next(keys), (c,), jnp.float32)
        beta = 0.1 * jax.random.normal(next(keys), (c,), jnp.float32)
        mean = 0.1 * jax.random.normal(next(keys), (c,), jnp.float32)
        var = jnp.abs(1.0 + 0.1 * jax.random.normal(next(keys), (c,), jnp.float32))
        scale = gamma / jnp.sqrt(var + eps)
        bias = beta - mean * scale
        return scale, bias

    p = {}
    p['w1_1'] = wgt((inplanes, width))          # conv1_1 (1x1)
    p['s1_1'], p['b1_1'] = bn(width)            # bn1_1
    p['w1_2'] = wgt((3, 3, width, width))       # conv1_2 (3x3)
    p['w2_1'] = wgt((inplanes, w2))             # conv2_1 (1x1)
    p['s2_1'], p['b2_1'] = bn(w2)               # bn2_1
    p['w2_2'] = wgt((3, 3, w2, w2))             # conv2_2 (3x3)
    p['s2_2'], p['b2_2'] = bn(w2)               # bn2_2
    p['w2_3'] = wgt((3, 3, w2, w2))             # conv2_3 (3x3)
    p['s_cat'], p['b_cat'] = bn(ccat)           # bn_concat
    p['w_out'] = wgt((ccat, cexp))              # conv (1x1)
    p['s_out'], p['b_out'] = bn(cexp)           # bn
    return p


# ---------------------------------------------------------------------------
# Pure-JAX f32 reference (correctness check only)
# ---------------------------------------------------------------------------

def _conv_nhwc(x, w, padding):
    return lax.conv_general_dilated(x, w, (1, 1), padding,
                                    dimension_numbers=('NHWC', 'HWIO', 'NHWC'))


def reference_forward(x_nchw, p):
    x = jnp.transpose(x_nchw, (0, 2, 3, 1))
    pad1 = ((1, 1), (1, 1))
    b1 = _conv_nhwc(x, p['w1_1'][None, None], 'VALID')
    b1 = jnp.maximum(b1 * p['s1_1'] + p['b1_1'], 0.0)
    b1 = _conv_nhwc(b1, p['w1_2'], pad1)
    b2 = _conv_nhwc(x, p['w2_1'][None, None], 'VALID')
    b2 = jnp.maximum(b2 * p['s2_1'] + p['b2_1'], 0.0)
    b2 = _conv_nhwc(b2, p['w2_2'], pad1)
    b2 = jnp.maximum(b2 * p['s2_2'] + p['b2_2'], 0.0)
    b2 = _conv_nhwc(b2, p['w2_3'], pad1)
    out = jnp.concatenate([b1, b2], axis=-1)
    out = jnp.maximum(out * p['s_cat'] + p['b_cat'], 0.0)
    out = _conv_nhwc(out, p['w_out'][None, None], 'VALID')
    out = out * p['s_out'] + p['b_out']
    out = jnp.maximum(out + x, 0.0)
    return jnp.transpose(out, (0, 3, 1, 2))


# ---------------------------------------------------------------------------

if __name__ == "__main__":
    # planes * expansion == inplanes so the identity residual add is valid.
    inplanes, planes = 16, 4
    N, H, W = 2, 16, 16

    key = jax.random.PRNGKey(0)
    kx, kp = jax.random.split(key)
    x = jax.random.normal(kx, (N, inplanes, H, W), jnp.float32)   # NCHW input
    params = init_params(kp, inplanes, planes)

    fwd = jax.jit(aligned_bottleneck_pallas)
    out = jax.block_until_ready(fwd(x, params))
    ref = jax.block_until_ready(jax.jit(reference_forward)(x, params))

    # bf16 matmuls (f32 accumulation) vs f32 reference -> loosened tolerance.
    np.testing.assert_allclose(np.asarray(out), np.asarray(ref),
                               rtol=5e-2, atol=5e-2)
    print("KERNEL_OK")
</pallas_src>

<mosaic_0001>
module attributes {stable_mosaic.version = 11 : i64} {
  func.func @_entry_kernel(%arg0: i32, %arg1: memref<512x16xbf16, #tpu.memory_space<vmem>>, %arg2: memref<16x4xbf16, #tpu.memory_space<vmem>>, %arg3: memref<1x4xf32, #tpu.memory_space<vmem>>, %arg4: memref<1x4xf32, #tpu.memory_space<vmem>>, %arg5: memref<16x2xbf16, #tpu.memory_space<vmem>>, %arg6: memref<1x2xf32, #tpu.memory_space<vmem>>, %arg7: memref<1x2xf32, #tpu.memory_space<vmem>>, %arg8: memref<512x4xbf16, #tpu.memory_space<vmem>>, %arg9: memref<512x2xbf16, #tpu.memory_space<vmem>>) attributes {dimension_semantics = [#tpu.dimension_semantics<parallel>], iteration_bounds = array<i64: 1>, scalar_prefetch = 0 : i64, scratch_operands = 0 : i64, tpu.core_type = #tpu.core_type<tc>, window_params = [{transform_indices = @transform_0, window_bounds = array<i64: 512, 16>}, {pipeline_mode = #tpu.pipeline_mode<synchronous>, transform_indices = @transform_1, window_bounds = array<i64: 16, 4>}, {pipeline_mode = #tpu.pipeline_mode<synchronous>, transform_indices = @transform_2, window_bounds = array<i64: 1, 4>}, {pipeline_mode = #tpu.pipeline_mode<synchronous>, transform_indices = @transform_3, window_bounds = array<i64: 1, 4>}, {pipeline_mode = #tpu.pipeline_mode<synchronous>, transform_indices = @transform_4, window_bounds = array<i64: 16, 2>}, {pipeline_mode = #tpu.pipeline_mode<synchronous>, transform_indices = @transform_5, window_bounds = array<i64: 1, 2>}, {pipeline_mode = #tpu.pipeline_mode<synchronous>, transform_indices = @transform_6, window_bounds = array<i64: 1, 2>}, {transform_indices = @transform_7, window_bounds = array<i64: 512, 4>}, {transform_indices = @transform_8, window_bounds = array<i64: 512, 2>}]} {
    %c0 = arith.constant 0 : index
    %c0_0 = arith.constant 0 : index
    %0 = vector.load %arg1[%c0, %c0_0] : memref<512x16xbf16, #tpu.memory_space<vmem>>, vector<512x16xbf16>
    %c0_1 = arith.constant 0 : index
    %c0_2 = arith.constant 0 : index
    %1 = vector.load %arg2[%c0_1, %c0_2] : memref<16x4xbf16, #tpu.memory_space<vmem>>, vector<16x4xbf16>
    %cst = arith.constant dense<0.000000e+00> : vector<512x4xf32>
    %2 = tpu.matmul %0, %1, %cst {dimension_numbers = #tpu.dot_dimension_numbers<[1], [0], [0], [1], [0, 0, 1, 1], [], []>} : vector<512x16xbf16>, vector<16x4xbf16>, vector<512x4xf32> -> vector<512x4xf32>
    %c0_3 = arith.constant 0 : index
    %c0_4 = arith.constant 0 : index
    %3 = vector.load %arg3[%c0_3, %c0_4] : memref<1x4xf32, #tpu.memory_space<vmem>>, vector<1x4xf32>
    %4 = vector.broadcast %3 : vector<1x4xf32> to vector<512x4xf32>
    %5 = arith.mulf %2, %4 : vector<512x4xf32>
    %c0_5 = arith.constant 0 : index
    %c0_6 = arith.constant 0 : index
    %6 = vector.load %arg4[%c0_5, %c0_6] : memref<1x4xf32, #tpu.memory_space<vmem>>, vector<1x4xf32>
    %7 = vector.broadcast %6 : vector<1x4xf32> to vector<512x4xf32>
    %8 = arith.addf %5, %7 : vector<512x4xf32>
    %cst_7 = arith.constant 0.000000e+00 : f32
    %9 = vector.broadcast %cst_7 : f32 to vector<512x4xf32>
    %10 = arith.maximumf %8, %9 : vector<512x4xf32>
    %11 = arith.truncf %10 : vector<512x4xf32> to vector<512x4xbf16>
    %c0_8 = arith.constant 0 : index
    %c0_9 = arith.constant 0 : index
    %12 = vector.load %arg8[%c0_8, %c0_9] : memref<512x4xbf16, #tpu.memory_space<vmem>>, vector<512x4xbf16>
    tpu.vector_store %arg8[%c0_8, %c0_9], %11 {strides = array<i32>} : memref<512x4xbf16, #tpu.memory_space<vmem>>, vector<512x4xbf16>,
    %c0_10 = arith.constant 0 : index
    %c0_11 = arith.constant 0 : index
    %13 = vector.load %arg5[%c0_10, %c0_11] : memref<16x2xbf16, #tpu.memory_space<vmem>>, vector<16x2xbf16>
    %cst_12 = arith.constant dense<0.000000e+00> : vector<512x2xf32>
    %14 = tpu.matmul %0, %13, %cst_12 {dimension_numbers = #tpu.dot_dimension_numbers<[1], [0], [0], [1], [0, 0, 1, 1], [], []>} : vector<512x16xbf16>, vector<16x2xbf16>, vector<512x2xf32> -> vector<512x2xf32>
    %c0_13 = arith.constant 0 : index
    %c0_14 = arith.constant 0 : index
    %15 = vector.load %arg6[%c0_13, %c0_14] : memref<1x2xf32, #tpu.memory_space<vmem>>, vector<1x2xf32>
    %16 = vector.broadcast %15 : vector<1x2xf32> to vector<512x2xf32>
    %17 = arith.mulf %14, %16 : vector<512x2xf32>
    %c0_15 = arith.constant 0 : index
    %c0_16 = arith.constant 0 : index
    %18 = vector.load %arg7[%c0_15, %c0_16] : memref<1x2xf32, #tpu.memory_space<vmem>>, vector<1x2xf32>
    %19 = vector.broadcast %18 : vector<1x2xf32> to vector<512x2xf32>
    %20 = arith.addf %17, %19 : vector<512x2xf32>
    %cst_17 = arith.constant 0.000000e+00 : f32
    %21 = vector.broadcast %cst_17 : f32 to vector<512x2xf32>
    %22 = arith.maximumf %20, %21 : vector<512x2xf32>
    %23 = arith.truncf %22 : vector<512x2xf32> to vector<512x2xbf16>
    %c0_18 = arith.constant 0 : index
    %c0_19 = arith.constant 0 : index
    %24 = vector.load %arg9[%c0_18, %c0_19] : memref<512x2xbf16, #tpu.memory_space<vmem>>, vector<512x2xbf16>
    tpu.vector_store %arg9[%c0_18, %c0_19], %23 {strides = array<i32>} : memref<512x2xbf16, #tpu.memory_space<vmem>>, vector<512x2xbf16>,
    return
  }
  func.func @transform_0(%arg0: i32) -> (i32, i32) {
    %c0_i32 = arith.constant 0 : i32
    %c0_i32_0 = arith.constant 0 : i32
    return %arg0, %c0_i32 : i32, i32
  }
  func.func @transform_1(%arg0: i32) -> (i32, i32) {
    %c0_i32 = arith.constant 0 : i32
    %c0_i32_0 = arith.constant 0 : i32
    %c0_i32_1 = arith.constant 0 : i32
    return %c0_i32, %c0_i32_0 : i32, i32
  }
  func.func @transform_2(%arg0: i32) -> (i32, i32) {
    %c0_i32 = arith.constant 0 : i32
    %c0_i32_0 = arith.constant 0 : i32
    %c0_i32_1 = arith.constant 0 : i32
    return %c0_i32, %c0_i32_0 : i32, i32
  }
  func.func @transform_3(%arg0: i32) -> (i32, i32) {
    %c0_i32 = arith.constant 0 : i32
    %c0_i32_0 = arith.constant 0 : i32
    %c0_i32_1 = arith.constant 0 : i32
    return %c0_i32, %c0_i32_0 : i32, i32
  }
  func.func @transform_4(%arg0: i32) -> (i32, i32) {
    %c0_i32 = arith.constant 0 : i32
    %c0_i32_0 = arith.constant 0 : i32
    %c0_i32_1 = arith.constant 0 : i32
    return %c0_i32, %c0_i32_0 : i32, i32
  }
  func.func @transform_5(%arg0: i32) -> (i32, i32) {
    %c0_i32 = arith.constant 0 : i32
    %c0_i32_0 = arith.constant 0 : i32
    %c0_i32_1 = arith.constant 0 : i32
    return %c0_i32, %c0_i32_0 : i32, i32
  }
  func.func @transform_6(%arg0: i32) -> (i32, i32) {
    %c0_i32 = arith.constant 0 : i32
    %c0_i32_0 = arith.constant 0 : i32
    %c0_i32_1 = arith.constant 0 : i32
    return %c0_i32, %c0_i32_0 : i32, i32
  }
  func.func @transform_7(%arg0: i32) -> (i32, i32) {
    %c0_i32 = arith.constant 0 : i32
    %c0_i32_0 = arith.constant 0 : i32
    return %arg0, %c0_i32 : i32, i32
  }
  func.func @transform_8(%arg0: i32) -> (i32, i32) {
    %c0_i32 = arith.constant 0 : i32
    %c0_i32_0 = arith.constant 0 : i32
    return %arg0, %c0_i32 : i32, i32
  }
}

module attributes {stable_mosaic.version = 11 : i64} {
  func.func @_conv3x3_kernel(%arg0: i32, %arg1: memref<1x18x18x2xbf16, #tpu.memory_space<vmem>>, %arg2: memref<9x2x2xbf16, #tpu.memory_space<vmem>>, %arg3: memref<1x2xf32, #tpu.memory_space<vmem>>, %arg4: memref<1x2xf32, #tpu.memory_space<vmem>>, %arg5: memref<1x256x2xbf16, #tpu.memory_space<vmem>>) attributes {dimension_semantics = [#tpu.dimension_semantics<parallel>], iteration_bounds = array<i64: 2>, scalar_prefetch = 0 : i64, scratch_operands = 0 : i64, tpu.core_type = #tpu.core_type<tc>, window_params = [{transform_indices = @transform_0, window_bounds = array<i64: 1, 18, 18, 2>}, {pipeline_mode = #tpu.pipeline_mode<synchronous>, transform_indices = @transform_1, window_bounds = array<i64: 9, 2, 2>}, {pipeline_mode = #tpu.pipeline_mode<synchronous>, transform_indices = @transform_2, window_bounds = array<i64: 1, 2>}, {pipeline_mode = #tpu.pipeline_mode<synchronous>, transform_indices = @transform_3, window_bounds = array<i64: 1, 2>}, {transform_indices = @transform_4, window_bounds = array<i64: 1, 256, 2>}]} {
    %c0 = arith.constant 0 : index
    %c0_0 = arith.constant 0 : index
    %c0_1 = arith.constant 0 : index
    %c0_2 = arith.constant 0 : index
    %0 = vector.load %arg1[%c0, %c0_0, %c0_1, %c0_2] : memref<1x18x18x2xbf16, #tpu.memory_space<vmem>>, vector<1x18x18x2xbf16>
    %1 = vector.shape_cast %0 : vector<1x18x18x2xbf16> to vector<18x18x2xbf16>
    %2 = arith.extf %1 : vector<18x18x2xbf16> to vector<18x18x2xf32>
    %cst = arith.constant 0.000000e+00 : f32
    %3 = vector.broadcast %cst : f32 to vector<256x2xf32>
    %4 = vector.extract_strided_slice %2 {offsets = [0, 0, 0], sizes = [16, 16, 2], strides = [1, 1, 1]} : vector<18x18x2xf32> to vector<16x16x2xf32>
    %5 = vector.shape_cast %4 : vector<16x16x2xf32> to vector<256x2xf32>
    %6 = arith.truncf %5 : vector<256x2xf32> to vector<256x2xbf16>
    %c0_3 = arith.constant 0 : index
    %c0_4 = arith.constant 0 : index
    %c0_5 = arith.constant 0 : index
    %7 = vector.load %arg2[%c0_3, %c0_4, %c0_5] : memref<9x2x2xbf16, #tpu.memory_space<vmem>>, vector<1x2x2xbf16>
    %8 = vector.shape_cast %7 : vector<1x2x2xbf16> to vector<2x2xbf16>
    %cst_6 = arith.constant dense<0.000000e+00> : vector<256x2xf32>
    %9 = tpu.matmul %6, %8, %cst_6 {dimension_numbers = #tpu.dot_dimension_numbers<[1], [0], [0], [1], [0, 0, 1, 1], [], []>} : vector<256x2xbf16>, vector<2x2xbf16>, vector<256x2xf32> -> vector<256x2xf32>
    %10 = arith.addf %3, %9 : vector<256x2xf32>
    %11 = vector.extract_strided_slice %2 {offsets = [0, 1, 0], sizes = [16, 16, 2], strides = [1, 1, 1]} : vector<18x18x2xf32> to vector<16x16x2xf32>
    %12 = vector.shape_cast %11 : vector<16x16x2xf32> to vector<256x2xf32>
    %13 = arith.truncf %12 : vector<256x2xf32> to vector<256x2xbf16>
    %c1 = arith.constant 1 : index
    %c0_7 = arith.constant 0 : index
    %c0_8 = arith.constant 0 : index
    %14 = vector.load %arg2[%c1, %c0_7, %c0_8] : memref<9x2x2xbf16, #tpu.memory_space<vmem>>, vector<1x2x2xbf16>
    %15 = vector.shape_cast %14 : vector<1x2x2xbf16> to vector<2x2xbf16>
    %cst_9 = arith.constant dense<0.000000e+00> : vector<256x2xf32>
    %16 = tpu.matmul %13, %15, %cst_9 {dimension_numbers = #tpu.dot_dimension_numbers<[1], [0], [0], [1], [0, 0, 1, 1], [], []>} : vector<256x2xbf16>, vector<2x2xbf16>, vector<256x2xf32> -> vector<256x2xf32>
    %17 = arith.addf %10, %16 : vector<256x2xf32>
    %18 = vector.extract_strided_slice %2 {offsets = [0, 2, 0], sizes = [16, 16, 2], strides = [1, 1, 1]} : vector<18x18x2xf32> to vector<16x16x2xf32>
    %19 = vector.shape_cast %18 : vector<16x16x2xf32> to vector<256x2xf32>
    %20 = arith.truncf %19 : vector<256x2xf32> to vector<256x2xbf16>
    %c2 = arith.constant 2 : index
    %c0_10 = arith.constant 0 : index
    %c0_11 = arith.constant 0 : index
    %21 = vector.load %arg2[%c2, %c0_10, %c0_11] : memref<9x2x2xbf16, #tpu.memory_space<vmem>>, vector<1x2x2xbf16>
    %22 = vector.shape_cast %21 : vector<1x2x2xbf16> to vector<2x2xbf16>
    %cst_12 = arith.constant dense<0.000000e+00> : vector<256x2xf32>
    %23 = tpu.matmul %20, %22, %cst_12 {dimension_numbers = #tpu.dot_dimension_numbers<[1], [0], [0], [1], [0, 0, 1, 1], [], []>} : vector<256x2xbf16>, vector<2x2xbf16>, vector<256x2xf32> -> vector<256x2xf32>
    %24 = arith.addf %17, %23 : vector<256x2xf32>
    %25 = vector.extract_strided_slice %2 {offsets = [1, 0, 0], sizes = [16, 16, 2], strides = [1, 1, 1]} : vector<18x18x2xf32> to vector<16x16x2xf32>
    %26 = vector.shape_cast %25 : vector<16x16x2xf32> to vector<256x2xf32>
    %27 = arith.truncf %26 : vector<256x2xf32> to vector<256x2xbf16>
    %c3 = arith.constant 3 : index
    %c0_13 = arith.constant 0 : index
    %c0_14 = arith.constant 0 : index
    %28 = vector.load %arg2[%c3, %c0_13, %c0_14] : memref<9x2x2xbf16, #tpu.memory_space<vmem>>, vector<1x2x2xbf16>
    %29 = vector.shape_cast %28 : vector<1x2x2xbf16> to vector<2x2xbf16>
    %cst_15 = arith.constant dense<0.000000e+00> : vector<256x2xf32>
    %30 = tpu.matmul %27, %29, %cst_15 {dimension_numbers = #tpu.dot_dimension_numbers<[1], [0], [0], [1], [0, 0, 1, 1], [], []>} : vector<256x2xbf16>, vector<2x2xbf16>, vector<256x2xf32> -> vector<256x2xf32>
    %31 = arith.addf %24, %30 : vector<256x2xf32>
    %32 = vector.extract_strided_slice %2 {offsets = [1, 1, 0], sizes = [16, 16, 2], strides = [1, 1, 1]} : vector<18x18x2xf32> to vector<16x16x2xf32>
    %33 = vector.shape_cast %32 : vector<16x16x2xf32> to vector<256x2xf32>
    %34 = arith.truncf %33 : vector<256x2xf32> to vector<256x2xbf16>
    %c4 = arith.constant 4 : index
    %c0_16 = arith.constant 0 : index
    %c0_17 = arith.constant 0 : index
    %35 = vector.load %arg2[%c4, %c0_16, %c0_17] : memref<9x2x2xbf16, #tpu.memory_space<vmem>>, vector<1x2x2xbf16>
    %36 = vector.shape_cast %35 : vector<1x2x2xbf16> to vector<2x2xbf16>
    %cst_18 = arith.constant dense<0.000000e+00> : vector<256x2xf32>
    %37 = tpu.matmul %34, %36, %cst_18 {dimension_numbers = #tpu.dot_dimension_numbers<[1], [0], [0], [1], [0, 0, 1, 1], [], []>} : vector<256x2xbf16>, vector<2x2xbf16>, vector<256x2xf32> -> vector<256x2xf32>
    %38 = arith.addf %31, %37 : vector<256x2xf32>
    %39 = vector.extract_strided_slice %2 {offsets = [1, 2, 0], sizes = [16, 16, 2], strides = [1, 1, 1]} : vector<18x18x2xf32> to vector<16x16x2xf32>
    %40 = vector.shape_cast %39 : vector<16x16x2xf32> to vector<256x2xf32>
    %41 = arith.truncf %40 : vector<256x2xf32> to vector<256x2xbf16>
    %c5 = arith.constant 5 : index
    %c0_19 = arith.constant 0 : index
    %c0_20 = arith.constant 0 : index
    %42 = vector.load %arg2[%c5, %c0_19, %c0_20] : memref<9x2x2xbf16, #tpu.memory_space<vmem>>, vector<1x2x2xbf16>
    %43 = vector.shape_cast %42 : vector<1x2x2xbf16> to vector<2x2xbf16>
    %cst_21 = arith.constant dense<0.000000e+00> : vector<256x2xf32>
    %44 = tpu.matmul %41, %43, %cst_21 {dimension_numbers = #tpu.dot_dimension_numbers<[1], [0], [0], [1], [0, 0, 1, 1], [], []>} : vector<256x2xbf16>, vector<2x2xbf16>, vector<256x2xf32> -> vector<256x2xf32>
    %45 = arith.addf %38, %44 : vector<256x2xf32>
    %46 = vector.extract_strided_slice %2 {offsets = [2, 0, 0], sizes = [16, 16, 2], strides = [1, 1, 1]} : vector<18x18x2xf32> to vector<16x16x2xf32>
    %47 = vector.shape_cast %46 : vector<16x16x2xf32> to vector<256x2xf32>
    %48 = arith.truncf %47 : vector<256x2xf32> to vector<256x2xbf16>
    %c6 = arith.constant 6 : index
    %c0_22 = arith.constant 0 : index
    %c0_23 = arith.constant 0 : index
    %49 = vector.load %arg2[%c6, %c0_22, %c0_23] : memref<9x2x2xbf16, #tpu.memory_space<vmem>>, vector<1x2x2xbf16>
    %50 = vector.shape_cast %49 : vector<1x2x2xbf16> to vector<2x2xbf16>
    %cst_24 = arith.constant dense<0.000000e+00> : vector<256x2xf32>
    %51 = tpu.matmul %48, %50, %cst_24 {dimension_numbers = #tpu.dot_dimension_numbers<[1], [0], [0], [1], [0, 0, 1, 1], [], []>} : vector<256x2xbf16>, vector<2x2xbf16>, vector<256x2xf32> -> vector<256x2xf32>
    %52 = arith.addf %45, %51 : vector<256x2xf32>
    %53 = vector.extract_strided_slice %2 {offsets = [2, 1, 0], sizes = [16, 16, 2], strides = [1, 1, 1]} : vector<18x18x2xf32> to vector<16x16x2xf32>
    %54 = vector.shape_cast %53 : vector<16x16x2xf32> to vector<256x2xf32>
    %55 = arith.truncf %54 : vector<256x2xf32> to vector<256x2xbf16>
    %c7 = arith.constant 7 : index
    %c0_25 = arith.constant 0 : index
    %c0_26 = arith.constant 0 : index
    %56 = vector.load %arg2[%c7, %c0_25, %c0_26] : memref<9x2x2xbf16, #tpu.memory_space<vmem>>, vector<1x2x2xbf16>
    %57 = vector.shape_cast %56 : vector<1x2x2xbf16> to vector<2x2xbf16>
    %cst_27 = arith.constant dense<0.000000e+00> : vector<256x2xf32>
    %58 = tpu.matmul %55, %57, %cst_27 {dimension_numbers = #tpu.dot_dimension_numbers<[1], [0], [0], [1], [0, 0, 1, 1], [], []>} : vector<256x2xbf16>, vector<2x2xbf16>, vector<256x2xf32> -> vector<256x2xf32>
    %59 = arith.addf %52, %58 : vector<256x2xf32>
    %60 = vector.extract_strided_slice %2 {offsets = [2, 2, 0], sizes = [16, 16, 2], strides = [1, 1, 1]} : vector<18x18x2xf32> to vector<16x16x2xf32>
    %61 = vector.shape_cast %60 : vector<16x16x2xf32> to vector<256x2xf32>
    %62 = arith.truncf %61 : vector<256x2xf32> to vector<256x2xbf16>
    %c8 = arith.constant 8 : index
    %c0_28 = arith.constant 0 : index
    %c0_29 = arith.constant 0 : index
    %63 = vector.load %arg2[%c8, %c0_28, %c0_29] : memref<9x2x2xbf16, #tpu.memory_space<vmem>>, vector<1x2x2xbf16>
    %64 = vector.shape_cast %63 : vector<1x2x2xbf16> to vector<2x2xbf16>
    %cst_30 = arith.constant dense<0.000000e+00> : vector<256x2xf32>
    %65 = tpu.matmul %62, %64, %cst_30 {dimension_numbers = #tpu.dot_dimension_numbers<[1], [0], [0], [1], [0, 0, 1, 1], [], []>} : vector<256x2xbf16>, vector<2x2xbf16>, vector<256x2xf32> -> vector<256x2xf32>
    %66 = arith.addf %59, %65 : vector<256x2xf32>
    %c0_31 = arith.constant 0 : index
    %c0_32 = arith.constant 0 : index
    %67 = vector.load %arg3[%c0_31, %c0_32] : memref<1x2xf32, #tpu.memory_space<vmem>>, vector<1x2xf32>
    %68 = vector.broadcast %67 : vector<1x2xf32> to vector<256x2xf32>
    %69 = arith.mulf %66, %68 : vector<256x2xf32>
    %c0_33 = arith.constant 0 : index
    %c0_34 = arith.constant 0 : index
    %70 = vector.load %arg4[%c0_33, %c0_34] : memref<1x2xf32, #tpu.memory_space<vmem>>, vector<1x2xf32>
    %71 = vector.broadcast %70 : vector<1x2xf32> to vector<256x2xf32>
    %72 = arith.addf %69, %71 : vector<256x2xf32>
    %cst_35 = arith.constant 0.000000e+00 : f32
    %73 = vector.broadcast %cst_35 : f32 to vector<256x2xf32>
    %74 = arith.maximumf %72, %73 : vector<256x2xf32>
    %75 = arith.truncf %74 : vector<256x2xf32> to vector<256x2xbf16>
    %c0_36 = arith.constant 0 : index
    %c0_37 = arith.constant 0 : index
    %c0_38 = arith.constant 0 : index
    %76 = vector.load %arg5[%c0_36, %c0_37, %c0_38] : memref<1x256x2xbf16, #tpu.memory_space<vmem>>, vector<1x256x2xbf16>
    %77 = vector.shape_cast %76 : vector<1x256x2xbf16> to vector<256x2xbf16>
    %78 = vector.shape_cast %75 : vector<256x2xbf16> to vector<1x256x2xbf16>
    tpu.vector_store %arg5[%c0_36, %c0_37, %c0_38], %78 {strides = array<i32>} : memref<1x256x2xbf16, #tpu.memory_space<vmem>>, vector<1x256x2xbf16>,
    return
  }
  func.func @transform_0(%arg0: i32) -> (i32, i32, i32, i32) {
    %c0_i32 = arith.constant 0 : i32
    %c0_i32_0 = arith.constant 0 : i32
    %c0_i32_1 = arith.constant 0 : i32
    %c0_i32_2 = arith.constant 0 : i32
    return %arg0, %c0_i32, %c0_i32_0, %c0_i32_1 : i32, i32, i32, i32
  }
  func.func @transform_1(%arg0: i32) -> (i32, i32, i32) {
    %c0_i32 = arith.constant 0 : i32
    %c0_i32_0 = arith.constant 0 : i32
    %c0_i32_1 = arith.constant 0 : i32
    %c0_i32_2 = arith.constant 0 : i32
    return %c0_i32, %c0_i32_0, %c0_i32_1 : i32, i32, i32
  }
  func.func @transform_2(%arg0: i32) -> (i32, i32) {
    %c0_i32 = arith.constant 0 : i32
    %c0_i32_0 = arith.constant 0 : i32
    %c0_i32_1 = arith.constant 0 : i32
    return %c0_i32, %c0_i32_0 : i32, i32
  }
  func.func @transform_3(%arg0: i32) -> (i32, i32) {
    %c0_i32 = arith.constant 0 : i32
    %c0_i32_0 = arith.constant 0 : i32
    %c0_i32_1 = arith.constant 0 : i32
    return %c0_i32, %c0_i32_0 : i32, i32
  }
  func.func @transform_4(%arg0: i32) -> (i32, i32, i32) {
    %c0_i32 = arith.constant 0 : i32
    %c0_i32_0 = arith.constant 0 : i32
    %c0_i32_1 = arith.constant 0 : i32
    return %arg0, %c0_i32, %c0_i32_0 : i32, i32, i32
  }
}

module attributes {stable_mosaic.version = 11 : i64} {
  func.func @_conv3x3_kernel(%arg0: i32, %arg1: memref<1x18x18x4xbf16, #tpu.memory_space<vmem>>, %arg2: memref<9x4x4xbf16, #tpu.memory_space<vmem>>, %arg3: memref<1x4xf32, #tpu.memory_space<vmem>>, %arg4: memref<1x4xf32, #tpu.memory_space<vmem>>, %arg5: memref<1x256x4xbf16, #tpu.memory_space<vmem>>) attributes {dimension_semantics = [#tpu.dimension_semantics<parallel>], iteration_bounds = array<i64: 2>, scalar_prefetch = 0 : i64, scratch_operands = 0 : i64, tpu.core_type = #tpu.core_type<tc>, window_params = [{transform_indices = @transform_0, window_bounds = array<i64: 1, 18, 18, 4>}, {pipeline_mode = #tpu.pipeline_mode<synchronous>, transform_indices = @transform_1, window_bounds = array<i64: 9, 4, 4>}, {pipeline_mode = #tpu.pipeline_mode<synchronous>, transform_indices = @transform_2, window_bounds = array<i64: 1, 4>}, {pipeline_mode = #tpu.pipeline_mode<synchronous>, transform_indices = @transform_3, window_bounds = array<i64: 1, 4>}, {transform_indices = @transform_4, window_bounds = array<i64: 1, 256, 4>}]} {
    %c0 = arith.constant 0 : index
    %c0_0 = arith.constant 0 : index
    %c0_1 = arith.constant 0 : index
    %c0_2 = arith.constant 0 : index
    %0 = vector.load %arg1[%c0, %c0_0, %c0_1, %c0_2] : memref<1x18x18x4xbf16, #tpu.memory_space<vmem>>, vector<1x18x18x4xbf16>
    %1 = vector.shape_cast %0 : vector<1x18x18x4xbf16> to vector<18x18x4xbf16>
    %2 = arith.extf %1 : vector<18x18x4xbf16> to vector<18x18x4xf32>
    %cst = arith.constant 0.000000e+00 : f32
    %3 = vector.broadcast %cst : f32 to vector<256x4xf32>
    %4 = vector.extract_strided_slice %2 {offsets = [0, 0, 0], sizes = [16, 16, 4], strides = [1, 1, 1]} : vector<18x18x4xf32> to vector<16x16x4xf32>
    %5 = vector.shape_cast %4 : vector<16x16x4xf32> to vector<256x4xf32>
    %6 = arith.truncf %5 : vector<256x4xf32> to vector<256x4xbf16>
    %c0_3 = arith.constant 0 : index
    %c0_4 = arith.constant 0 : index
    %c0_5 = arith.constant 0 : index
    %7 = vector.load %arg2[%c0_3, %c0_4, %c0_5] : memref<9x4x4xbf16, #tpu.memory_space<vmem>>, vector<1x4x4xbf16>
    %8 = vector.shape_cast %7 : vector<1x4x4xbf16> to vector<4x4xbf16>
    %cst_6 = arith.constant dense<0.000000e+00> : vector<256x4xf32>
    %9 = tpu.matmul %6, %8, %cst_6 {dimension_numbers = #tpu.dot_dimension_numbers<[1], [0], [0], [1], [0, 0, 1, 1], [], []>} : vector<256x4xbf16>, vector<4x4xbf16>, vector<256x4xf32> -> vector<256x4xf32>
    %10 = arith.addf %3, %9 : vector<256x4xf32>
    %11 = vector.extract_strided_slice %2 {offsets = [0, 1, 0], sizes = [16, 16, 4], strides = [1, 1, 1]} : vector<18x18x4xf32> to vector<16x16x4xf32>
    %12 = vector.shape_cast %11 : vector<16x16x4xf32> to vector<256x4xf32>
    %13 = arith.truncf %12 : vector<256x4xf32> to vector<256x4xbf16>
    %c1 = arith.constant 1 : index
    %c0_7 = arith.constant 0 : index
    %c0_8 = arith.constant 0 : index
    %14 = vector.load %arg2[%c1, %c0_7, %c0_8] : memref<9x4x4xbf16, #tpu.memory_space<vmem>>, vector<1x4x4xbf16>
    %15 = vector.shape_cast %14 : vector<1x4x4xbf16> to vector<4x4xbf16>
    %cst_9 = arith.constant dense<0.000000e+00> : vector<256x4xf32>
    %16 = tpu.matmul %13, %15, %cst_9 {dimension_numbers = #tpu.dot_dimension_numbers<[1], [0], [0], [1], [0, 0, 1, 1], [], []>} : vector<256x4xbf16>, vector<4x4xbf16>, vector<256x4xf32> -> vector<256x4xf32>
    %17 = arith.addf %10, %16 : vector<256x4xf32>
    %18 = vector.extract_strided_slice %2 {offsets = [0, 2, 0], sizes = [16, 16, 4], strides = [1, 1, 1]} : vector<18x18x4xf32> to vector<16x16x4xf32>
    %19 = vector.shape_cast %18 : vector<16x16x4xf32> to vector<256x4xf32>
    %20 = arith.truncf %19 : vector<256x4xf32> to vector<256x4xbf16>
    %c2 = arith.constant 2 : index
    %c0_10 = arith.constant 0 : index
    %c0_11 = arith.constant 0 : index
    %21 = vector.load %arg2[%c2, %c0_10, %c0_11] : memref<9x4x4xbf16, #tpu.memory_space<vmem>>, vector<1x4x4xbf16>
    %22 = vector.shape_cast %21 : vector<1x4x4xbf16> to vector<4x4xbf16>
    %cst_12 = arith.constant dense<0.000000e+00> : vector<256x4xf32>
    %23 = tpu.matmul %20, %22, %cst_12 {dimension_numbers = #tpu.dot_dimension_numbers<[1], [0], [0], [1], [0, 0, 1, 1], [], []>} : vector<256x4xbf16>, vector<4x4xbf16>, vector<256x4xf32> -> vector<256x4xf32>
    %24 = arith.addf %17, %23 : vector<256x4xf32>
    %25 = vector.extract_strided_slice %2 {offsets = [1, 0, 0], sizes = [16, 16, 4], strides = [1, 1, 1]} : vector<18x18x4xf32> to vector<16x16x4xf32>
    %26 = vector.shape_cast %25 : vector<16x16x4xf32> to vector<256x4xf32>
    %27 = arith.truncf %26 : vector<256x4xf32> to vector<256x4xbf16>
    %c3 = arith.constant 3 : index
    %c0_13 = arith.constant 0 : index
    %c0_14 = arith.constant 0 : index
    %28 = vector.load %arg2[%c3, %c0_13, %c0_14] : memref<9x4x4xbf16, #tpu.memory_space<vmem>>, vector<1x4x4xbf16>
    %29 = vector.shape_cast %28 : vector<1x4x4xbf16> to vector<4x4xbf16>
    %cst_15 = arith.constant dense<0.000000e+00> : vector<256x4xf32>
    %30 = tpu.matmul %27, %29, %cst_15 {dimension_numbers = #tpu.dot_dimension_numbers<[1], [0], [0], [1], [0, 0, 1, 1], [], []>} : vector<256x4xbf16>, vector<4x4xbf16>, vector<256x4xf32> -> vector<256x4xf32>
    %31 = arith.addf %24, %30 : vector<256x4xf32>
    %32 = vector.extract_strided_slice %2 {offsets = [1, 1, 0], sizes = [16, 16, 4], strides = [1, 1, 1]} : vector<18x18x4xf32> to vector<16x16x4xf32>
    %33 = vector.shape_cast %32 : vector<16x16x4xf32> to vector<256x4xf32>
    %34 = arith.truncf %33 : vector<256x4xf32> to vector<256x4xbf16>
    %c4 = arith.constant 4 : index
    %c0_16 = arith.constant 0 : index
    %c0_17 = arith.constant 0 : index
    %35 = vector.load %arg2[%c4, %c0_16, %c0_17] : memref<9x4x4xbf16, #tpu.memory_space<vmem>>, vector<1x4x4xbf16>
    %36 = vector.shape_cast %35 : vector<1x4x4xbf16> to vector<4x4xbf16>
    %cst_18 = arith.constant dense<0.000000e+00> : vector<256x4xf32>
    %37 = tpu.matmul %34, %36, %cst_18 {dimension_numbers = #tpu.dot_dimension_numbers<[1], [0], [0], [1], [0, 0, 1, 1], [], []>} : vector<256x4xbf16>, vector<4x4xbf16>, vector<256x4xf32> -> vector<256x4xf32>
    %38 = arith.addf %31, %37 : vector<256x4xf32>
    %39 = vector.extract_strided_slice %2 {offsets = [1, 2, 0], sizes = [16, 16, 4], strides = [1, 1, 1]} : vector<18x18x4xf32> to vector<16x16x4xf32>
    %40 = vector.shape_cast %39 : vector<16x16x4xf32> to vector<256x4xf32>
    %41 = arith.truncf %40 : vector<256x4xf32> to vector<256x4xbf16>
    %c5 = arith.constant 5 : index
    %c0_19 = arith.constant 0 : index
    %c0_20 = arith.constant 0 : index
    %42 = vector.load %arg2[%c5, %c0_19, %c0_20] : memref<9x4x4xbf16, #tpu.memory_space<vmem>>, vector<1x4x4xbf16>
    %43 = vector.shape_cast %42 : vector<1x4x4xbf16> to vector<4x4xbf16>
    %cst_21 = arith.constant dense<0.000000e+00> : vector<256x4xf32>
    %44 = tpu.matmul %41, %43, %cst_21 {dimension_numbers = #tpu.dot_dimension_numbers<[1], [0], [0], [1], [0, 0, 1, 1], [], []>} : vector<256x4xbf16>, vector<4x4xbf16>, vector<256x4xf32> -> vector<256x4xf32>
    %45 = arith.addf %38, %44 : vector<256x4xf32>
    %46 = vector.extract_strided_slice %2 {offsets = [2, 0, 0], sizes = [16, 16, 4], strides = [1, 1, 1]} : vector<18x18x4xf32> to vector<16x16x4xf32>
    %47 = vector.shape_cast %46 : vector<16x16x4xf32> to vector<256x4xf32>
    %48 = arith.truncf %47 : vector<256x4xf32> to vector<256x4xbf16>
    %c6 = arith.constant 6 : index
    %c0_22 = arith.constant 0 : index
    %c0_23 = arith.constant 0 : index
    %49 = vector.load %arg2[%c6, %c0_22, %c0_23] : memref<9x4x4xbf16, #tpu.memory_space<vmem>>, vector<1x4x4xbf16>
    %50 = vector.shape_cast %49 : vector<1x4x4xbf16> to vector<4x4xbf16>
    %cst_24 = arith.constant dense<0.000000e+00> : vector<256x4xf32>
    %51 = tpu.matmul %48, %50, %cst_24 {dimension_numbers = #tpu.dot_dimension_numbers<[1], [0], [0], [1], [0, 0, 1, 1], [], []>} : vector<256x4xbf16>, vector<4x4xbf16>, vector<256x4xf32> -> vector<256x4xf32>
    %52 = arith.addf %45, %51 : vector<256x4xf32>
    %53 = vector.extract_strided_slice %2 {offsets = [2, 1, 0], sizes = [16, 16, 4], strides = [1, 1, 1]} : vector<18x18x4xf32> to vector<16x16x4xf32>
    %54 = vector.shape_cast %53 : vector<16x16x4xf32> to vector<256x4xf32>
    %55 = arith.truncf %54 : vector<256x4xf32> to vector<256x4xbf16>
    %c7 = arith.constant 7 : index
    %c0_25 = arith.constant 0 : index
    %c0_26 = arith.constant 0 : index
    %56 = vector.load %arg2[%c7, %c0_25, %c0_26] : memref<9x4x4xbf16, #tpu.memory_space<vmem>>, vector<1x4x4xbf16>
    %57 = vector.shape_cast %56 : vector<1x4x4xbf16> to vector<4x4xbf16>
    %cst_27 = arith.constant dense<0.000000e+00> : vector<256x4xf32>
    %58 = tpu.matmul %55, %57, %cst_27 {dimension_numbers = #tpu.dot_dimension_numbers<[1], [0], [0], [1], [0, 0, 1, 1], [], []>} : vector<256x4xbf16>, vector<4x4xbf16>, vector<256x4xf32> -> vector<256x4xf32>
    %59 = arith.addf %52, %58 : vector<256x4xf32>
    %60 = vector.extract_strided_slice %2 {offsets = [2, 2, 0], sizes = [16, 16, 4], strides = [1, 1, 1]} : vector<18x18x4xf32> to vector<16x16x4xf32>
    %61 = vector.shape_cast %60 : vector<16x16x4xf32> to vector<256x4xf32>
    %62 = arith.truncf %61 : vector<256x4xf32> to vector<256x4xbf16>
    %c8 = arith.constant 8 : index
    %c0_28 = arith.constant 0 : index
    %c0_29 = arith.constant 0 : index
    %63 = vector.load %arg2[%c8, %c0_28, %c0_29] : memref<9x4x4xbf16, #tpu.memory_space<vmem>>, vector<1x4x4xbf16>
    %64 = vector.shape_cast %63 : vector<1x4x4xbf16> to vector<4x4xbf16>
    %cst_30 = arith.constant dense<0.000000e+00> : vector<256x4xf32>
    %65 = tpu.matmul %62, %64, %cst_30 {dimension_numbers = #tpu.dot_dimension_numbers<[1], [0], [0], [1], [0, 0, 1, 1], [], []>} : vector<256x4xbf16>, vector<4x4xbf16>, vector<256x4xf32> -> vector<256x4xf32>
    %66 = arith.addf %59, %65 : vector<256x4xf32>
    %c0_31 = arith.constant 0 : index
    %c0_32 = arith.constant 0 : index
    %67 = vector.load %arg3[%c0_31, %c0_32] : memref<1x4xf32, #tpu.memory_space<vmem>>, vector<1x4xf32>
    %68 = vector.broadcast %67 : vector<1x4xf32> to vector<256x4xf32>
    %69 = arith.mulf %66, %68 : vector<256x4xf32>
    %c0_33 = arith.constant 0 : index
    %c0_34 = arith.constant 0 : index
    %70 = vector.load %arg4[%c0_33, %c0_34] : memref<1x4xf32, #tpu.memory_space<vmem>>, vector<1x4xf32>
    %71 = vector.broadcast %70 : vector<1x4xf32> to vector<256x4xf32>
    %72 = arith.addf %69, %71 : vector<256x4xf32>
    %cst_35 = arith.constant 0.000000e+00 : f32
    %73 = vector.broadcast %cst_35 : f32 to vector<256x4xf32>
    %74 = arith.maximumf %72, %73 : vector<256x4xf32>
    %75 = arith.truncf %74 : vector<256x4xf32> to vector<256x4xbf16>
    %c0_36 = arith.constant 0 : index
    %c0_37 = arith.constant 0 : index
    %c0_38 = arith.constant 0 : index
    %76 = vector.load %arg5[%c0_36, %c0_37, %c0_38] : memref<1x256x4xbf16, #tpu.memory_space<vmem>>, vector<1x256x4xbf16>
    %77 = vector.shape_cast %76 : vector<1x256x4xbf16> to vector<256x4xbf16>
    %78 = vector.shape_cast %75 : vector<256x4xbf16> to vector<1x256x4xbf16>
    tpu.vector_store %arg5[%c0_36, %c0_37, %c0_38], %78 {strides = array<i32>} : memref<1x256x4xbf16, #tpu.memory_space<vmem>>, vector<1x256x4xbf16>,
    return
  }
  func.func @transform_0(%arg0: i32) -> (i32, i32, i32, i32) {
    %c0_i32 = arith.constant 0 : i32
    %c0_i32_0 = arith.constant 0 : i32
    %c0_i32_1 = arith.constant 0 : i32
    %c0_i32_2 = arith.constant 0 : i32
    return %arg0, %c0_i32, %c0_i32_0, %c0_i32_1 : i32, i32, i32, i32
  }
  func.func @transform_1(%arg0: i32) -> (i32, i32, i32) {
    %c0_i32 = arith.constant 0 : i32
    %c0_i32_0 = arith.constant 0 : i32
    %c0_i32_1 = arith.constant 0 : i32
    %c0_i32_2 = arith.constant 0 : i32
    return %c0_i32, %c0_i32_0, %c0_i32_1 : i32, i32, i32
  }
  func.func @transform_2(%arg0: i32) -> (i32, i32) {
    %c0_i32 = arith.constant 0 : i32
    %c0_i32_0 = arith.constant 0 : i32
    %c0_i32_1 = arith.constant 0 : i32
    return %c0_i32, %c0_i32_0 : i32, i32
  }
  func.func @transform_3(%arg0: i32) -> (i32, i32) {
    %c0_i32 = arith.constant 0 : i32
    %c0_i32_0 = arith.constant 0 : i32
    %c0_i32_1 = arith.constant 0 : i32
    return %c0_i32, %c0_i32_0 : i32, i32
  }
  func.func @transform_4(%arg0: i32) -> (i32, i32, i32) {
    %c0_i32 = arith.constant 0 : i32
    %c0_i32_0 = arith.constant 0 : i32
    %c0_i32_1 = arith.constant 0 : i32
    return %arg0, %c0_i32, %c0_i32_0 : i32, i32, i32
  }
}

module attributes {stable_mosaic.version = 11 : i64} {
  func.func @_tail_kernel(%arg0: i32, %arg1: memref<512x4xbf16, #tpu.memory_space<vmem>>, %arg2: memref<512x2xbf16, #tpu.memory_space<vmem>>, %arg3: memref<4x16xbf16, #tpu.memory_space<vmem>>, %arg4: memref<2x16xbf16, #tpu.memory_space<vmem>>, %arg5: memref<1x16xf32, #tpu.memory_space<vmem>>, %arg6: memref<1x16xf32, #tpu.memory_space<vmem>>, %arg7: memref<512x16xf32, #tpu.memory_space<vmem>>, %arg8: memref<512x16xf32, #tpu.memory_space<vmem>>) attributes {dimension_semantics = [#tpu.dimension_semantics<parallel>], iteration_bounds = array<i64: 1>, scalar_prefetch = 0 : i64, scratch_operands = 0 : i64, tpu.core_type = #tpu.core_type<tc>, window_params = [{transform_indices = @transform_0, window_bounds = array<i64: 512, 4>}, {transform_indices = @transform_1, window_bounds = array<i64: 512, 2>}, {pipeline_mode = #tpu.pipeline_mode<synchronous>, transform_indices = @transform_2, window_bounds = array<i64: 4, 16>}, {pipeline_mode = #tpu.pipeline_mode<synchronous>, transform_indices = @transform_3, window_bounds = array<i64: 2, 16>}, {pipeline_mode = #tpu.pipeline_mode<synchronous>, transform_indices = @transform_4, window_bounds = array<i64: 1, 16>}, {pipeline_mode = #tpu.pipeline_mode<synchronous>, transform_indices = @transform_5, window_bounds = array<i64: 1, 16>}, {transform_indices = @transform_6, window_bounds = array<i64: 512, 16>}, {transform_indices = @transform_7, window_bounds = array<i64: 512, 16>}]} {
    %c0 = arith.constant 0 : index
    %c0_0 = arith.constant 0 : index
    %0 = vector.load %arg1[%c0, %c0_0] : memref<512x4xbf16, #tpu.memory_space<vmem>>, vector<512x4xbf16>
    %c0_1 = arith.constant 0 : index
    %c0_2 = arith.constant 0 : index
    %1 = vector.load %arg3[%c0_1, %c0_2] : memref<4x16xbf16, #tpu.memory_space<vmem>>, vector<4x16xbf16>
    %cst = arith.constant dense<0.000000e+00> : vector<512x16xf32>
    %2 = tpu.matmul %0, %1, %cst {dimension_numbers = #tpu.dot_dimension_numbers<[1], [0], [0], [1], [0, 0, 1, 1], [], []>} : vector<512x4xbf16>, vector<4x16xbf16>, vector<512x16xf32> -> vector<512x16xf32>
    %c0_3 = arith.constant 0 : index
    %c0_4 = arith.constant 0 : index
    %3 = vector.load %arg2[%c0_3, %c0_4] : memref<512x2xbf16, #tpu.memory_space<vmem>>, vector<512x2xbf16>
    %c0_5 = arith.constant 0 : index
    %c0_6 = arith.constant 0 : index
    %4 = vector.load %arg4[%c0_5, %c0_6] : memref<2x16xbf16, #tpu.memory_space<vmem>>, vector<2x16xbf16>
    %cst_7 = arith.constant dense<0.000000e+00> : vector<512x16xf32>
    %5 = tpu.matmul %3, %4, %cst_7 {dimension_numbers = #tpu.dot_dimension_numbers<[1], [0], [0], [1], [0, 0, 1, 1], [], []>} : vector<512x2xbf16>, vector<2x16xbf16>, vector<512x16xf32> -> vector<512x16xf32>
    %6 = arith.addf %2, %5 : vector<512x16xf32>
    %c0_8 = arith.constant 0 : index
    %c0_9 = arith.constant 0 : index
    %7 = vector.load %arg5[%c0_8, %c0_9] : memref<1x16xf32, #tpu.memory_space<vmem>>, vector<1x16xf32>
    %8 = vector.broadcast %7 : vector<1x16xf32> to vector<512x16xf32>
    %9 = arith.mulf %6, %8 : vector<512x16xf32>
    %c0_10 = arith.constant 0 : index
    %c0_11 = arith.constant 0 : index
    %10 = vector.load %arg6[%c0_10, %c0_11] : memref<1x16xf32, #tpu.memory_space<vmem>>, vector<1x16xf32>
    %11 = vector.broadcast %10 : vector<1x16xf32> to vector<512x16xf32>
    %12 = arith.addf %9, %11 : vector<512x16xf32>
    %c0_12 = arith.constant 0 : index
    %c0_13 = arith.constant 0 : index
    %13 = vector.load %arg7[%c0_12, %c0_13] : memref<512x16xf32, #tpu.memory_space<vmem>>, vector<512x16xf32>
    %14 = arith.addf %12, %13 : vector<512x16xf32>
    %cst_14 = arith.constant 0.000000e+00 : f32
    %15 = vector.broadcast %cst_14 : f32 to vector<512x16xf32>
    %16 = arith.maximumf %14, %15 : vector<512x16xf32>
    %c0_15 = arith.constant 0 : index
    %c0_16 = arith.constant 0 : index
    %17 = vector.load %arg8[%c0_15, %c0_16] : memref<512x16xf32, #tpu.memory_space<vmem>>, vector<512x16xf32>
    tpu.vector_store %arg8[%c0_15, %c0_16], %16 {strides = array<i32>} : memref<512x16xf32, #tpu.memory_space<vmem>>, vector<512x16xf32>,
    return
  }
  func.func @transform_0(%arg0: i32) -> (i32, i32) {
    %c0_i32 = arith.constant 0 : i32
    %c0_i32_0 = arith.constant 0 : i32
    return %arg0, %c0_i32 : i32, i32
  }
  func.func @transform_1(%arg0: i32) -> (i32, i32) {
    %c0_i32 = arith.constant 0 : i32
    %c0_i32_0 = arith.constant 0 : i32
    return %arg0, %c0_i32 : i32, i32
  }
  func.func @transform_2(%arg0: i32) -> (i32, i32) {
    %c0_i32 = arith.constant 0 : i32
    %c0_i32_0 = arith.constant 0 : i32
    %c0_i32_1 = arith.constant 0 : i32
    return %c0_i32, %c0_i32_0 : i32, i32
  }
  func.func @transform_3(%arg0: i32) -> (i32, i32) {
    %c0_i32 = arith.constant 0 : i32
    %c0_i32_0 = arith.constant 0 : i32
    %c0_i32_1 = arith.constant 0 : i32
    return %c0_i32, %c0_i32_0 : i32, i32
  }
  func.func @transform_4(%arg0: i32) -> (i32, i32) {
    %c0_i32 = arith.constant 0 : i32
    %c0_i32_0 = arith.constant 0 : i32
    %c0_i32_1 = arith.constant 0 : i32
    return %c0_i32, %c0_i32_0 : i32, i32
  }
  func.func @transform_5(%arg0: i32) -> (i32, i32) {
    %c0_i32 = arith.constant 0 : i32
    %c0_i32_0 = arith.constant 0 : i32
    %c0_i32_1 = arith.constant 0 : i32
    return %c0_i32, %c0_i32_0 : i32, i32
  }
  func.func @transform_6(%arg0: i32) -> (i32, i32) {
    %c0_i32 = arith.constant 0 : i32
    %c0_i32_0 = arith.constant 0 : i32
    return %arg0, %c0_i32 : i32, i32
  }
  func.func @transform_7(%arg0: i32) -> (i32, i32) {
    %c0_i32 = arith.constant 0 : i32
    %c0_i32_0 = arith.constant 0 : i32
    return %arg0, %c0_i32 : i32, i32
  }
}

</mosaic_0001>

<bundles_post_ra>
// kernel: aligned_bottleneck_pallas.7
= control target key start
LH: loop header
LB: loop body
LE: loop exit
PB: predicated region body
PF: predicated region fallthrough
CT: control target
= control target key end

     0   :  { %s3928_s15 = smov 0   ;;  %s4960_s0 = inlined_call_operand.vmem [shape: bf16[2,18,18,2], index: 0, kind: input, shape index: {}]   ;;  %s4961_s1 = inlined_call_operand.vmem [shape: bf16[9,2,2], index: 1, kind: input, shape index: {}]   ;;  %s4962_s2 = inlined_call_operand.vmem [shape: f32[1,2], index: 2, kind: input, shape index: {}]   ;;  %s4963_s3 = inlined_call_operand.vmem [shape: f32[1,2], index: 3, kind: input, shape index: {}]   ;;  %s4964_s4 = inlined_call_operand.vmem [shape: bf16[2,256,2], index: 4, kind: output, shape index: {}]  }
   0x1 LB: > { %s2876_s16 = sadd.s32 4294967295, %s3901_s15   ;;  %p2880_p0 = scmp.ge.s32.totalorder %s3901_s15, 1  ;;  %s3901_s15 = sphi %s3928_s15, %s14_s15  }
   0x2   : > { %p162_p1 = scmp.lt.s32.totalorder %s3901_s15, 3 }
   0x4   : > { %p163_p2 = pnand %p2880_p0, %p162_p1 }
   0x6   : > { %166 = sbr.rel (%p163_p2) target bundleno = 537 (0x219), region = 36 }
   0xd   : > { %v2900_v0 = vld [vmem:[%s4961_s1 + $0x1] sm:$0x1]  ;;  %vm552_vm0 = vcmask 1040384   ;;  %v3942_v1 = vld [vmem:[%s4961_s1 + $0x4] sm:$0x1]  ;;  %p188_p3 = scmp.lt.s32.totalorder %s2876_s16, 1 }
   0xe   : > { %3840 = vmatprep.subr.msk.bf16.mxu1 %vm552_vm0, %v2900_v0  ;;  %3844 = vmatprep.subr.msk.bf16.mxu0 %vm552_vm0, %v3942_v1  ;;  %v554_v2 = vsel %vm552_vm0, %v2900_v0, 0  ;;  %v3950_v3 = vsel %vm552_vm0, %v3942_v1, 0  ;;  %v323_v4 = vld [vmem:[%s4961_s1] sm:$0x1]  ;;  %v2985_v5 = vld [vmem:[%s4961_s1 + $0x5] sm:$0x1] }
   0xf   : > { %5003 = vst [vmem:[#allocation2_spill] sm:$0xff] %v3950_v3  ;;  %3277 = vmatpush3.bf16.msra.mxu1 %v554_v2  ;;  %3413 = vmatpush3.bf16.msra.mxu0 %v3950_v3  ;;  %s5045_s16 = smov (!%p188_p3, %s2876_s16), 1  ;;  %vm372_vm1 = vcmask 1046528   ;;  %vm503_vm2 = vcmask 15360   ;;  %v766_v37 = vsel %vm552_vm0, %v323_v4, 0  ;;  %v1732_v43 = vsel %vm552_vm0, %v2985_v5, 0 }
  0x10   : > { %3841 = vmatprep.subr.msk.bf16.mxu1 %vm552_vm0, %v323_v4  ;;  %3846 = vmatprep.subr.msk.bf16.mxu0 %vm552_vm0, %v2985_v5  ;;  %s3850_s25 = smul.u32 216, %s5045_s16  ;;  %v4038_v44 = vld [vmem:[%s4961_s1 + $0x2] sm:$0x1]  ;;  %v4082_v2 = vld [vmem:[%s4961_s1 + $0x6] sm:$0x1]  ;;  %vm929_vm3 = vcmask 1045504  }
  0x11   : > { %s3090_s19 = sshll.u32 %s5045_s16, 7  ;;  %vm2788_vm4 = vcmask 11264  }
  0x12   : > { %s3967_s28 = scalar_lea.vmem %s4960_s0, %s3850_s25  ;;  %s4827_s22 = scalar_lea.vmem %s4964_s4, %s3090_s19 }
  0x13   : > { %v3970_v6 = vld [vmem:[%s3967_s28] sm:$0xff]   ;;  %v3973_v7 = vld [vmem:[%s3967_s28 + $0x8] sm:$0x1]  ;;  %v3976_v8 = vld [vmem:[%s3967_s28 + $0xc] sm:$0xff]  }
  0x14   : > { %v4967_v9 = vunpack.c.l.bf16 %v3970_v6  ;;  %v4966_v10 = vunpack.c.h.bf16 %v3970_v6  ;;  %v4965_v11 = vunpack.c.l.bf16 %v3973_v7  ;;  %v3982_v12 = vld [vmem:[%s3967_s28 + $0x14] sm:$0x1]  ;;  %v256_v13 = vunpack.c.l.bf16 %v3976_v8  ;;  %v3986_v14 = vld [vmem:[%s3967_s28 + $0x18] sm:$0xff]   ;;  %v4002_v23 = vld [vmem:[%s3967_s28 + $0x20] sm:$0x1] }
  0x15   : > { %v257_v15 = vunpack.c.h.bf16 %v3976_v8  ;;  %v258_v16 = vunpack.c.l.bf16 %v3982_v12  ;;  %v259_v20 = vunpack.c.l.bf16 %v3986_v14  ;;  %v4009_v27 = vld [vmem:[%s3967_s28 + $0x24] sm:$0xff]   ;;  %v260_v31 = vunpack.c.h.bf16 %v3986_v14  ;;  %v4018_v34 = vld [vmem:[%s3967_s28 + $0x2c] sm:$0x1]  ;;  %v4021_v35 = vld [vmem:[%s3967_s28 + $0x30] sm:$0xff]  }
  0x16   : > { %v373_v17 = vrot.slane %v4967_v9, 1  ;;  %v374_v18 = vrot.slane %v4966_v10, 1  ;;  %v376_v19 = vrot.slane %v4965_v11, 1  ;;  %v378_v21 = vrot.slane %v256_v13, 1  ;;  %v4028_v40 = vld [vmem:[%s3967_s28 + $0x38] sm:$0x1] }
  0x17   : > { %v379_v22 = vrot.slane %v257_v15, 1  ;;  %v381_v26 = vrot.slane %v258_v16, 1  ;;  %v261_v32 = vunpack.c.l.bf16 %v4002_v23  ;;  %v383_v33 = vrot.slane %v259_v20, 1  ;;  %v4049_v49 = vld [vmem:[%s3967_s28 + $0x3c] sm:$0xff]   ;;  %v4056_v54 = vld [vmem:[%s3967_s28 + $0x44] sm:$0x1] }
  0x18   : > { %v375_v24 = vsel %vm372_vm1, %v373_v17, %v374_v18  ;;  %v377_v25 = vsel %vm372_vm1, %v374_v18, %v376_v19  ;;  %v262_v38 = vunpack.c.l.bf16 %v4009_v27  ;;  %v263_v39 = vunpack.c.h.bf16 %v4009_v27  ;;  %v4059_v55 = vld [vmem:[%s3967_s28 + $0x48] sm:$0xff]   ;;  %v4077_v0 = vld [vmem:[%s3967_s28 + $0x50] sm:$0x1]  ;;  %v4093_v19 = vld [vmem:[%s3967_s28 + $0x54] sm:$0xff]  }
  0x19   : > { %v485_v28 = vpack.c.bf16 %v377_v25, %v375_v24  ;;  %v380_v29 = vsel %vm372_vm1, %v378_v21, %v379_v22  ;;  %v382_v30 = vsel %vm372_vm1, %v379_v22, %v381_v26  ;;  %v384_v41 = vrot.slane %v260_v31, 1  ;;  %v4102_v26 = vld [vmem:[%s3967_s28 + $0x5c] sm:$0x1] }
  0x1a   : > { %v486_v36 = vpack.c.bf16 %v382_v30, %v380_v29  ;;  %v386_v42 = vrot.slane %v261_v32, 1  ;;  %v264_v45 = vunpack.c.l.bf16 %v4018_v34  ;;  %v388_v46 = vrot.slane %v262_v38, 1 }
  0x1b   : > { %3278 = vmatprep.mubr.msk.bf16.mxu1 %vm503_vm2, %v485_v28  ;;  %v389_v47 = vrot.slane %v263_v39, 1  ;;  %v265_v48 = vunpack.c.l.bf16 %v4021_v35  ;;  %v385_v50 = vsel %vm372_vm1, %v383_v33, %v384_v41  ;;  %v266_v52 = vunpack.c.h.bf16 %v4021_v35 }
  0x1c   : > { %3414 = vmatprep.mubr.msk.bf16.mxu0 %vm503_vm2, %v486_v36  ;;  %3279 = vmatmul.mubr.msk.bf16.vlgmr.msra.gmra.mrb[0].mxu1 %vm503_vm2, %v486_v36  ;;  %v387_v51 = vsel %vm372_vm1, %v384_v41, %v386_v42  ;;  %v267_v53 = vunpack.c.l.bf16 %v4028_v40  ;;  %v391_v58 = vrot.slane %v264_v45, 1  ;;  %v268_v62 = vunpack.c.l.bf16 %v4049_v49 }
  0x1d   : > { %3311 = vmatpush3.bf16.msra.mxu1 %v766_v37  ;;  %v4061_v56 = vpack.c.bf16 %v387_v51, %v385_v50  ;;  %v390_v57 = vsel %vm372_vm1, %v388_v46, %v389_v47  ;;  %v393_v59 = vrot.slane %v265_v48, 1  ;;  %v394_v60 = vrot.slane %v266_v52, 1  ;;  %v4129_v51 = vld [vmem:[%s3967_s28 + $0x60] sm:$0xff]  }
  0x1e   : > { %3842 = vmatprep.subr.msk.bf16.mxu1 %vm552_vm0, %v4038_v44  ;;  %v396_v61 = vrot.slane %v267_v53, 1  ;;  %v269_v63 = vunpack.c.h.bf16 %v4049_v49  ;;  %v392_v4 = vsel %vm372_vm1, %v389_v47, %v391_v58  ;;  %v4983_v5 = vunpack.c.l.bf16 %v4056_v54  ;;  %v4136_v58 = vld [vmem:[%s3967_s28 + $0x68] sm:$0x1] }
  0x1f   : > { %3415 = vmatmul.mubr.msk.bf16.vlgmr.msra.gmra.mrb[0].mxu0 %vm503_vm2, %v4061_v56  ;;  %3282 = vmatprep.mubr.msk.bf16.mxu1 %vm503_vm2, %v4061_v56  ;;  %v4982_v17 = vunpack.c.l.bf16 %v4059_v55  ;;  %v4977_v18 = vunpack.c.h.bf16 %v4059_v55  ;;  %v4095_v21 = vpack.c.bf16 %v392_v4, %v390_v57  ;;  %v395_v22 = vsel %vm372_vm1, %v393_v59, %v394_v60 }
  0x20   : > { %3447 = vmatpush3.bf16.msra.mxu0 %v1732_v43  ;;  %v397_v24 = vsel %vm372_vm1, %v394_v60, %v396_v61  ;;  %v398_v25 = vrot.slane %v268_v62, 1  ;;  %v399_v29 = vrot.slane %v269_v63, 1  ;;  %v401_v30 = vrot.slane %v4983_v5, 1 }
  0x21   : > { %v4104_v28 = vpack.c.bf16 %v397_v24, %v395_v22  ;;  %v4974_v33 = vunpack.c.l.bf16 %v4077_v0  ;;  %3847 = vmatprep.subr.msk.bf16.mxu0 %vm552_vm0, %v4082_v2  ;;  %3418 = vmatprep.mubr.msk.bf16.mxu0 %vm503_vm2, %v4095_v21  ;;  %v403_v36 = vrot.slane %v4982_v17, 1  ;;  %v404_v37 = vrot.slane %v4977_v18, 1 }
  0x22   : > { %v4973_v41 = vunpack.c.l.bf16 %v4093_v19  ;;  %v4972_v42 = vunpack.c.h.bf16 %v4093_v19  ;;  %v400_v43 = vsel %vm372_vm1, %v398_v25, %v399_v29  ;;  %v402_v46 = vsel %vm372_vm1, %v399_v29, %v401_v30  ;;  %v4154_v30 = vld [vmem:[%s3967_s28 + $0x6c] sm:$0xff]  }
  0x23   : > { %v406_v47 = vrot.slane %v4974_v33, 1  ;;  %v4968_v50 = vunpack.c.l.bf16 %v4102_v26  ;;  %v4133_v57 = vpack.c.bf16 %v402_v46, %v400_v43  ;;  %v4971_v4 = vunpack.c.l.bf16 %v4129_v51 }
  0x24   : > { %3283 = vmatmul.mubr.msk.bf16.gmra.mrb[4].mxu1 %vm503_vm2, %v4095_v21  ;;  %v408_v59 = vrot.slane %v4973_v41, 1  ;;  %v409_v60 = vrot.slane %v4972_v42, 1  ;;  %v405_v22 = vsel %vm372_vm1, %v403_v36, %v404_v37  ;;  %v4970_v25 = vunpack.c.h.bf16 %v4129_v51  ;;  %v4161_v36 = vld [vmem:[%s3967_s28 + $0x74] sm:$0x1] }
  0x25   : > { %3286 = vmatprep.mubr.msk.bf16.mxu1 %vm503_vm2, %v4104_v28  ;;  %v411_v61 = vrot.slane %v4968_v50, 1  ;;  %v407_v24 = vsel %vm372_vm1, %v404_v37, %v406_v47  ;;  %v4969_v29 = vunpack.c.l.bf16 %v4136_v58  ;;  %v935_v43 = vrot.slane %v256_v13, 2  ;;  %v4172_v50 = vld [vmem:[%s3967_s28 + $0x78] sm:$0xff]   ;;  %v4175_v13 = vld [vmem:[%s3967_s28 + $0x80] sm:$0x1] }
  0x26   : > { %v410_v46 = vsel %vm372_vm1, %v408_v59, %v409_v60  ;;  %v936_v37 = vrot.slane %v257_v15, 2  ;;  %v938_v47 = vrot.slane %v258_v16, 2  ;;  %v4167_v10 = vpack.c.bf16 %v407_v24, %v405_v22 }
  0x27   : > { %3419 = vmatmul.mubr.msk.bf16.gmra.mrb[4].mxu0 %vm503_vm2, %v4104_v28  ;;  %v412_v11 = vsel %vm372_vm1, %v409_v60, %v411_v61  ;;  %v413_v9 = vrot.slane %v4971_v4, 1  ;;  %v414_v59 = vrot.slane %v4970_v25, 1  ;;  %v416_v15 = vrot.slane %v4969_v29, 1 }
  0x28   : > { %3422 = vmatprep.mubr.msk.bf16.mxu0 %vm503_vm2, %v4133_v57  ;;  %v4976_v12 = vunpack.c.l.bf16 %v4154_v30  ;;  %v4975_v16 = vunpack.c.h.bf16 %v4154_v30  ;;  %v4187_v60 = vpack.c.bf16 %v412_v11, %v410_v46  ;;  %v4981_v61 = vunpack.c.l.bf16 %v4161_v36 }
  0x29   : > { %v940_v22 = vrot.slane %v259_v20, 2  ;;  %v4979_v24 = vunpack.c.l.bf16 %v4172_v50  ;;  %v4978_v29 = vunpack.c.h.bf16 %v4172_v50  ;;  %v4980_v25 = vunpack.c.l.bf16 %v4175_v13 }
  0x2a   : > { %v941_v4 = vrot.slane %v260_v31, 2  ;;  %v943_v42 = vrot.slane %v261_v32, 2  ;;  %v937_v11 = vsel %vm929_vm3, %v935_v43, %v936_v37  ;;  %v939_v46 = vsel %vm929_vm3, %v936_v37, %v938_v47  ;;  %v4210_v31 = vld [vmem:[%s3967_s28 + $0x84] sm:$0xff]   ;;  %v4213_v32 = vld [vmem:[%s3967_s28 + $0x8c] sm:$0x1] }
  0x2b   : > { %v415_v20 = vsel %vm372_vm1, %v413_v9, %v414_v59  ;;  %v417_v41 = vsel %vm372_vm1, %v414_v59, %v416_v15  ;;  %v418_v33 = vrot.slane %v4976_v12, 1  ;;  %v419_v23 = vrot.slane %v4975_v16, 1  ;;  %v4228_v15 = vld [vmem:[%s3967_s28 + $0x90] sm:$0xff]  }
  0x2c   : > { %3287 = vmatmul.mubr.msk.bf16.gmra.mrb[8].mxu1 %vm503_vm2, %v4133_v57  ;;  %v421_v43 = vrot.slane %v4981_v61, 1  ;;  %v4219_v9 = vpack.c.bf16 %v939_v46, %v937_v11  ;;  %v423_v37 = vrot.slane %v4979_v24, 1  ;;  %v424_v47 = vrot.slane %v4978_v29, 1  ;;  %v4236_v46 = vld [vmem:[%s3967_s28 + $0x98] sm:$0x1] }
  0x2d   : > { %3290 = vmatprep.mubr.msk.bf16.mxu1 %vm503_vm2, %v4167_v10  ;;  %v426_v59 = vrot.slane %v4980_v25, 1  ;;  %v4230_v16 = vpack.c.bf16 %v417_v41, %v415_v20  ;;  %v4989_v12 = vunpack.c.l.bf16 %v4210_v31  ;;  %v4988_v18 = vunpack.c.h.bf16 %v4210_v31 }
  0x2e   : > { %v4984_v11 = vunpack.c.l.bf16 %v4213_v32  ;;  %v420_v29 = vsel %vm372_vm1, %v418_v33, %v419_v23  ;;  %v942_v24 = vsel %vm929_vm3, %v940_v22, %v941_v4  ;;  %v944_v25 = vsel %vm929_vm3, %v941_v4, %v943_v42 }
  0x2f   : > { %3423 = vmatmul.mubr.msk.bf16.gmra.mrb[8].mxu0 %vm503_vm2, %v4167_v10  ;;  %v945_v41 = vrot.slane %v262_v38, 2  ;;  %v422_v20 = vsel %vm372_vm1, %v419_v23, %v421_v43  ;;  %v946_v61 = vrot.slane %v263_v39, 2  ;;  %v4987_v17 = vunpack.c.l.bf16 %v4228_v15 }
  0x30   : > { %3426 = vmatprep.mubr.msk.bf16.mxu0 %vm503_vm2, %v4187_v60  ;;  %v4985_v5 = vunpack.c.h.bf16 %v4228_v15  ;;  %v425_v33 = vsel %vm372_vm1, %v423_v37, %v424_v47  ;;  %v427_v42 = vsel %vm372_vm1, %v424_v47, %v426_v59  ;;  %v948_v38 = vrot.slane %v264_v45, 2 }
  0x31   : > { %v4986_v4 = vunpack.c.l.bf16 %v4236_v46  ;;  %v428_v22 = vrot.slane %v4989_v12, 1  ;;  %v429_v39 = vrot.slane %v4988_v18, 1  ;;  %v431_v23 = vrot.slane %v4984_v11, 1  ;;  %v4279_v11 = vld [vmem:[%s3967_s28 + $0x9c] sm:$0xff]  }
  0x32   : > { %v4265_v43 = vpack.c.bf16 %v422_v20, %v420_v29  ;;  %v4267_v37 = vpack.c.bf16 %v944_v25, %v942_v24  ;;  %v4271_v34 = vpack.c.bf16 %v427_v42, %v425_v33  ;;  %v947_v45 = vsel %vm929_vm3, %v945_v41, %v946_v61  ;;  %v4289_v41 = vld [vmem:[%s3967_s28 + $0xa4] sm:$0x1] }
  0x33   : > { %v433_v47 = vrot.slane %v4987_v17, 1  ;;  %v434_v59 = vrot.slane %v4985_v5, 1  ;;  %v949_v25 = vsel %vm929_vm3, %v946_v61, %v948_v38  ;;  %v950_v29 = vrot.slane %v265_v48, 2  ;;  %v4298_v38 = vld [vmem:[%s3967_s28 + $0xa8] sm:$0xff]   ;;  %v4301_v48 = vld [vmem:[%s3967_s28 + $0xb0] sm:$0x1] }
  0x34   : > { %3291 = vmatmul.mubr.msk.bf16.gmra.mrb[12].mxu1 %vm503_vm2, %v4187_v60  ;;  %v951_v24 = vrot.slane %v266_v52, 2  ;;  %v436_v20 = vrot.slane %v4986_v4, 1  ;;  %v430_v33 = vsel %vm372_vm1, %v428_v22, %v429_v39  ;;  %v432_v42 = vsel %vm372_vm1, %v429_v39, %v431_v23 }
  0x35   : > { %3294 = vmatprep.mubr.msk.bf16.mxu1 %vm503_vm2, %v4230_v16  ;;  %v953_v5 = vrot.slane %v267_v53, 2  ;;  %v955_v61 = vrot.slane %v268_v62, 2  ;;  %v956_v52 = vrot.slane %v269_v63, 2  ;;  %v5004_v22 = vunpack.c.l.bf16 %v4056_v54 }
  0x36   : > { %v4995_v39 = vunpack.c.l.bf16 %v4279_v11  ;;  %v4994_v40 = vunpack.c.h.bf16 %v4279_v11  ;;  %v1934_v53 = vsel %vm552_vm0, %v4082_v2, 0  ;;  %v4315_v62 = vpack.c.bf16 %v949_v25, %v947_v45 }
  0x37   : > { %3427 = vmatmul.mubr.msk.bf16.gmra.mrb[12].mxu0 %vm503_vm2, %v4230_v16  ;;  %v958_v4 = vrot.slane %v5004_v22, 2  ;;  %v435_v23 = vsel %vm372_vm1, %v433_v47, %v434_v59  ;;  %v4992_v17 = vunpack.c.l.bf16 %v4289_v41  ;;  %v437_v63 = vsel %vm372_vm1, %v434_v59, %v436_v20  ;;  %v4330_v47 = vld [vmem:[%s4961_s1 + $0x7] sm:$0x1] }
  0x38   : > { %3448 = vmatprep.mubr.msk.bf16.mxu0 %vm503_vm2, %v4219_v9  ;;  %v4990_v54 = vunpack.c.l.bf16 %v4298_v38  ;;  %v4991_v22 = vunpack.c.h.bf16 %v4298_v38  ;;  %v4993_v18 = vunpack.c.l.bf16 %v4301_v48  ;;  %v4323_v12 = vpack.c.bf16 %v432_v42, %v430_v33 }
  0x39   : > { %v952_v2 = vsel %vm929_vm3, %v950_v29, %v951_v24  ;;  %v954_v45 = vsel %vm929_vm3, %v951_v24, %v953_v5  ;;  %v957_v59 = vsel %vm929_vm3, %v955_v61, %v956_v52  ;;  %v959_v25 = vsel %vm929_vm3, %v956_v52, %v958_v4  ;;  %v4355_v52 = vld [vmem:[%s3967_s28 + $0xb4] sm:$0xff]  }
  0x3a   : > { %5005 = vst [vmem:[#allocation3_spill] sm:$0xff] %v4323_v12  ;;  %v438_v20 = vrot.slane %v4995_v39, 1  ;;  %v439_v29 = vrot.slane %v4994_v40, 1  ;;  %v4342_v5 = vpack.c.bf16 %v437_v63, %v435_v23  ;;  %v441_v24 = vrot.slane %v4992_v17, 1 }
  0x3b   : > { %v4346_v33 = vpack.c.bf16 %v954_v45, %v952_v2  ;;  %v443_v4 = vrot.slane %v4990_v54, 1  ;;  %v444_v42 = vrot.slane %v4991_v22, 1  ;;  %v446_v61 = vrot.slane %v4993_v18, 1 }
  0x3c   : > { %3295 = vmatmul.mubr.msk.bf16.gmra.mrb[16].mxu1 %vm503_vm2, %v4265_v43  ;;  %v4362_v23 = vpack.c.bf16 %v959_v25, %v957_v59  ;;  %v5006_v63 = vunpack.c.l.bf16 %v4059_v55  ;;  %v5007_v45 = vunpack.c.h.bf16 %v4059_v55  ;;  %v5008_v22 = vunpack.c.l.bf16 %v4077_v0 }
  0x3d   : > { %3298 = vmatprep.mubr.msk.bf16.mxu1 %vm503_vm2, %v4271_v34  ;;  %v440_v18 = vsel %vm372_vm1, %v438_v20, %v439_v29  ;;  %v5009_v40 = vunpack.c.l.bf16 %v4093_v19  ;;  %v5010_v59 = vunpack.c.h.bf16 %v4093_v19  ;;  %v5011_v3 = vunpack.c.l.bf16 %v4102_v26 }
  0x3e   : > { %v960_v2 = vrot.slane %v5006_v63, 2  ;;  %v961_v54 = vrot.slane %v5007_v45, 2  ;;  %v963_v17 = vrot.slane %v5008_v22, 2  ;;  %v442_v0 = vsel %vm372_vm1, %v439_v29, %v441_v24 }
  0x3f   : > { %3449 = vmatmul.mubr.msk.bf16.vlgmr.msra.gmra.mrb[0].mxu0 %vm503_vm2, %v4267_v37  ;;  %v965_v39 = vrot.slane %v5009_v40, 2  ;;  %v966_v25 = vrot.slane %v5010_v59, 2  ;;  %v968_v63 = vrot.slane %v5011_v3, 2  ;;  %v5000_v22 = vunpack.c.l.bf16 %v4355_v52 }
  0x40   : > { %3481 = vmatpush3.bf16.msra.mxu0 %v1934_v53  ;;  %3452 = vmatprep.mubr.msk.bf16.mxu0 %vm503_vm2, %v4315_v62  ;;  %v4358_v53 = vld [vmem:[%s3967_s28 + $0xbc] sm:$0x1]  ;;  %v4999_v45 = vunpack.c.h.bf16 %v4355_v52  ;;  %v447_v40 = vsel %vm372_vm1, %v444_v42, %v446_v61  ;;  %v962_v59 = vsel %vm929_vm3, %v960_v2, %v961_v54  ;;  %v4390_v3 = vpack.c.bf16 %v442_v0, %v440_v18 }
  0x41   : > { %3848 = vmatprep.subr.msk.bf16.mxu0 %vm552_vm0, %v4330_v47  ;;  %v964_v26 = vsel %vm929_vm3, %v961_v54, %v963_v17  ;;  %v967_v29 = vsel %vm929_vm3, %v965_v39, %v966_v25  ;;  %v969_v24 = vsel %vm929_vm3, %v966_v25, %v968_v63  ;;  %v5013_v18 = vunpack.c.l.bf16 %v4358_v53 }
  0x42   : > { %v4407_v17 = vpack.c.bf16 %v964_v26, %v962_v59  ;;  %v4409_v39 = vpack.c.bf16 %v969_v24, %v967_v29  ;;  %v5014_v54 = vunpack.c.l.bf16 %v4129_v51  ;;  %v5015_v63 = vunpack.c.h.bf16 %v4129_v51 }
  0x43   : > { %v451_v61 = vrot.slane %v5013_v18, 1  ;;  %v5017_v59 = vunpack.c.l.bf16 %v4154_v30  ;;  %v5018_v29 = vunpack.c.h.bf16 %v4154_v30 }
  0x44   : > { %3299 = vmatmul.mubr.msk.bf16.gmra.mrb[20].mxu1 %vm503_vm2, %v4323_v12  ;;  %v445_v12 = vsel %vm372_vm1, %v443_v4, %v444_v42  ;;  %v448_v4 = vrot.slane %v5000_v22, 1  ;;  %v449_v42 = vrot.slane %v4999_v45, 1  ;;  %v971_v0 = vrot.slane %v5015_v63, 2 }
  0x45   : > { %3302 = vmatprep.mubr.msk.bf16.mxu1 %vm503_vm2, %v4342_v5  ;;  %v4397_v20 = vpack.c.bf16 %v447_v40, %v445_v12  ;;  %v970_v12 = vrot.slane %v5014_v54, 2  ;;  %v5016_v40 = vunpack.c.l.bf16 %v4136_v58  ;;  %v975_v26 = vrot.slane %v5017_v59, 2 }
  0x46   : > { %v450_v2 = vsel %vm372_vm1, %v448_v4, %v449_v42  ;;  %v452_v25 = vsel %vm372_vm1, %v449_v42, %v451_v61  ;;  %v976_v24 = vrot.slane %v5018_v29, 2  ;;  %v5019_v54 = vunpack.c.l.bf16 %v4161_v36 }
  0x47   : > { %3453 = vmatmul.mubr.msk.bf16.gmra.mrb[4].mxu0 %vm503_vm2, %v4346_v33  ;;  %5012 = vst [vmem:[#allocation4_spill] sm:$0xff] %v4397_v20  ;;  %v973_v18 = vrot.slane %v5016_v40, 2  ;;  %v5020_v22 = vunpack.c.l.bf16 %v3970_v6  ;;  %v5021_v42 = vunpack.c.h.bf16 %v3970_v6  ;;  %v5022_v63 = vunpack.c.l.bf16 %v3973_v7 }
  0x48   : > { %3456 = vmatprep.mubr.msk.bf16.mxu0 %vm503_vm2, %v4362_v23  ;;  %v978_v45 = vrot.slane %v5019_v54, 2  ;;  %v4435_v58 = vpack.c.bf16 %v452_v25, %v450_v2  ;;  %v972_v36 = vsel %vm929_vm3, %v970_v12, %v971_v0  ;;  %v5023_v2 = vunpack.c.l.bf16 %v4172_v50 }
  0x49   : > { %v930_v4 = vrot.slane %v5020_v22, 2  ;;  %v931_v61 = vrot.slane %v5021_v42, 2  ;;  %v974_v40 = vsel %vm929_vm3, %v971_v0, %v973_v18  ;;  %v977_v22 = vsel %vm929_vm3, %v975_v26, %v976_v24 }
  0x4a   : > { %v979_v59 = vsel %vm929_vm3, %v976_v24, %v978_v45  ;;  %v4448_v7 = vpack.c.bf16 %v974_v40, %v972_v36  ;;  %v980_v25 = vrot.slane %v5023_v2, 2  ;;  %v5024_v45 = vunpack.c.h.bf16 %v4172_v50 }
  0x4b   : > { %v4444_v29 = vsel %vm929_vm3, %v930_v4, %v931_v61  ;;  %v4457_v12 = vpack.c.bf16 %v979_v59, %v977_v22  ;;  %v5025_v18 = vunpack.c.l.bf16 %v4175_v13  ;;  %v5026_v4 = vunpack.c.l.bf16 %v4210_v31 }
  0x4c   : > { %3303 = vmatmul.mubr.msk.bf16.gmra.mrb[24].mxu1 %vm503_vm2, %v4390_v3  ;;  %v981_v0 = vrot.slane %v5024_v45, 2  ;;  %v1109_v40 = vsel %vm552_vm0, %v4038_v44, 0  ;;  %v5029_v44 = vunpack.c.l.bf16 %v4228_v15 }
  0x4d   : > { %3306 = vmatprep.mubr.msk.bf16.mxu1 %vm503_vm2, %v4397_v20  ;;  %v933_v20 = vrot.slane %v5022_v63, 2  ;;  %v983_v26 = vrot.slane %v5025_v18, 2  ;;  %v985_v42 = vrot.slane %v5026_v4, 2  ;;  %v5028_v63 = vunpack.c.l.bf16 %v4213_v32  ;;  %v4484_v32 = vld [vmem:[%s4961_s1 + $0x3] sm:$0x1] }
  0x4e   : > { %v982_v13 = vsel %vm929_vm3, %v980_v25, %v981_v0  ;;  %v990_v45 = vrot.slane %v5029_v44, 2 }
  0x4f   : > { %3457 = vmatmul.mubr.msk.bf16.gmra.mrb[8].mxu0 %vm503_vm2, %v4407_v17  ;;  %v4453_v54 = vsel %vm929_vm3, %v931_v61, %v933_v20  ;;  %v5027_v20 = vunpack.c.h.bf16 %v4210_v31  ;;  %v984_v36 = vsel %vm929_vm3, %v981_v0, %v983_v26  ;;  %v5030_v0 = vunpack.c.h.bf16 %v4228_v15 }
  0x50   : > { %3460 = vmatprep.mubr.msk.bf16.mxu0 %vm503_vm2, %v4409_v39  ;;  %v1042_v24 = vpack.c.bf16 %v4453_v54, %v4444_v29  ;;  %v4488_v2 = vpack.c.bf16 %v984_v36, %v982_v13  ;;  %v5031_v26 = vunpack.c.l.bf16 %v4236_v46  ;;  %v252_v54 = vld [vmem:[%s3967_s28 + $0xd4] sm:$0x1] }
  0x51   : > { %v986_v61 = vrot.slane %v5027_v20, 2  ;;  %v991_v18 = vrot.slane %v5030_v0, 2  ;;  %v5036_v0 = vunpack.c.h.bf16 %v4298_v38 }
  0x52   : > { %v993_v4 = vrot.slane %v5031_v26, 2 }
  0x53   : > { %v987_v22 = vsel %vm929_vm3, %v985_v42, %v986_v61  ;;  %v5032_v42 = vunpack.c.l.bf16 %v4279_v11  ;;  %v992_v46 = vsel %vm929_vm3, %v990_v45, %v991_v18  ;;  %v1001_v26 = vrot.slane %v5036_v0, 2 }
  0x54   : > { %3307 = vmatmul.mubr.msk.bf16.gmra.mrb[28].mxu1 %vm503_vm2, %v4435_v58  ;;  %v994_v36 = vsel %vm929_vm3, %v991_v18, %v993_v4  ;;  %v5037_v18 = vunpack.c.l.bf16 %v4301_v48 }
  0x55   : > { %3312 = vmatprep.mubr.msk.bf16.mxu1 %vm503_vm2, %v3970_v6  ;;  %v988_v6 = vrot.slane %v5028_v63, 2  ;;  %v995_v20 = vrot.slane %v5032_v42, 2  ;;  %v5038_v42 = vunpack.c.l.bf16 %v4355_v52 }
  0x56   : > { %v1003_v4 = vrot.slane %v5037_v18, 2 }
  0x57   : > { %3461 = vmatmul.mubr.msk.bf16.gmra.mrb[12].mxu0 %vm503_vm2, %v4448_v7  ;;  %v989_v59 = vsel %vm929_vm3, %v986_v61, %v988_v6  ;;  %v5033_v61 = vunpack.c.h.bf16 %v4279_v11  ;;  %v5034_v6 = vunpack.c.l.bf16 %v4289_v41 }
  0x58   : > { %3464 = vmatprep.mubr.msk.bf16.mxu0 %vm503_vm2, %v4457_v12  ;;  %v4492_v25 = vpack.c.bf16 %v989_v59, %v987_v22  ;;  %v4518_v22 = vpack.c.bf16 %v994_v36, %v992_v46  ;;  %v5035_v59 = vunpack.c.l.bf16 %v4298_v38  ;;  %v4537_v46 = vld [vmem:[%s3967_s28 + $0xc0] sm:$0xff]   ;;  %v249_v36 = vld [vmem:[%s3967_s28 + $0xc8] sm:$0x1]  ;;  %v1004_v48 = vsel %vm929_vm3, %v1001_v26, %v1003_v4 }
  0x59   : > { %v996_v63 = vrot.slane %v5033_v61, 2  ;;  %v998_v13 = vrot.slane %v5034_v6, 2  ;;  %v5039_v61 = vunpack.c.h.bf16 %v4355_v52  ;;  %v5040_v6 = vunpack.c.l.bf16 %v4358_v53 }
  0x5a   : > { %v1000_v44 = vrot.slane %v5035_v59, 2  ;;  %v302_v59 = vunpack.c.h.bf16 %v4537_v46  ;;  %v303_v0 = vunpack.c.l.bf16 %v249_v36 }
  0x5b   : > { %v999_v41 = vsel %vm929_vm3, %v996_v63, %v998_v13  ;;  %v1008_v13 = vrot.slane %v5040_v6, 2 }
  0x5c   : > { %3313 = vmatmul.mubr.msk.bf16.vlgmr.msra.gmra.mrb[0].mxu1 %vm503_vm2, %v3976_v8  ;;  %v1719_v4 = vrot.slane %v302_v59, 2  ;;  %v1512_v36 = vrot.slane %v303_v0, 1 }
  0x5d   : > { %3345 = vmatpush3.bf16.msra.mxu1 %v1109_v40  ;;  %3316 = vmatprep.mubr.msk.bf16.mxu1 %vm503_vm2, %v3986_v14  ;;  %v997_v40 = vsel %vm929_vm3, %v995_v20, %v996_v63  ;;  %v1005_v20 = vrot.slane %v5038_v42, 2  ;;  %v1006_v63 = vrot.slane %v5039_v61, 2  ;;  %v1721_v61 = vrot.slane %v303_v0, 2 }
  0x5e   : > { %3843 = vmatprep.subr.msk.bf16.mxu1 %vm552_vm0, %v4484_v32  ;;  %v4526_v45 = vpack.c.bf16 %v999_v41, %v997_v40  ;;  %v1002_v40 = vsel %vm929_vm3, %v1000_v44, %v1001_v26  ;;  %v301_v41 = vunpack.c.l.bf16 %v4537_v46  ;;  %v306_v0 = vunpack.c.l.bf16 %v252_v54 }
  0x5f   : > { %3465 = vmatmul.mubr.msk.bf16.gmra.mrb[16].mxu0 %vm503_vm2, %v4488_v2  ;;  %v1007_v53 = vsel %vm929_vm3, %v1005_v20, %v1006_v63  ;;  %v1009_v18 = vsel %vm929_vm3, %v1006_v63, %v1008_v13  ;;  %v4552_v42 = vpack.c.bf16 %v1004_v48, %v1002_v40  ;;  %v1510_v20 = vrot.slane %v302_v59, 1  ;;  %v3037_v59 = vld [vmem:[%s4961_s1 + $0x8] sm:$0x1] }
  0x60   : > { %3468 = vmatprep.mubr.msk.bf16.mxu0 %vm503_vm2, %v4492_v25  ;;  %v4556_v44 = vpack.c.bf16 %v1009_v18, %v1007_v53  ;;  %v1718_v26 = vrot.slane %v301_v41, 2  ;;  %v1509_v6 = vrot.slane %v301_v41, 1  ;;  %v1722_v13 = vsel %vm929_vm3, %v1719_v4, %v1721_v61 }
  0x61   : > { %v1513_v48 = vsel %vm372_vm1, %v1510_v20, %v1512_v36  ;;  %v2146_v41 = vsel %vm552_vm0, %v4330_v47, 0  ;;  %v1311_v47 = vsel %vm552_vm0, %v4484_v32, 0 }
  0x62   : > { %v1720_v63 = vsel %vm929_vm3, %v1718_v26, %v1719_v4  ;;  %v1511_v40 = vsel %vm372_vm1, %v1509_v6, %v1510_v20  ;;  %v2344_v26 = vrot.slane %v306_v0, 2  ;;  %v2355_v20 = vsel %vm552_vm0, %v3037_v59, 0 }
  0x63   : > { %v4566_v53 = vpack.c.bf16 %v1513_v48, %v1511_v40  ;;  %v4570_v18 = vpack.c.bf16 %v1722_v13, %v1720_v63 }
  0x64   : > { %3317 = vmatmul.mubr.msk.bf16.gmra.mrb[4].mxu1 %vm503_vm2, %v4009_v27 }
  0x65   : > { %3320 = vmatprep.mubr.msk.bf16.mxu1 %vm503_vm2, %v4021_v35 }
  0x67   : > { %3469 = vmatmul.mubr.msk.bf16.gmra.mrb[20].mxu0 %vm503_vm2, %v4518_v22 }
  0x68   : > { %3472 = vmatprep.mubr.msk.bf16.mxu0 %vm503_vm2, %v4526_v45 }
  0x6c   : > { %3321 = vmatmul.mubr.msk.bf16.gmra.mrb[8].mxu1 %vm503_vm2, %v4049_v49 }
  0x6d   : > { %3324 = vmatprep.mubr.msk.bf16.mxu1 %vm503_vm2, %v4059_v55 }
  0x6f   : > { %3473 = vmatmul.mubr.msk.bf16.gmra.mrb[24].mxu0 %vm503_vm2, %v4552_v42 }
  0x70   : > { %3476 = vmatprep.mubr.msk.bf16.mxu0 %vm503_vm2, %v4556_v44 }
  0x74   : > { %3325 = vmatmul.mubr.msk.bf16.gmra.mrb[12].mxu1 %vm503_vm2, %v4093_v19 }
  0x75   : > { %3328 = vmatprep.mubr.msk.bf16.mxu1 %vm503_vm2, %v4129_v51 }
  0x77   : > { %3477 = vmatmul.mubr.msk.bf16.gmra.mrb[28].mxu0 %vm503_vm2, %v4570_v18 }
  0x78   : > { %3482 = vmatprep.mubr.msk.bf16.mxu0 %vm503_vm2, %v3986_v14 }
  0x7c   : > { %3329 = vmatmul.mubr.msk.bf16.gmra.mrb[16].mxu1 %vm503_vm2, %v4154_v30 }
  0x7d   : > { %3332 = vmatprep.mubr.msk.bf16.mxu1 %vm503_vm2, %v4172_v50 }
  0x7f   : > { %3483 = vmatmul.mubr.msk.bf16.vlgmr.msra.gmra.mrb[0].mxu0 %vm503_vm2, %v4009_v27 }
  0x80   : > { %3515 = vmatpush3.bf16.msra.mxu0 %v2146_v41  ;;  %3486 = vmatprep.mubr.msk.bf16.mxu0 %vm503_vm2, %v4021_v35 }
  0x81   : > { %3849 = vmatprep.subr.msk.bf16.mxu0 %vm552_vm0, %v3037_v59 }
  0x84   : > { %3333 = vmatmul.mubr.msk.bf16.gmra.mrb[20].mxu1 %vm503_vm2, %v4210_v31 }
  0x85   : > { %3336 = vmatprep.mubr.msk.bf16.mxu1 %vm503_vm2, %v4228_v15 }
  0x87   : > { %3487 = vmatmul.mubr.msk.bf16.gmra.mrb[4].mxu0 %vm503_vm2, %v4049_v49 }
  0x88   : > { %3490 = vmatprep.mubr.msk.bf16.mxu0 %vm503_vm2, %v4059_v55 }
  0x8c   : > { %3337 = vmatmul.mubr.msk.bf16.gmra.mrb[24].mxu1 %vm503_vm2, %v4279_v11 }
  0x8d   : > { %3340 = vmatprep.mubr.msk.bf16.mxu1 %vm503_vm2, %v4298_v38 }
  0x8f   : > { %3491 = vmatmul.mubr.msk.bf16.gmra.mrb[8].mxu0 %vm503_vm2, %v4093_v19 }
  0x90   : > { %3494 = vmatprep.mubr.msk.bf16.mxu0 %vm503_vm2, %v4129_v51 }
  0x94   : > { %3341 = vmatmul.mubr.msk.bf16.gmra.mrb[28].mxu1 %vm503_vm2, %v4355_v52 }
  0x95   : > { %3346 = vmatprep.mubr.msk.bf16.mxu1 %vm503_vm2, %v1042_v24 }
  0x97   : > { %3495 = vmatmul.mubr.msk.bf16.gmra.mrb[12].mxu0 %vm503_vm2, %v4154_v30 }
  0x98   : > { %3498 = vmatprep.mubr.msk.bf16.mxu0 %vm503_vm2, %v4172_v50 }
  0x9c   : > { %3347 = vmatmul.mubr.msk.bf16.vlgmr.msra.gmra.mrb[0].mxu1 %vm503_vm2, %v4219_v9 }
  0x9d   : > { %3379 = vmatpush3.bf16.msra.mxu1 %v1311_v47  ;;  %3350 = vmatprep.mubr.msk.bf16.mxu1 %vm503_vm2, %v4267_v37 }
  0x9e   : > { %3845 = vmatprep.subr.msk.bf16.mxu1 %vm552_vm0, %v3942_v1  ;;  %v250_v1 = vld [vmem:[%s3967_s28 + $0xcc] sm:$0xff]  }
  0x9f   : > { %3499 = vmatmul.mubr.msk.bf16.gmra.mrb[16].mxu0 %vm503_vm2, %v4210_v31  ;;  %v304_v9 = vunpack.c.l.bf16 %v250_v1  ;;  %v305_v29 = vunpack.c.h.bf16 %v250_v1 }
  0xa0   : > { %3502 = vmatprep.mubr.msk.bf16.mxu0 %vm503_vm2, %v4228_v15 }
  0xa1   : > { %v2341_v24 = vrot.slane %v304_v9, 2  ;;  %v2342_v32 = vrot.slane %v305_v29, 2 }
  0xa3   : > { %v4651_v4 = vsel %vm929_vm3, %v2341_v24, %v2342_v32  ;;  %v4656_v61 = vsel %vm929_vm3, %v2342_v32, %v2344_v26 }
  0xa4   : > { %3351 = vmatmul.mubr.msk.bf16.gmra.mrb[4].mxu1 %vm503_vm2, %v4315_v62  ;;  %v2348_v6 = vpack.c.bf16 %v4656_v61, %v4651_v4 }
  0xa5   : > { %3354 = vmatprep.mubr.msk.bf16.mxu1 %vm503_vm2, %v4346_v33 }
  0xa7   : > { %3503 = vmatmul.mubr.msk.bf16.gmra.mrb[20].mxu0 %vm503_vm2, %v4279_v11 }
  0xa8   : > { %3506 = vmatprep.mubr.msk.bf16.mxu0 %vm503_vm2, %v4298_v38 }
  0xac   : > { %3355 = vmatmul.mubr.msk.bf16.gmra.mrb[8].mxu1 %vm503_vm2, %v4362_v23 }
  0xad   : > { %3358 = vmatprep.mubr.msk.bf16.mxu1 %vm503_vm2, %v4407_v17 }
  0xaf   : > { %3507 = vmatmul.mubr.msk.bf16.gmra.mrb[24].mxu0 %vm503_vm2, %v4355_v52 }
  0xb0   : > { %3510 = vmatprep.mubr.msk.bf16.mxu0 %vm503_vm2, %v4537_v46 }
  0xb4   : > { %3359 = vmatmul.mubr.msk.bf16.gmra.mrb[12].mxu1 %vm503_vm2, %v4409_v39 }
  0xb5   : > { %3362 = vmatprep.mubr.msk.bf16.mxu1 %vm503_vm2, %v4448_v7 }
  0xb7   : > { %3511 = vmatmul.mubr.msk.bf16.gmra.mrb[28].mxu0 %vm503_vm2, %v250_v1 }
  0xb8   : > { %3516 = vmatprep.mubr.msk.bf16.mxu0 %vm503_vm2, %v4061_v56  ;;  %v5042_v56 = vld [vmem:[#allocation3_spill] sm:$0xff] }
  0xbc   : > { %3363 = vmatmul.mubr.msk.bf16.gmra.mrb[16].mxu1 %vm503_vm2, %v4457_v12 }
  0xbd   : > { %3366 = vmatprep.mubr.msk.bf16.mxu1 %vm503_vm2, %v4488_v2 }
  0xbf   : > { %3517 = vmatmul.mubr.msk.bf16.vlgmr.msra.gmra.mrb[0].mxu0 %vm503_vm2, %v4095_v21  ;;  %v2135_v21 = vrot.slane %v306_v0, 1 }
  0xc0   : > { %3549 = vmatpush3.bf16.msra.mxu0 %v2355_v20  ;;  %3520 = vmatprep.mubr.msk.bf16.mxu0 %vm503_vm2, %v4104_v28 }
  0xc4   : > { %3367 = vmatmul.mubr.msk.bf16.gmra.mrb[20].mxu1 %vm503_vm2, %v4492_v25 }
  0xc5   : > { %3370 = vmatprep.mubr.msk.bf16.mxu1 %vm503_vm2, %v4518_v22 }
  0xc7   : > { %3521 = vmatmul.mubr.msk.bf16.gmra.mrb[4].mxu0 %vm503_vm2, %v4133_v57 }
  0xc8   : > { %3524 = vmatprep.mubr.msk.bf16.mxu0 %vm503_vm2, %v4167_v10  ;;  %v5041_v10 = vld [vmem:[#allocation2_spill] sm:$0xff] }
  0xcc   : > { %3371 = vmatmul.mubr.msk.bf16.gmra.mrb[24].mxu1 %vm503_vm2, %v4526_v45 }
  0xcd   : > { %3374 = vmatprep.mubr.msk.bf16.mxu1 %vm503_vm2, %v4552_v42 }
  0xcf   : > { %3525 = vmatmul.mubr.msk.bf16.gmra.mrb[8].mxu0 %vm503_vm2, %v4187_v60 }
  0xd0   : > { %3528 = vmatprep.mubr.msk.bf16.mxu0 %vm503_vm2, %v4230_v16 }
  0xd4   : > { %3375 = vmatmul.mubr.msk.bf16.gmra.mrb[28].mxu1 %vm503_vm2, %v4556_v44 }
  0xd5   : > { %3380 = vmatprep.mubr.msk.bf16.mxu1 %vm503_vm2, %v3976_v8  ;;  %v5043_v8 = vld [vmem:[#allocation4_spill] sm:$0xff] }
  0xd7   : > { %3529 = vmatmul.mubr.msk.bf16.gmra.mrb[12].mxu0 %vm503_vm2, %v4265_v43 }
  0xd8   : > { %3532 = vmatprep.mubr.msk.bf16.mxu0 %vm503_vm2, %v4271_v34 }
  0xdc   : > { %3381 = vmatmul.mubr.msk.bf16.vlgmr.msra.gmra.mrb[0].mxu1 %vm503_vm2, %v3986_v14  ;;  %v2132_v14 = vrot.slane %v304_v9, 1 }
  0xdd   : > { %3583 = vmatpush3.bf16.msra.mxu1 %v5041_v10  ;;  %3384 = vmatprep.mubr.msk.bf16.mxu1 %vm503_vm2, %v4009_v27  ;;  %v2133_v27 = vrot.slane %v305_v29, 1 }
  0xdf   : > { %3533 = vmatmul.mubr.msk.bf16.gmra.mrb[16].mxu0 %vm503_vm2, %v5042_v56 }
  0xe0   : > { %3536 = vmatprep.mubr.msk.bf16.mxu0 %vm503_vm2, %v4342_v5 }
  0xe4   : > { %3385 = vmatmul.mubr.msk.bf16.gmra.mrb[4].mxu1 %vm503_vm2, %v4021_v35  ;;  %v2134_v35 = vsel %vm372_vm1, %v2132_v14, %v2133_v27 }
  0xe5   : > { %3388 = vmatprep.mubr.msk.bf16.mxu1 %vm503_vm2, %v4049_v49  ;;  %v2136_v49 = vsel %vm372_vm1, %v2133_v27, %v2135_v21 }
  0xe7   : > { %3537 = vmatmul.mubr.msk.bf16.gmra.mrb[20].mxu0 %vm503_vm2, %v4390_v3 }
  0xe8   : > { %3540 = vmatprep.mubr.msk.bf16.mxu0 %vm503_vm2, %v5043_v8 }
  0xec   : > { %3389 = vmatmul.mubr.msk.bf16.gmra.mrb[8].mxu1 %vm503_vm2, %v4059_v55  ;;  %v2139_v55 = vpack.c.bf16 %v2136_v49, %v2134_v35 }
  0xed   : > { %3392 = vmatprep.mubr.msk.bf16.mxu1 %vm503_vm2, %v4093_v19 }
  0xef   : > { %3541 = vmatmul.mubr.msk.bf16.gmra.mrb[24].mxu0 %vm503_vm2, %v4435_v58 }
  0xf0   : > { %3544 = vmatprep.mubr.msk.bf16.mxu0 %vm503_vm2, %v4566_v53 }
  0xf4   : > { %3393 = vmatmul.mubr.msk.bf16.gmra.mrb[12].mxu1 %vm503_vm2, %v4129_v51 }
  0xf5   : > { %3396 = vmatprep.mubr.msk.bf16.mxu1 %vm503_vm2, %v4154_v30 }
  0xf7   : > { %3545 = vmatmul.mubr.msk.bf16.gmra.mrb[28].mxu0 %vm503_vm2, %v2139_v55 }
  0xf8   : > { %3550 = vmatprep.mubr.msk.bf16.mxu0 %vm503_vm2, %v4267_v37 }
  0xfc   : > { %3397 = vmatmul.mubr.msk.bf16.gmra.mrb[16].mxu1 %vm503_vm2, %v4172_v50 }
  0xfd   : > { %3400 = vmatprep.mubr.msk.bf16.mxu1 %vm503_vm2, %v4210_v31 }
  0xff   : > { %3551 = vmatmul.mubr.msk.bf16.vlgmr.msra.gmra.mrb[0].mxu0 %vm503_vm2, %v4315_v62 }
 0x100   : > { %3554 = vmatprep.mubr.msk.bf16.mxu0 %vm503_vm2, %v4346_v33  ;;  %v4809_v33 = vld [vmem:[%s4962_s2] ss:$0 sm:$0xff] }
 0x104   : > { %3401 = vmatmul.mubr.msk.bf16.gmra.mrb[20].mxu1 %vm503_vm2, %v4228_v15 }
 0x105   : > { %3404 = vmatprep.mubr.msk.bf16.mxu1 %vm503_vm2, %v4279_v11 }
 0x107   : > { %3555 = vmatmul.mubr.msk.bf16.gmra.mrb[4].mxu0 %vm503_vm2, %v4362_v23 }
 0x108   : > { %3558 = vmatprep.mubr.msk.bf16.mxu0 %vm503_vm2, %v4407_v17 }
 0x10c   : > { %3405 = vmatmul.mubr.msk.bf16.gmra.mrb[24].mxu1 %vm503_vm2, %v4298_v38 }
 0x10d   : > { %3408 = vmatprep.mubr.msk.bf16.mxu1 %vm503_vm2, %v4355_v52 }
 0x10f   : > { %3559 = vmatmul.mubr.msk.bf16.gmra.mrb[8].mxu0 %vm503_vm2, %v4409_v39 }
 0x110   : > { %3562 = vmatprep.mubr.msk.bf16.mxu0 %vm503_vm2, %v4448_v7 }
 0x114   : > { %3409 = vmatmul.mubr.msk.bf16.gmra.mrb[28].mxu1 %vm503_vm2, %v4537_v46 }
 0x115   : > { %3430 = vmatprep.mubr.msk.bf16.mxu1 %vm503_vm2, %v4265_v43 }
 0x117   : > { %3563 = vmatmul.mubr.msk.bf16.gmra.mrb[12].mxu0 %vm503_vm2, %v4457_v12 }
 0x118   : > { %3566 = vmatprep.mubr.msk.bf16.mxu0 %vm503_vm2, %v4488_v2 }
 0x11c   : > { %3431 = vmatmul.mubr.msk.bf16.vlgmr.msra.gmra.mrb[16].mxu1 %vm503_vm2, %v4271_v34 }
 0x11d   : > { %3434 = vmatprep.mubr.msk.bf16.mxu1 %vm503_vm2, %v5042_v56 }
 0x11f   : > { %3567 = vmatmul.mubr.msk.bf16.gmra.mrb[16].mxu0 %vm503_vm2, %v4492_v25 }
 0x120   : > { %3570 = vmatprep.mubr.msk.bf16.mxu0 %vm503_vm2, %v4518_v22 }
 0x124   : > { %3435 = vmatmul.mubr.msk.bf16.gmra.mrb[20].mxu1 %vm503_vm2, %v4342_v5 }
 0x125   : > { %3438 = vmatprep.mubr.msk.bf16.mxu1 %vm503_vm2, %v4390_v3  ;;  %v4814_v3 = vld [vmem:[%s4963_s3] ss:$0 sm:$0xff] }
 0x127   : > { %3571 = vmatmul.mubr.msk.bf16.gmra.mrb[20].mxu0 %vm503_vm2, %v4526_v45 }
 0x128   : > { %3574 = vmatprep.mubr.msk.bf16.mxu0 %vm503_vm2, %v4552_v42 }
 0x12c   : > { %3439 = vmatmul.mubr.msk.bf16.gmra.mrb[24].mxu1 %vm503_vm2, %v5043_v8 }
 0x12d   : > { %3442 = vmatprep.mubr.msk.bf16.mxu1 %vm503_vm2, %v4435_v58 }
 0x12f   : > { %3575 = vmatmul.mubr.msk.bf16.gmra.mrb[24].mxu0 %vm503_vm2, %v4556_v44 }
 0x130   : > { %3578 = vmatprep.mubr.msk.bf16.mxu0 %vm503_vm2, %v4570_v18 }
 0x134   : > { %3443 = vmatmul.mubr.msk.bf16.gmra.mrb[28].mxu1 %vm503_vm2, %v4566_v53 }
 0x137   : > { %3579 = vmatmul.mubr.msk.bf16.gmra.mrb[28].mxu0 %vm503_vm2, %v2348_v6 }
 0x1af   : > { %v3382_v19 = vpop.f32.mrb[0].mxu1 }
 0x1b0   : > { %v1347_v28 = vpop.f32.mrb[1].mxu1 }
 0x1b1   : > { %v3383_v50 = vpop.f32.mrb[2].mxu1 }
 0x1b2   : > { %v1350_v51 = vpop.f32.mrb[3].mxu1 }
 0x1b7   : > { %v3386_v57 = vpop.f32.mrb[4].mxu1 }
 0x1b8   : > { %v1363_v30 = vpop.f32.mrb[5].mxu1 }
 0x1b9   : > { %v3387_v16 = vpop.f32.mrb[6].mxu1 }
 0x1ba   : > { %v1366_v60 = vpop.f32.mrb[7].mxu1 }
 0x1bf   : > { %v3390_v31 = vpop.f32.mrb[8].mxu1 }
 0x1c0   : > { %v4792_v15 = vpop.f32.mrb[9].mxu1 }
 0x1c1   : > { %v4794_v11 = vpop.f32.mrb[10].mxu1 }
 0x1c2   : > { %v4796_v43 = vpop.f32.mrb[11].mxu1 }
 0x1c7   : > { %v4798_v37 = vpop.f32.mrb[12].mxu1 }
 0x1c8   : > { %v4800_v34 = vpop.f32.mrb[13].mxu1 }
 0x1c9   : > { %v4802_v38 = vpop.f32.mrb[14].mxu1 }
 0x1ca   : > { %v4804_v62 = vpop.f32.mrb[15].mxu1 }
 0x1d2   : > { %v3552_v5 = vpop.f32.mrb[0].mxu0 }
 0x1d3   : > { %v3584_v52 = vadd.f32 %v3552_v5, %v3382_v19  ;;  %v2391_v23 = vpop.f32.mrb[1].mxu0 }
 0x1d4   : > { %v3585_v17 = vadd.f32 %v2391_v23, %v1347_v28  ;;  %v3553_v39 = vpop.f32.mrb[2].mxu0 }
 0x1d5   : > { %v2559_v58 = vmul.f32 %v3584_v52, %v4809_v33  ;;  %v3586_v7 = vadd.f32 %v3553_v39, %v3383_v50  ;;  %v2394_v12 = vpop.f32.mrb[3].mxu0 }
 0x1d6   : > { %v2557_v2 = vmul.f32 %v3585_v17, %v4809_v33  ;;  %v3587_v25 = vadd.f32 %v2394_v12, %v1350_v51 }
 0x1d7   : > { %v2598_v22 = vadd.f32 %v4814_v3, %v2559_v58  ;;  %v2560_v45 = vmul.f32 %v3586_v7, %v4809_v33 }
 0x1d8   : > { %v2596_v46 = vadd.f32 %v4814_v3, %v2557_v2  ;;  %v2558_v42 = vmul.f32 %v3587_v25, %v4809_v33 }
 0x1d9   : > { %v2630_v44 = vmax.f32 %v2598_v22, 0.0  ;;  %v2599_v36 = vadd.f32 %v4814_v3, %v2560_v45 }
 0x1da   : > { %v2628_v63 = vmax.f32 %v2596_v46, 0.0  ;;  %v2597_v13 = vadd.f32 %v4814_v3, %v2558_v42  ;;  %v3556_v40 = vpop.f32.mrb[4].mxu0 }
 0x1db   : > { %v3093_v48 = vpack.c.bf16 %v2630_v44, %v2630_v44  ;;  %v2631_v53 = vmax.f32 %v2599_v36, 0.0  ;;  %v3588_v18 = vadd.f32 %v3556_v40, %v3386_v57  ;;  %v2407_v41 = vpop.f32.mrb[5].mxu0 }
 0x1dc   : > { %v3091_v59 = vpack.c.bf16 %v2628_v63, %v2628_v63  ;;  %v2629_v47 = vmax.f32 %v2597_v13, 0.0  ;;  %v3589_v1 = vadd.f32 %v2407_v41, %v1363_v30  ;;  %v3557_v9 = vpop.f32.mrb[6].mxu0 }
 0x1dd   : > { %2791 = vst.msk [vmem:[%s4827_s22 + $0x8] sm:$0xf] %vm2788_vm4, %v3093_v48  ;;  %v3094_v29 = vpack.c.bf16 %v2631_v53, %v2631_v53  ;;  %v2563_v54 = vmul.f32 %v3588_v18, %v4809_v33  ;;  %v3590_v24 = vadd.f32 %v3557_v9, %v3387_v16  ;;  %v2410_v32 = vpop.f32.mrb[7].mxu0 }
 0x1de   : > { %2789 = vst.msk [vmem:[%s4827_s22] sm:$0xf] %vm2788_vm4, %v3091_v59  ;;  %v3092_v0 = vpack.c.bf16 %v2629_v47, %v2629_v47  ;;  %v2561_v26 = vmul.f32 %v3589_v1, %v4809_v33  ;;  %v3591_v4 = vadd.f32 %v2410_v32, %v1366_v60 }
 0x1df   : > { %2792 = vst.msk [vmem:[%s4827_s22 + $0xc] sm:$0xf] %vm2788_vm4, %v3094_v29  ;;  %v2602_v61 = vadd.f32 %v4814_v3, %v2563_v54  ;;  %v2564_v6 = vmul.f32 %v3590_v24, %v4809_v33 }
 0x1e0   : > { %2790 = vst.msk [vmem:[%s4827_s22 + $0x4] sm:$0xf] %vm2788_vm4, %v3092_v0  ;;  %v2600_v20 = vadd.f32 %v4814_v3, %v2561_v26  ;;  %v2562_v10 = vmul.f32 %v3591_v4, %v4809_v33 }
 0x1e1   : > { %v2634_v56 = vmax.f32 %v2602_v61, 0.0  ;;  %v2603_v8 = vadd.f32 %v4814_v3, %v2564_v6 }
 0x1e2   : > { %v2632_v14 = vmax.f32 %v2600_v20, 0.0  ;;  %v2601_v27 = vadd.f32 %v4814_v3, %v2562_v10  ;;  %v3560_v21 = vpop.f32.mrb[8].mxu0 }
 0x1e3   : > { %v3097_v35 = vpack.c.bf16 %v2634_v56, %v2634_v56  ;;  %v2635_v49 = vmax.f32 %v2603_v8, 0.0  ;;  %v3592_v55 = vadd.f32 %v3560_v21, %v3390_v31  ;;  %v2423_v19 = vpop.f32.mrb[9].mxu0 }
 0x1e4   : > { %v3095_v28 = vpack.c.bf16 %v2632_v14, %v2632_v14  ;;  %v2633_v50 = vmax.f32 %v2601_v27, 0.0  ;;  %v3593_v51 = vadd.f32 %v2423_v19, %v4792_v15  ;;  %v3561_v57 = vpop.f32.mrb[10].mxu0 }
 0x1e5   : > { %2795 = vst.msk [vmem:[%s4827_s22 + $0x18] sm:$0xf] %vm2788_vm4, %v3097_v35  ;;  %v3098_v30 = vpack.c.bf16 %v2635_v49, %v2635_v49  ;;  %v2567_v16 = vmul.f32 %v3592_v55, %v4809_v33  ;;  %v3594_v60 = vadd.f32 %v3561_v57, %v4794_v11  ;;  %v2426_v5 = vpop.f32.mrb[11].mxu0 }
 0x1e6   : > { %2793 = vst.msk [vmem:[%s4827_s22 + $0x10] sm:$0xf] %vm2788_vm4, %v3095_v28  ;;  %v3096_v52 = vpack.c.bf16 %v2633_v50, %v2633_v50  ;;  %v2565_v31 = vmul.f32 %v3593_v51, %v4809_v33  ;;  %v3595_v23 = vadd.f32 %v2426_v5, %v4796_v43 }
 0x1e7   : > { %2796 = vst.msk [vmem:[%s4827_s22 + $0x1c] sm:$0xf] %vm2788_vm4, %v3098_v30  ;;  %v2606_v15 = vadd.f32 %v4814_v3, %v2567_v16  ;;  %v2568_v17 = vmul.f32 %v3594_v60, %v4809_v33 }
 0x1e8   : > { %2794 = vst.msk [vmem:[%s4827_s22 + $0x14] sm:$0xf] %vm2788_vm4, %v3096_v52  ;;  %v2604_v39 = vadd.f32 %v4814_v3, %v2565_v31  ;;  %v2566_v11 = vmul.f32 %v3595_v23, %v4809_v33 }
 0x1e9   : > { %v2638_v58 = vmax.f32 %v2606_v15, 0.0  ;;  %v2607_v7 = vadd.f32 %v4814_v3, %v2568_v17 }
 0x1ea   : > { %v2636_v12 = vmax.f32 %v2604_v39, 0.0  ;;  %v2605_v43 = vadd.f32 %v4814_v3, %v2566_v11  ;;  %v3564_v2 = vpop.f32.mrb[12].mxu0 }
 0x1eb   : > { %v3101_v25 = vpack.c.bf16 %v2638_v58, %v2638_v58  ;;  %v2639_v22 = vmax.f32 %v2607_v7, 0.0  ;;  %v3596_v45 = vadd.f32 %v3564_v2, %v4798_v37  ;;  %v2439_v46 = vpop.f32.mrb[13].mxu0 }
 0x1ec   : > { %v3099_v42 = vpack.c.bf16 %v2636_v12, %v2636_v12  ;;  %v2637_v44 = vmax.f32 %v2605_v43, 0.0  ;;  %v3597_v36 = vadd.f32 %v2439_v46, %v4800_v34  ;;  %v3565_v63 = vpop.f32.mrb[14].mxu0 }
 0x1ed   : > { %2799 = vst.msk [vmem:[%s4827_s22 + $0x28] sm:$0xf] %vm2788_vm4, %v3101_v25  ;;  %v3102_v13 = vpack.c.bf16 %v2639_v22, %v2639_v22  ;;  %v2571_v40 = vmul.f32 %v3596_v45, %v4809_v33  ;;  %v3598_v48 = vadd.f32 %v3565_v63, %v4802_v38  ;;  %v2442_v53 = vpop.f32.mrb[15].mxu0 }
 0x1ee   : > { %2797 = vst.msk [vmem:[%s4827_s22 + $0x20] sm:$0xf] %vm2788_vm4, %v3099_v42  ;;  %v3100_v18 = vpack.c.bf16 %v2637_v44, %v2637_v44  ;;  %v2569_v37 = vmul.f32 %v3597_v36, %v4809_v33  ;;  %v3599_v41 = vadd.f32 %v2442_v53, %v4804_v62 }
 0x1ef   : > { %v3432_v59 = vpop.f32.mrb[16].mxu1  ;;  %2800 = vst.msk [vmem:[%s4827_s22 + $0x2c] sm:$0xf] %vm2788_vm4, %v3102_v13  ;;  %v2610_v34 = vadd.f32 %v4814_v3, %v2571_v40  ;;  %v2572_v47 = vmul.f32 %v3598_v48, %v4809_v33 }
 0x1f0   : > { %v1623_v1 = vpop.f32.mrb[17].mxu1  ;;  %2798 = vst.msk [vmem:[%s4827_s22 + $0x24] sm:$0xf] %vm2788_vm4, %v3100_v18  ;;  %v2608_v38 = vadd.f32 %v4814_v3, %v2569_v37  ;;  %v2570_v9 = vmul.f32 %v3599_v41, %v4809_v33 }
 0x1f1   : > { %v3433_v29 = vpop.f32.mrb[18].mxu1  ;;  %v2642_v54 = vmax.f32 %v2610_v34, 0.0  ;;  %v2611_v24 = vadd.f32 %v4814_v3, %v2572_v47 }
 0x1f2   : > { %v1626_v62 = vpop.f32.mrb[19].mxu1  ;;  %v2640_v32 = vmax.f32 %v2608_v38, 0.0  ;;  %v2609_v0 = vadd.f32 %v4814_v3, %v2570_v9  ;;  %v3568_v26 = vpop.f32.mrb[16].mxu0 }
 0x1f3   : > { %v3105_v4 = vpack.c.bf16 %v2642_v54, %v2642_v54  ;;  %v2643_v61 = vmax.f32 %v2611_v24, 0.0  ;;  %v3600_v6 = vadd.f32 %v3568_v26, %v3432_v59  ;;  %v2455_v20 = vpop.f32.mrb[17].mxu0 }
 0x1f4   : > { %v3103_v10 = vpack.c.bf16 %v2640_v32, %v2640_v32  ;;  %v2641_v56 = vmax.f32 %v2609_v0, 0.0  ;;  %v3601_v8 = vadd.f32 %v2455_v20, %v1623_v1  ;;  %v3569_v14 = vpop.f32.mrb[18].mxu0 }
 0x1f5   : > { %2803 = vst.msk [vmem:[%s4827_s22 + $0x38] sm:$0xf] %vm2788_vm4, %v3105_v4  ;;  %v3106_v27 = vpack.c.bf16 %v2643_v61, %v2643_v61  ;;  %v2575_v21 = vmul.f32 %v3600_v6, %v4809_v33  ;;  %v3602_v35 = vadd.f32 %v3569_v14, %v3433_v29  ;;  %v2458_v49 = vpop.f32.mrb[19].mxu0 }
 0x1f6   : > { %2801 = vst.msk [vmem:[%s4827_s22 + $0x30] sm:$0xf] %vm2788_vm4, %v3103_v10  ;;  %v3104_v55 = vpack.c.bf16 %v2641_v56, %v2641_v56  ;;  %v2573_v19 = vmul.f32 %v3601_v8, %v4809_v33  ;;  %v3603_v28 = vadd.f32 %v2458_v49, %v1626_v62 }
 0x1f7   : > { %v3436_v50 = vpop.f32.mrb[20].mxu1  ;;  %2804 = vst.msk [vmem:[%s4827_s22 + $0x3c] sm:$0xf] %vm2788_vm4, %v3106_v27  ;;  %v2614_v51 = vadd.f32 %v4814_v3, %v2575_v21  ;;  %v2576_v57 = vmul.f32 %v3602_v35, %v4809_v33 }
 0x1f8   : > { %v1639_v30 = vpop.f32.mrb[21].mxu1  ;;  %2802 = vst.msk [vmem:[%s4827_s22 + $0x34] sm:$0xf] %vm2788_vm4, %v3104_v55  ;;  %v2612_v16 = vadd.f32 %v4814_v3, %v2573_v19  ;;  %v2574_v60 = vmul.f32 %v3603_v28, %v4809_v33 }
 0x1f9   : > { %v3437_v5 = vpop.f32.mrb[22].mxu1  ;;  %v2646_v52 = vmax.f32 %v2614_v51, 0.0  ;;  %v2615_v31 = vadd.f32 %v4814_v3, %v2576_v57 }
 0x1fa   : > { %v1642_v23 = vpop.f32.mrb[23].mxu1  ;;  %v2644_v15 = vmax.f32 %v2612_v16, 0.0  ;;  %v2613_v17 = vadd.f32 %v4814_v3, %v2574_v60  ;;  %v3572_v39 = vpop.f32.mrb[20].mxu0 }
 0x1fb   : > { %v3109_v11 = vpack.c.bf16 %v2646_v52, %v2646_v52  ;;  %v2647_v58 = vmax.f32 %v2615_v31, 0.0  ;;  %v3604_v7 = vadd.f32 %v3572_v39, %v3436_v50  ;;  %v2471_v12 = vpop.f32.mrb[21].mxu0 }
 0x1fc   : > { %v3107_v43 = vpack.c.bf16 %v2644_v15, %v2644_v15  ;;  %v2645_v2 = vmax.f32 %v2613_v17, 0.0  ;;  %v3605_v25 = vadd.f32 %v2471_v12, %v1639_v30  ;;  %v3573_v22 = vpop.f32.mrb[22].mxu0 }
 0x1fd   : > { %2807 = vst.msk [vmem:[%s4827_s22 + $0x48] sm:$0xf] %vm2788_vm4, %v3109_v11  ;;  %v3110_v45 = vpack.c.bf16 %v2647_v58, %v2647_v58  ;;  %v2579_v46 = vmul.f32 %v3604_v7, %v4809_v33  ;;  %v3606_v42 = vadd.f32 %v3573_v22, %v3437_v5  ;;  %v2474_v44 = vpop.f32.mrb[23].mxu0 }
 0x1fe   : > { %2805 = vst.msk [vmem:[%s4827_s22 + $0x40] sm:$0xf] %vm2788_vm4, %v3107_v43  ;;  %v3108_v36 = vpack.c.bf16 %v2645_v2, %v2645_v2  ;;  %v2577_v63 = vmul.f32 %v3605_v25, %v4809_v33  ;;  %v3607_v13 = vadd.f32 %v2474_v44, %v1642_v23 }
 0x1ff   : > { %v3440_v40 = vpop.f32.mrb[24].mxu1  ;;  %2808 = vst.msk [vmem:[%s4827_s22 + $0x4c] sm:$0xf] %vm2788_vm4, %v3110_v45  ;;  %v2618_v48 = vadd.f32 %v4814_v3, %v2579_v46  ;;  %v2580_v53 = vmul.f32 %v3606_v42, %v4809_v33 }
 0x200   : > { %v1655_v18 = vpop.f32.mrb[25].mxu1  ;;  %2806 = vst.msk [vmem:[%s4827_s22 + $0x44] sm:$0xf] %vm2788_vm4, %v3108_v36  ;;  %v2616_v37 = vadd.f32 %v4814_v3, %v2577_v63  ;;  %v2578_v41 = vmul.f32 %v3607_v13, %v4809_v33 }
 0x201   : > { %v3441_v59 = vpop.f32.mrb[26].mxu1  ;;  %v2650_v34 = vmax.f32 %v2618_v48, 0.0  ;;  %v2619_v47 = vadd.f32 %v4814_v3, %v2580_v53 }
 0x202   : > { %v1658_v1 = vpop.f32.mrb[27].mxu1  ;;  %v2648_v38 = vmax.f32 %v2616_v37, 0.0  ;;  %v2617_v9 = vadd.f32 %v4814_v3, %v2578_v41  ;;  %v3576_v29 = vpop.f32.mrb[24].mxu0 }
 0x203   : > { %v3113_v54 = vpack.c.bf16 %v2650_v34, %v2650_v34  ;;  %v2651_v24 = vmax.f32 %v2619_v47, 0.0  ;;  %v3608_v62 = vadd.f32 %v3576_v29, %v3440_v40  ;;  %v2487_v32 = vpop.f32.mrb[25].mxu0 }
 0x204   : > { %v3111_v0 = vpack.c.bf16 %v2648_v38, %v2648_v38  ;;  %v2649_v26 = vmax.f32 %v2617_v9, 0.0  ;;  %v3609_v4 = vadd.f32 %v2487_v32, %v1655_v18  ;;  %v3577_v61 = vpop.f32.mrb[26].mxu0 }
 0x205   : > { %2811 = vst.msk [vmem:[%s4827_s22 + $0x58] sm:$0xf] %vm2788_vm4, %v3113_v54  ;;  %v3114_v6 = vpack.c.bf16 %v2651_v24, %v2651_v24  ;;  %v2583_v20 = vmul.f32 %v3608_v62, %v4809_v33  ;;  %v3610_v10 = vadd.f32 %v3577_v61, %v3441_v59  ;;  %v2490_v56 = vpop.f32.mrb[27].mxu0 }
 0x206   : > { %2809 = vst.msk [vmem:[%s4827_s22 + $0x50] sm:$0xf] %vm2788_vm4, %v3111_v0  ;;  %v3112_v8 = vpack.c.bf16 %v2649_v26, %v2649_v26  ;;  %v2581_v14 = vmul.f32 %v3609_v4, %v4809_v33  ;;  %v3611_v27 = vadd.f32 %v2490_v56, %v1658_v1 }
 0x207   : > { %v3444_v21 = vpop.f32.mrb[28].mxu1  ;;  %2812 = vst.msk [vmem:[%s4827_s22 + $0x5c] sm:$0xf] %vm2788_vm4, %v3114_v6  ;;  %v2622_v35 = vadd.f32 %v4814_v3, %v2583_v20  ;;  %v2584_v49 = vmul.f32 %v3610_v10, %v4809_v33 }
 0x208   : > { %v1671_v55 = vpop.f32.mrb[29].mxu1  ;;  %2810 = vst.msk [vmem:[%s4827_s22 + $0x54] sm:$0xf] %vm2788_vm4, %v3112_v8  ;;  %v2620_v19 = vadd.f32 %v4814_v3, %v2581_v14  ;;  %v2582_v28 = vmul.f32 %v3611_v27, %v4809_v33 }
 0x209   : > { %v3445_v50 = vpop.f32.mrb[30].mxu1  ;;  %v2654_v51 = vmax.f32 %v2622_v35, 0.0  ;;  %v2623_v57 = vadd.f32 %v4814_v3, %v2584_v49 }
 0x20a   : > { %v1674_v30 = vpop.f32.mrb[31].mxu1  ;;  %v2652_v16 = vmax.f32 %v2620_v19, 0.0  ;;  %v2621_v60 = vadd.f32 %v4814_v3, %v2582_v28  ;;  %v3580_v5 = vpop.f32.mrb[28].mxu0 }
 0x20b   : > { %v3117_v52 = vpack.c.bf16 %v2654_v51, %v2654_v51  ;;  %v2655_v31 = vmax.f32 %v2623_v57, 0.0  ;;  %v3612_v23 = vadd.f32 %v3580_v5, %v3444_v21  ;;  %v2503_v15 = vpop.f32.mrb[29].mxu0 }
 0x20c   : > { %v3115_v17 = vpack.c.bf16 %v2652_v16, %v2652_v16  ;;  %v2653_v39 = vmax.f32 %v2621_v60, 0.0  ;;  %v3613_v11 = vadd.f32 %v2503_v15, %v1671_v55  ;;  %v3581_v58 = vpop.f32.mrb[30].mxu0 }
 0x20d   : > { %2815 = vst.msk [vmem:[%s4827_s22 + $0x68] sm:$0xf] %vm2788_vm4, %v3117_v52  ;;  %v3118_v7 = vpack.c.bf16 %v2655_v31, %v2655_v31  ;;  %v2587_v12 = vmul.f32 %v3612_v23, %v4809_v33  ;;  %v3614_v43 = vadd.f32 %v3581_v58, %v3445_v50  ;;  %v2506_v2 = vpop.f32.mrb[31].mxu0 }
 0x20e   : > { %2813 = vst.msk [vmem:[%s4827_s22 + $0x60] sm:$0xf] %vm2788_vm4, %v3115_v17  ;;  %v3116_v25 = vpack.c.bf16 %v2653_v39, %v2653_v39  ;;  %v2585_v22 = vmul.f32 %v3613_v11, %v4809_v33  ;;  %v3615_v45 = vadd.f32 %v2506_v2, %v1674_v30 }
 0x20f   : > { %2816 = vst.msk [vmem:[%s4827_s22 + $0x6c] sm:$0xf] %vm2788_vm4, %v3118_v7  ;;  %v2626_v46 = vadd.f32 %v4814_v3, %v2587_v12  ;;  %v2588_v42 = vmul.f32 %v3614_v43, %v4809_v33 }
 0x210   : > { %2814 = vst.msk [vmem:[%s4827_s22 + $0x64] sm:$0xf] %vm2788_vm4, %v3116_v25  ;;  %v2624_v44 = vadd.f32 %v4814_v3, %v2585_v22  ;;  %v2586_v36 = vmul.f32 %v3615_v45, %v4809_v33 }
 0x211   : > { %v2658_v63 = vmax.f32 %v2626_v46, 0.0  ;;  %v2627_v13 = vadd.f32 %v4814_v3, %v2588_v42 }
 0x212   : > { %v2656_v40 = vmax.f32 %v2624_v44, 0.0  ;;  %v2625_v48 = vadd.f32 %v4814_v3, %v2586_v36 }
 0x213   : > { %v3121_v53 = vpack.c.bf16 %v2658_v63, %v2658_v63  ;;  %v2659_v18 = vmax.f32 %v2627_v13, 0.0 }
 0x214   : > { %v3119_v37 = vpack.c.bf16 %v2656_v40, %v2656_v40  ;;  %v2657_v41 = vmax.f32 %v2625_v48, 0.0 }
 0x215   : > { %2819 = vst.msk [vmem:[%s4827_s22 + $0x78] sm:$0xf] %vm2788_vm4, %v3121_v53  ;;  %v3122_v59 = vpack.c.bf16 %v2659_v18, %v2659_v18 }
 0x216   : > { %2817 = vst.msk [vmem:[%s4827_s22 + $0x70] sm:$0xf] %vm2788_vm4, %v3119_v37  ;;  %v3120_v34 = vpack.c.bf16 %v2657_v41, %v2657_v41 }
 0x217   : > { %2820 = vst.msk [vmem:[%s4827_s22 + $0x7c] sm:$0xf] %vm2788_vm4, %v3122_v59 }
 0x218   : > { %2818 = vst.msk [vmem:[%s4827_s22 + $0x74] sm:$0xf] %vm2788_vm4, %v3120_v34 }
 0x219 PF: > { %s14_s15 = sadd.s32 1, %s3901_s15  }
 0x21a   : > { %p11_p4 = scmp.ge.s32.totalorder %s14_s15, 4  }
 0x21c   :  { %13 = sbr.rel (!%p11_p4) target bundleno = 1 (0x1), region = 74 }

// kernel: aligned_bottleneck_pallas.5
= control target key start
LH: loop header
LB: loop body
LE: loop exit
PB: predicated region body
PF: predicated region fallthrough
CT: control target
= control target key end

     0   :  { %vm261_vm0 = vcmask 130048   ;;  %vm1109_vm1 = vcmask 27648   ;;  %vm1933_vm2 = vcmask 11264   ;;  %s3619_s1 = inlined_call_operand.vmem [shape: bf16[16,4], index: 1, kind: input, shape index: {}]   ;;  %s3620_s4 = inlined_call_operand.vmem [shape: bf16[16,2], index: 4, kind: input, shape index: {}]   ;;  %s3621_s0 = inlined_call_operand.vmem [shape: bf16[512,16], index: 0, kind: input, shape index: {}]   ;;  %s3622_s2 = inlined_call_operand.vmem [shape: f32[1,4], index: 2, kind: input, shape index: {}]   ;;  %s3623_s5 = inlined_call_operand.vmem [shape: f32[1,2], index: 5, kind: input, shape index: {}]   ;;  %s3624_s3 = inlined_call_operand.vmem [shape: f32[1,4], index: 3, kind: input, shape index: {}]   ;;  %s3625_s6 = inlined_call_operand.vmem [shape: f32[1,2], index: 6, kind: input, shape index: {}]   ;;  %s3626_s7 = inlined_call_operand.vmem [shape: bf16[512,4], index: 7, kind: output, shape index: {0}]   ;;  %s3627_s8 = inlined_call_operand.vmem [shape: bf16[512,2], index: 8, kind: output, shape index: {1}]  }
   0x1   :  { %v2562_v0 = vld [vmem:[%s3619_s1] sm:$0xff]   ;;  %v2565_v3 = vld [vmem:[%s3621_s0 + $0x8] sm:$0xff]   ;;  %v2566_v4 = vld [vmem:[%s3621_s0 + $0x10] sm:$0xff]  }
   0x2   :  { %v2563_v1 = vld [vmem:[%s3620_s4] sm:$0xff]   ;;  %2430 = vmatprep.subr.bf16.mxu0 %v2562_v0  ;;  %v2567_v5 = vld [vmem:[%s3621_s0 + $0x18] sm:$0xff]   ;;  %v2569_v7 = vld [vmem:[%s3621_s0 + $0x28] sm:$0xff]  }
   0x3   :  { %v2564_v2 = vld [vmem:[%s3621_s0] sm:$0xff]   ;;  %2496 = vmatprep.subr.bf16.mxu1 %v2563_v1  ;;  %2431 = vmatpush3.bf16.msra.mxu0 %v2562_v0  ;;  %v2570_v8 = vld [vmem:[%s3621_s0 + $0x30] sm:$0xff]   ;;  %v2571_v9 = vld [vmem:[%s3621_s0 + $0x38] sm:$0xff]  }
   0x4   :  { %2497 = vmatpush3.bf16.msra.mxu1 %v2563_v1  ;;  %2432 = vmatprep.mubr.msk.bf16.mxu0 %vm261_vm0, %v2564_v2  ;;  %v2568_v6 = vld [vmem:[%s3621_s0 + $0x20] sm:$0xff]   ;;  %v2573_v11 = vld [vmem:[%s3621_s0 + $0x48] sm:$0xff]   ;;  %v2574_v12 = vld [vmem:[%s3621_s0 + $0x50] sm:$0xff]  }
   0x5   :  { %2498 = vmatprep.mubr.msk.bf16.mxu1 %vm261_vm0, %v2564_v2  ;;  %v2572_v10 = vld [vmem:[%s3621_s0 + $0x40] sm:$0xff]   ;;  %v2575_v13 = vld [vmem:[%s3621_s0 + $0x58] sm:$0xff]   ;;  %v2577_v15 = vld [vmem:[%s3621_s0 + $0x68] sm:$0xff]  }
   0x6   :  { %2433 = vmatmul.mubr.msk.bf16.vlgmr.msra.gmra.mrb[0].mxu0 %vm261_vm0, %v2565_v3  ;;  %v2576_v14 = vld [vmem:[%s3621_s0 + $0x60] sm:$0xff]   ;;  %v2578_v16 = vld [vmem:[%s3621_s0 + $0x70] sm:$0xff]   ;;  %v2579_v17 = vld [vmem:[%s3621_s0 + $0x78] sm:$0xff]  }
   0x7   :  { %2499 = vmatmul.mubr.msk.bf16.vlgmr.msra.gmra.mrb[0].mxu1 %vm261_vm0, %v2565_v3  ;;  %2436 = vmatprep.mubr.msk.bf16.mxu0 %vm261_vm0, %v2566_v4  ;;  %v2580_v18 = vld [vmem:[%s3621_s0 + $0x80] sm:$0xff]   ;;  %v2581_v19 = vld [vmem:[%s3621_s0 + $0x88] sm:$0xff]   ;;  %v2582_v20 = vld [vmem:[%s3621_s0 + $0x90] sm:$0xff]  }
   0x8   :  { %2502 = vmatprep.mubr.msk.bf16.mxu1 %vm261_vm0, %v2566_v4  ;;  %v2583_v21 = vld [vmem:[%s3621_s0 + $0x98] sm:$0xff]   ;;  %v2584_v22 = vld [vmem:[%s3621_s0 + $0xa0] sm:$0xff]   ;;  %v2585_v23 = vld [vmem:[%s3621_s0 + $0xa8] sm:$0xff]  }
   0x9   :  { %v2586_v24 = vld [vmem:[%s3621_s0 + $0xb0] sm:$0xff]   ;;  %v2587_v25 = vld [vmem:[%s3621_s0 + $0xb8] sm:$0xff]   ;;  %v2588_v26 = vld [vmem:[%s3621_s0 + $0xc0] sm:$0xff]  }
   0xa   :  { %v2589_v27 = vld [vmem:[%s3621_s0 + $0xc8] sm:$0xff]   ;;  %v2590_v28 = vld [vmem:[%s3621_s0 + $0xd0] sm:$0xff]   ;;  %v2591_v29 = vld [vmem:[%s3621_s0 + $0xd8] sm:$0xff]  }
   0xb   :  { %v2592_v30 = vld [vmem:[%s3621_s0 + $0xe0] sm:$0xff]   ;;  %v2593_v31 = vld [vmem:[%s3621_s0 + $0xe8] sm:$0xff]   ;;  %v2594_v32 = vld [vmem:[%s3621_s0 + $0xf0] sm:$0xff]  }
   0xc   :  { %v2595_v33 = vld [vmem:[%s3621_s0 + $0xf8] sm:$0xff]   ;;  %v2814_v34 = vld [vmem:[%s3622_s2] ss:$0 sm:$0xff] }
   0xd   :  { %v2819_v35 = vld [vmem:[%s3623_s5] ss:$0 sm:$0xff] }
   0xe   :  { %2437 = vmatmul.mubr.msk.bf16.gmra.mrb[4].mxu0 %vm261_vm0, %v2567_v5  ;;  %v2824_v37 = vld [vmem:[%s3624_s3] ss:$0 sm:$0xff] }
   0xf   :  { %2503 = vmatmul.mubr.msk.bf16.gmra.mrb[4].mxu1 %vm261_vm0, %v2567_v5  ;;  %2440 = vmatprep.mubr.msk.bf16.mxu0 %vm261_vm0, %v2568_v6  ;;  %v2830_v40 = vld [vmem:[%s3625_s6] ss:$0 sm:$0xff] }
  0x10   :  { %2506 = vmatprep.mubr.msk.bf16.mxu1 %vm261_vm0, %v2568_v6 }
  0x16   :  { %2441 = vmatmul.mubr.msk.bf16.gmra.mrb[8].mxu0 %vm261_vm0, %v2569_v7 }
  0x17   :  { %2507 = vmatmul.mubr.msk.bf16.gmra.mrb[8].mxu1 %vm261_vm0, %v2569_v7  ;;  %2444 = vmatprep.mubr.msk.bf16.mxu0 %vm261_vm0, %v2570_v8 }
  0x18   :  { %2510 = vmatprep.mubr.msk.bf16.mxu1 %vm261_vm0, %v2570_v8 }
  0x1e   :  { %2445 = vmatmul.mubr.msk.bf16.gmra.mrb[12].mxu0 %vm261_vm0, %v2571_v9 }
  0x1f   :  { %2511 = vmatmul.mubr.msk.bf16.gmra.mrb[12].mxu1 %vm261_vm0, %v2571_v9  ;;  %2448 = vmatprep.mubr.msk.bf16.mxu0 %vm261_vm0, %v2572_v10 }
  0x20   :  { %2514 = vmatprep.mubr.msk.bf16.mxu1 %vm261_vm0, %v2572_v10 }
  0x26   :  { %2449 = vmatmul.mubr.msk.bf16.gmra.mrb[16].mxu0 %vm261_vm0, %v2573_v11 }
  0x27   :  { %2515 = vmatmul.mubr.msk.bf16.gmra.mrb[16].mxu1 %vm261_vm0, %v2573_v11  ;;  %2452 = vmatprep.mubr.msk.bf16.mxu0 %vm261_vm0, %v2574_v12 }
  0x28   :  { %2518 = vmatprep.mubr.msk.bf16.mxu1 %vm261_vm0, %v2574_v12 }
  0x2e   :  { %2453 = vmatmul.mubr.msk.bf16.gmra.mrb[20].mxu0 %vm261_vm0, %v2575_v13 }
  0x2f   :  { %2519 = vmatmul.mubr.msk.bf16.gmra.mrb[20].mxu1 %vm261_vm0, %v2575_v13  ;;  %2456 = vmatprep.mubr.msk.bf16.mxu0 %vm261_vm0, %v2576_v14 }
  0x30   :  { %2522 = vmatprep.mubr.msk.bf16.mxu1 %vm261_vm0, %v2576_v14 }
  0x36   :  { %2457 = vmatmul.mubr.msk.bf16.gmra.mrb[24].mxu0 %vm261_vm0, %v2577_v15 }
  0x37   :  { %2523 = vmatmul.mubr.msk.bf16.gmra.mrb[24].mxu1 %vm261_vm0, %v2577_v15  ;;  %2460 = vmatprep.mubr.msk.bf16.mxu0 %vm261_vm0, %v2578_v16 }
  0x38   :  { %2526 = vmatprep.mubr.msk.bf16.mxu1 %vm261_vm0, %v2578_v16 }
  0x3e   :  { %2461 = vmatmul.mubr.msk.bf16.gmra.mrb[28].mxu0 %vm261_vm0, %v2579_v17 }
  0x3f   :  { %2527 = vmatmul.mubr.msk.bf16.gmra.mrb[28].mxu1 %vm261_vm0, %v2579_v17  ;;  %2464 = vmatprep.mubr.msk.bf16.mxu0 %vm261_vm0, %v2580_v18 }
  0x40   :  { %2530 = vmatprep.mubr.msk.bf16.mxu1 %vm261_vm0, %v2580_v18 }
  0x46   :  { %2465 = vmatmul.mubr.msk.bf16.gmra.mrb[32].mxu0 %vm261_vm0, %v2581_v19 }
  0x47   :  { %2531 = vmatmul.mubr.msk.bf16.gmra.mrb[32].mxu1 %vm261_vm0, %v2581_v19  ;;  %2468 = vmatprep.mubr.msk.bf16.mxu0 %vm261_vm0, %v2582_v20 }
  0x48   :  { %2534 = vmatprep.mubr.msk.bf16.mxu1 %vm261_vm0, %v2582_v20 }
  0x4e   :  { %2469 = vmatmul.mubr.msk.bf16.gmra.mrb[36].mxu0 %vm261_vm0, %v2583_v21 }
  0x4f   :  { %2535 = vmatmul.mubr.msk.bf16.gmra.mrb[36].mxu1 %vm261_vm0, %v2583_v21  ;;  %2472 = vmatprep.mubr.msk.bf16.mxu0 %vm261_vm0, %v2584_v22 }
  0x50   :  { %2538 = vmatprep.mubr.msk.bf16.mxu1 %vm261_vm0, %v2584_v22 }
  0x56   :  { %2473 = vmatmul.mubr.msk.bf16.gmra.mrb[40].mxu0 %vm261_vm0, %v2585_v23 }
  0x57   :  { %2539 = vmatmul.mubr.msk.bf16.gmra.mrb[40].mxu1 %vm261_vm0, %v2585_v23  ;;  %2476 = vmatprep.mubr.msk.bf16.mxu0 %vm261_vm0, %v2586_v24 }
  0x58   :  { %2542 = vmatprep.mubr.msk.bf16.mxu1 %vm261_vm0, %v2586_v24 }
  0x5e   :  { %2477 = vmatmul.mubr.msk.bf16.gmra.mrb[44].mxu0 %vm261_vm0, %v2587_v25 }
  0x5f   :  { %2543 = vmatmul.mubr.msk.bf16.gmra.mrb[44].mxu1 %vm261_vm0, %v2587_v25  ;;  %2480 = vmatprep.mubr.msk.bf16.mxu0 %vm261_vm0, %v2588_v26 }
  0x60   :  { %2546 = vmatprep.mubr.msk.bf16.mxu1 %vm261_vm0, %v2588_v26 }
  0x66   :  { %2481 = vmatmul.mubr.msk.bf16.gmra.mrb[48].mxu0 %vm261_vm0, %v2589_v27 }
  0x67   :  { %2547 = vmatmul.mubr.msk.bf16.gmra.mrb[48].mxu1 %vm261_vm0, %v2589_v27  ;;  %2484 = vmatprep.mubr.msk.bf16.mxu0 %vm261_vm0, %v2590_v28 }
  0x68   :  { %2550 = vmatprep.mubr.msk.bf16.mxu1 %vm261_vm0, %v2590_v28 }
  0x6e   :  { %2485 = vmatmul.mubr.msk.bf16.gmra.mrb[52].mxu0 %vm261_vm0, %v2591_v29 }
  0x6f   :  { %2551 = vmatmul.mubr.msk.bf16.gmra.mrb[52].mxu1 %vm261_vm0, %v2591_v29  ;;  %2488 = vmatprep.mubr.msk.bf16.mxu0 %vm261_vm0, %v2592_v30 }
  0x70   :  { %2554 = vmatprep.mubr.msk.bf16.mxu1 %vm261_vm0, %v2592_v30 }
  0x76   :  { %2489 = vmatmul.mubr.msk.bf16.gmra.mrb[56].mxu0 %vm261_vm0, %v2593_v31 }
  0x77   :  { %2555 = vmatmul.mubr.msk.bf16.gmra.mrb[56].mxu1 %vm261_vm0, %v2593_v31  ;;  %2492 = vmatprep.mubr.msk.bf16.mxu0 %vm261_vm0, %v2594_v32 }
  0x78   :  { %2558 = vmatprep.mubr.msk.bf16.mxu1 %vm261_vm0, %v2594_v32 }
  0x7e   :  { %2493 = vmatmul.mubr.msk.bf16.gmra.mrb[60].mxu0 %vm261_vm0, %v2595_v33 }
  0x7f   :  { %2559 = vmatmul.mubr.msk.bf16.gmra.mrb[60].mxu1 %vm261_vm0, %v2595_v33 }
  0xd9   :  { %v2434_v36 = vpop.f32.mrb[0].mxu0 }
  0xda   :  { %v656_v38 = vmul.f32 %v2434_v36, %v2814_v34  ;;  %v2500_v39 = vpop.f32.mrb[0].mxu1  ;;  %v392_v41 = vpop.f32.mrb[1].mxu0 }
  0xdb   :  { %v1480_v42 = vmul.f32 %v2500_v39, %v2819_v35  ;;  %v654_v43 = vmul.f32 %v2814_v34, %v392_v41  ;;  %v1216_v44 = vpop.f32.mrb[1].mxu1  ;;  %v2435_v45 = vpop.f32.mrb[2].mxu0 }
  0xdc   :  { %v727_v46 = vadd.f32 %v2824_v37, %v656_v38  ;;  %v1478_v47 = vmul.f32 %v2819_v35, %v1216_v44  ;;  %v657_v48 = vmul.f32 %v2435_v45, %v2814_v34  ;;  %v2501_v49 = vpop.f32.mrb[2].mxu1  ;;  %v395_v50 = vpop.f32.mrb[3].mxu0 }
  0xdd   :  { %v1551_v51 = vadd.f32 %v2830_v40, %v1480_v42  ;;  %v725_v52 = vadd.f32 %v2824_v37, %v654_v43  ;;  %v1481_v53 = vmul.f32 %v2501_v49, %v2819_v35  ;;  %v655_v54 = vmul.f32 %v2814_v34, %v395_v50  ;;  %v1219_v55 = vpop.f32.mrb[3].mxu1 }
  0xde   :  { %v791_v56 = vmax.f32 %v727_v46, 0.0  ;;  %v1549_v57 = vadd.f32 %v2830_v40, %v1478_v47  ;;  %v728_v58 = vadd.f32 %v2824_v37, %v657_v48  ;;  %v1479_v59 = vmul.f32 %v2819_v35, %v1219_v55 }
  0xdf   :  { %v1615_v60 = vmax.f32 %v1551_v51, 0.0  ;;  %v789_v61 = vmax.f32 %v725_v52, 0.0  ;;  %v1552_v62 = vadd.f32 %v2830_v40, %v1481_v53  ;;  %v726_v63 = vadd.f32 %v2824_v37, %v655_v54 }
  0xe0   :  { %v2238_v0 = vpack.c.bf16 %v791_v56, %v791_v56  ;;  %v1613_v1 = vmax.f32 %v1549_v57, 0.0  ;;  %v792_v2 = vmax.f32 %v728_v58, 0.0  ;;  %v1550_v3 = vadd.f32 %v2830_v40, %v1479_v59 }
  0xe1   :  { %v2302_v4 = vpack.c.bf16 %v1615_v60, %v1615_v60  ;;  %v2236_v5 = vpack.c.bf16 %v789_v61, %v789_v61  ;;  %v1616_v6 = vmax.f32 %v1552_v62, 0.0  ;;  %v790_v7 = vmax.f32 %v726_v63, 0.0  ;;  %v2438_v8 = vpop.f32.mrb[4].mxu0 }
  0xe2   :  { %1112 = vst.msk [vmem:[%s3626_s7 + $0x8] sm:$0xf] %vm1109_vm1, %v2238_v0  ;;  %v2300_v9 = vpack.c.bf16 %v1613_v1, %v1613_v1  ;;  %v2239_v10 = vpack.c.bf16 %v792_v2, %v792_v2  ;;  %v1614_v11 = vmax.f32 %v1550_v3, 0.0  ;;  %v660_v12 = vmul.f32 %v2438_v8, %v2814_v34  ;;  %v2504_v13 = vpop.f32.mrb[4].mxu1  ;;  %v408_v14 = vpop.f32.mrb[5].mxu0 }
  0xe3   :  { %1936 = vst.msk [vmem:[%s3627_s8 + $0x8] sm:$0xf] %vm1933_vm2, %v2302_v4  ;;  %v2303_v15 = vpack.c.bf16 %v1616_v6, %v1616_v6  ;;  %v2237_v16 = vpack.c.bf16 %v790_v7, %v790_v7  ;;  %v1484_v17 = vmul.f32 %v2504_v13, %v2819_v35  ;;  %v658_v18 = vmul.f32 %v2814_v34, %v408_v14  ;;  %v1232_v19 = vpop.f32.mrb[5].mxu1  ;;  %v2439_v20 = vpop.f32.mrb[6].mxu0 }
  0xe4   :  { %1110 = vst.msk [vmem:[%s3626_s7] sm:$0xf] %vm1109_vm1, %v2236_v5  ;;  %1113 = vst.msk [vmem:[%s3626_s7 + $0xc] sm:$0xf] %vm1109_vm1, %v2239_v10  ;;  %v2301_v21 = vpack.c.bf16 %v1614_v11, %v1614_v11  ;;  %v731_v22 = vadd.f32 %v2824_v37, %v660_v12  ;;  %v1482_v23 = vmul.f32 %v2819_v35, %v1232_v19  ;;  %v2505_v25 = vpop.f32.mrb[6].mxu1  ;;  %v411_v26 = vpop.f32.mrb[7].mxu0 }
  0xe5   :  { %1934 = vst.msk [vmem:[%s3627_s8] sm:$0xf] %vm1933_vm2, %v2300_v9  ;;  %v661_v24 = vmul.f32 %v2439_v20, %v2814_v34  ;;  %1937 = vst.msk [vmem:[%s3627_s8 + $0xc] sm:$0xf] %vm1933_vm2, %v2303_v15  ;;  %v1555_v27 = vadd.f32 %v2830_v40, %v1484_v17  ;;  %v729_v28 = vadd.f32 %v2824_v37, %v658_v18  ;;  %v1235_v31 = vpop.f32.mrb[7].mxu1 }
  0xe6   :  { %1111 = vst.msk [vmem:[%s3626_s7 + $0x4] sm:$0xf] %vm1109_vm1, %v2237_v16  ;;  %v1485_v29 = vmul.f32 %v2505_v25, %v2819_v35  ;;  %v659_v30 = vmul.f32 %v2814_v34, %v411_v26  ;;  %v795_v32 = vmax.f32 %v731_v22, 0.0  ;;  %v1553_v33 = vadd.f32 %v2830_v40, %v1482_v23 }
  0xe7   :  { %1935 = vst.msk [vmem:[%s3627_s8 + $0x4] sm:$0xf] %vm1933_vm2, %v2301_v21  ;;  %v732_v36 = vadd.f32 %v2824_v37, %v661_v24  ;;  %v1483_v38 = vmul.f32 %v2819_v35, %v1235_v31  ;;  %v1619_v39 = vmax.f32 %v1555_v27, 0.0  ;;  %v793_v41 = vmax.f32 %v729_v28, 0.0 }
  0xe8   :  { %v1556_v42 = vadd.f32 %v2830_v40, %v1485_v29  ;;  %v730_v43 = vadd.f32 %v2824_v37, %v659_v30  ;;  %v2242_v44 = vpack.c.bf16 %v795_v32, %v795_v32  ;;  %v1617_v45 = vmax.f32 %v1553_v33, 0.0 }
  0xe9   :  { %v796_v46 = vmax.f32 %v732_v36, 0.0  ;;  %v1554_v47 = vadd.f32 %v2830_v40, %v1483_v38  ;;  %v2306_v48 = vpack.c.bf16 %v1619_v39, %v1619_v39  ;;  %v2240_v49 = vpack.c.bf16 %v793_v41, %v793_v41  ;;  %v2442_v52 = vpop.f32.mrb[8].mxu0 }
  0xea   :  { %v1620_v50 = vmax.f32 %v1556_v42, 0.0  ;;  %v794_v51 = vmax.f32 %v730_v43, 0.0  ;;  %1116 = vst.msk [vmem:[%s3626_s7 + $0x18] sm:$0xf] %vm1109_vm1, %v2242_v44  ;;  %v2304_v53 = vpack.c.bf16 %v1617_v45, %v1617_v45  ;;  %v664_v56 = vmul.f32 %v2442_v52, %v2814_v34  ;;  %v2508_v57 = vpop.f32.mrb[8].mxu1  ;;  %v424_v58 = vpop.f32.mrb[9].mxu0 }
  0xeb   :  { %v2243_v54 = vpack.c.bf16 %v796_v46, %v796_v46  ;;  %v1618_v55 = vmax.f32 %v1554_v47, 0.0  ;;  %1940 = vst.msk [vmem:[%s3627_s8 + $0x18] sm:$0xf] %vm1933_vm2, %v2306_v48  ;;  %v1488_v61 = vmul.f32 %v2508_v57, %v2819_v35  ;;  %v662_v62 = vmul.f32 %v2814_v34, %v424_v58  ;;  %v1248_v63 = vpop.f32.mrb[9].mxu1  ;;  %v2443_v0 = vpop.f32.mrb[10].mxu0 }
  0xec   :  { %1114 = vst.msk [vmem:[%s3626_s7 + $0x10] sm:$0xf] %vm1109_vm1, %v2240_v49  ;;  %v2307_v59 = vpack.c.bf16 %v1620_v50, %v1620_v50  ;;  %v2241_v60 = vpack.c.bf16 %v794_v51, %v794_v51  ;;  %v735_v2 = vadd.f32 %v2824_v37, %v664_v56  ;;  %v1486_v3 = vmul.f32 %v2819_v35, %v1248_v63  ;;  %v2509_v5 = vpop.f32.mrb[10].mxu1  ;;  %v427_v6 = vpop.f32.mrb[11].mxu0 }
  0xed   :  { %1938 = vst.msk [vmem:[%s3627_s8 + $0x10] sm:$0xf] %vm1933_vm2, %v2304_v53  ;;  %v2305_v1 = vpack.c.bf16 %v1618_v55, %v1618_v55  ;;  %v665_v4 = vmul.f32 %v2443_v0, %v2814_v34  ;;  %v1559_v7 = vadd.f32 %v2830_v40, %v1488_v61  ;;  %v733_v8 = vadd.f32 %v2824_v37, %v662_v62  ;;  %v1251_v11 = vpop.f32.mrb[11].mxu1 }
  0xee   :  { %1117 = vst.msk [vmem:[%s3626_s7 + $0x1c] sm:$0xf] %vm1109_vm1, %v2243_v54  ;;  %1115 = vst.msk [vmem:[%s3626_s7 + $0x14] sm:$0xf] %vm1109_vm1, %v2241_v60  ;;  %v1489_v9 = vmul.f32 %v2509_v5, %v2819_v35  ;;  %v663_v10 = vmul.f32 %v2814_v34, %v427_v6  ;;  %v799_v12 = vmax.f32 %v735_v2, 0.0  ;;  %v1557_v13 = vadd.f32 %v2830_v40, %v1486_v3 }
  0xef   :  { %1941 = vst.msk [vmem:[%s3627_s8 + $0x1c] sm:$0xf] %vm1933_vm2, %v2307_v59  ;;  %1939 = vst.msk [vmem:[%s3627_s8 + $0x14] sm:$0xf] %vm1933_vm2, %v2305_v1  ;;  %v736_v14 = vadd.f32 %v2824_v37, %v665_v4  ;;  %v1487_v15 = vmul.f32 %v2819_v35, %v1251_v11  ;;  %v1623_v16 = vmax.f32 %v1559_v7, 0.0  ;;  %v797_v17 = vmax.f32 %v733_v8, 0.0 }
  0xf0   :  { %v1560_v18 = vadd.f32 %v2830_v40, %v1489_v9  ;;  %v734_v19 = vadd.f32 %v2824_v37, %v663_v10  ;;  %v2246_v20 = vpack.c.bf16 %v799_v12, %v799_v12  ;;  %v1621_v21 = vmax.f32 %v1557_v13, 0.0 }
  0xf1   :  { %v800_v22 = vmax.f32 %v736_v14, 0.0  ;;  %v1558_v23 = vadd.f32 %v2830_v40, %v1487_v15  ;;  %v2310_v24 = vpack.c.bf16 %v1623_v16, %v1623_v16  ;;  %v2244_v25 = vpack.c.bf16 %v797_v17, %v797_v17  ;;  %v2446_v28 = vpop.f32.mrb[12].mxu0 }
  0xf2   :  { %v1624_v26 = vmax.f32 %v1560_v18, 0.0  ;;  %v798_v27 = vmax.f32 %v734_v19, 0.0  ;;  %1120 = vst.msk [vmem:[%s3626_s7 + $0x28] sm:$0xf] %vm1109_vm1, %v2246_v20  ;;  %v2308_v29 = vpack.c.bf16 %v1621_v21, %v1621_v21  ;;  %v668_v32 = vmul.f32 %v2446_v28, %v2814_v34  ;;  %v2512_v33 = vpop.f32.mrb[12].mxu1  ;;  %v440_v36 = vpop.f32.mrb[13].mxu0 }
  0xf3   :  { %v2247_v30 = vpack.c.bf16 %v800_v22, %v800_v22  ;;  %v1622_v31 = vmax.f32 %v1558_v23, 0.0  ;;  %1944 = vst.msk [vmem:[%s3627_s8 + $0x28] sm:$0xf] %vm1933_vm2, %v2310_v24  ;;  %v1492_v41 = vmul.f32 %v2512_v33, %v2819_v35  ;;  %v666_v42 = vmul.f32 %v2814_v34, %v440_v36  ;;  %v1264_v43 = vpop.f32.mrb[13].mxu1  ;;  %v2447_v44 = vpop.f32.mrb[14].mxu0 }
  0xf4   :  { %1118 = vst.msk [vmem:[%s3626_s7 + $0x20] sm:$0xf] %vm1109_vm1, %v2244_v25  ;;  %v2311_v38 = vpack.c.bf16 %v1624_v26, %v1624_v26  ;;  %v2245_v39 = vpack.c.bf16 %v798_v27, %v798_v27  ;;  %v739_v46 = vadd.f32 %v2824_v37, %v668_v32  ;;  %v1490_v47 = vmul.f32 %v2819_v35, %v1264_v43  ;;  %v2513_v49 = vpop.f32.mrb[14].mxu1  ;;  %v443_v50 = vpop.f32.mrb[15].mxu0 }
  0xf5   :  { %1942 = vst.msk [vmem:[%s3627_s8 + $0x20] sm:$0xf] %vm1933_vm2, %v2308_v29  ;;  %v2309_v45 = vpack.c.bf16 %v1622_v31, %v1622_v31  ;;  %v669_v48 = vmul.f32 %v2447_v44, %v2814_v34  ;;  %v1563_v51 = vadd.f32 %v2830_v40, %v1492_v41  ;;  %v737_v52 = vadd.f32 %v2824_v37, %v666_v42  ;;  %v1267_v55 = vpop.f32.mrb[15].mxu1 }
  0xf6   :  { %1121 = vst.msk [vmem:[%s3626_s7 + $0x2c] sm:$0xf] %vm1109_vm1, %v2247_v30  ;;  %1119 = vst.msk [vmem:[%s3626_s7 + $0x24] sm:$0xf] %vm1109_vm1, %v2245_v39  ;;  %v1493_v53 = vmul.f32 %v2513_v49, %v2819_v35  ;;  %v667_v54 = vmul.f32 %v2814_v34, %v443_v50  ;;  %v803_v56 = vmax.f32 %v739_v46, 0.0  ;;  %v1561_v57 = vadd.f32 %v2830_v40, %v1490_v47 }
  0xf7   :  { %1945 = vst.msk [vmem:[%s3627_s8 + $0x2c] sm:$0xf] %vm1933_vm2, %v2311_v38  ;;  %1943 = vst.msk [vmem:[%s3627_s8 + $0x24] sm:$0xf] %vm1933_vm2, %v2309_v45  ;;  %v740_v58 = vadd.f32 %v2824_v37, %v669_v48  ;;  %v1491_v59 = vmul.f32 %v2819_v35, %v1267_v55  ;;  %v1627_v60 = vmax.f32 %v1563_v51, 0.0  ;;  %v801_v61 = vmax.f32 %v737_v52, 0.0 }
  0xf8   :  { %v1564_v62 = vadd.f32 %v2830_v40, %v1493_v53  ;;  %v738_v63 = vadd.f32 %v2824_v37, %v667_v54  ;;  %v2250_v0 = vpack.c.bf16 %v803_v56, %v803_v56  ;;  %v1625_v1 = vmax.f32 %v1561_v57, 0.0 }
  0xf9   :  { %v804_v2 = vmax.f32 %v740_v58, 0.0  ;;  %v1562_v3 = vadd.f32 %v2830_v40, %v1491_v59  ;;  %v2314_v4 = vpack.c.bf16 %v1627_v60, %v1627_v60  ;;  %v2248_v5 = vpack.c.bf16 %v801_v61, %v801_v61  ;;  %v2450_v8 = vpop.f32.mrb[16].mxu0 }
  0xfa   :  { %v1628_v6 = vmax.f32 %v1564_v62, 0.0  ;;  %v802_v7 = vmax.f32 %v738_v63, 0.0  ;;  %1124 = vst.msk [vmem:[%s3626_s7 + $0x38] sm:$0xf] %vm1109_vm1, %v2250_v0  ;;  %v2312_v9 = vpack.c.bf16 %v1625_v1, %v1625_v1  ;;  %v672_v12 = vmul.f32 %v2450_v8, %v2814_v34  ;;  %v2516_v13 = vpop.f32.mrb[16].mxu1  ;;  %v456_v14 = vpop.f32.mrb[17].mxu0 }
  0xfb   :  { %v2251_v10 = vpack.c.bf16 %v804_v2, %v804_v2  ;;  %v1626_v11 = vmax.f32 %v1562_v3, 0.0  ;;  %1948 = vst.msk [vmem:[%s3627_s8 + $0x38] sm:$0xf] %vm1933_vm2, %v2314_v4  ;;  %v1496_v17 = vmul.f32 %v2516_v13, %v2819_v35  ;;  %v670_v18 = vmul.f32 %v2814_v34, %v456_v14  ;;  %v1280_v19 = vpop.f32.mrb[17].mxu1  ;;  %v2451_v20 = vpop.f32.mrb[18].mxu0 }
  0xfc   :  { %1122 = vst.msk [vmem:[%s3626_s7 + $0x30] sm:$0xf] %vm1109_vm1, %v2248_v5  ;;  %v2315_v15 = vpack.c.bf16 %v1628_v6, %v1628_v6  ;;  %v2249_v16 = vpack.c.bf16 %v802_v7, %v802_v7  ;;  %v743_v22 = vadd.f32 %v2824_v37, %v672_v12  ;;  %v1494_v23 = vmul.f32 %v2819_v35, %v1280_v19  ;;  %v2517_v25 = vpop.f32.mrb[18].mxu1  ;;  %v459_v26 = vpop.f32.mrb[19].mxu0 }
  0xfd   :  { %1946 = vst.msk [vmem:[%s3627_s8 + $0x30] sm:$0xf] %vm1933_vm2, %v2312_v9  ;;  %v2313_v21 = vpack.c.bf16 %v1626_v11, %v1626_v11  ;;  %v673_v24 = vmul.f32 %v2451_v20, %v2814_v34  ;;  %v1567_v27 = vadd.f32 %v2830_v40, %v1496_v17  ;;  %v741_v28 = vadd.f32 %v2824_v37, %v670_v18  ;;  %v1283_v31 = vpop.f32.mrb[19].mxu1 }
  0xfe   :  { %1125 = vst.msk [vmem:[%s3626_s7 + $0x3c] sm:$0xf] %vm1109_vm1, %v2251_v10  ;;  %1123 = vst.msk [vmem:[%s3626_s7 + $0x34] sm:$0xf] %vm1109_vm1, %v2249_v16  ;;  %v1497_v29 = vmul.f32 %v2517_v25, %v2819_v35  ;;  %v671_v30 = vmul.f32 %v2814_v34, %v459_v26  ;;  %v807_v32 = vmax.f32 %v743_v22, 0.0  ;;  %v1565_v33 = vadd.f32 %v2830_v40, %v1494_v23 }
  0xff   :  { %1949 = vst.msk [vmem:[%s3627_s8 + $0x3c] sm:$0xf] %vm1933_vm2, %v2315_v15  ;;  %1947 = vst.msk [vmem:[%s3627_s8 + $0x34] sm:$0xf] %vm1933_vm2, %v2313_v21  ;;  %v744_v36 = vadd.f32 %v2824_v37, %v673_v24  ;;  %v1495_v38 = vmul.f32 %v2819_v35, %v1283_v31  ;;  %v1631_v39 = vmax.f32 %v1567_v27, 0.0  ;;  %v805_v41 = vmax.f32 %v741_v28, 0.0 }
 0x100   :  { %v1568_v42 = vadd.f32 %v2830_v40, %v1497_v29  ;;  %v742_v43 = vadd.f32 %v2824_v37, %v671_v30  ;;  %v2254_v44 = vpack.c.bf16 %v807_v32, %v807_v32  ;;  %v1629_v45 = vmax.f32 %v1565_v33, 0.0 }
 0x101   :  { %v808_v46 = vmax.f32 %v744_v36, 0.0  ;;  %v1566_v47 = vadd.f32 %v2830_v40, %v1495_v38  ;;  %v2318_v48 = vpack.c.bf16 %v1631_v39, %v1631_v39  ;;  %v2252_v49 = vpack.c.bf16 %v805_v41, %v805_v41  ;;  %v2454_v52 = vpop.f32.mrb[20].mxu0 }
 0x102   :  { %v1632_v50 = vmax.f32 %v1568_v42, 0.0  ;;  %v806_v51 = vmax.f32 %v742_v43, 0.0  ;;  %1128 = vst.msk [vmem:[%s3626_s7 + $0x48] sm:$0xf] %vm1109_vm1, %v2254_v44  ;;  %v2316_v53 = vpack.c.bf16 %v1629_v45, %v1629_v45  ;;  %v676_v56 = vmul.f32 %v2454_v52, %v2814_v34  ;;  %v2520_v57 = vpop.f32.mrb[20].mxu1  ;;  %v472_v58 = vpop.f32.mrb[21].mxu0 }
 0x103   :  { %v2255_v54 = vpack.c.bf16 %v808_v46, %v808_v46  ;;  %v1630_v55 = vmax.f32 %v1566_v47, 0.0  ;;  %1952 = vst.msk [vmem:[%s3627_s8 + $0x48] sm:$0xf] %vm1933_vm2, %v2318_v48  ;;  %v1500_v61 = vmul.f32 %v2520_v57, %v2819_v35  ;;  %v674_v62 = vmul.f32 %v2814_v34, %v472_v58  ;;  %v1296_v63 = vpop.f32.mrb[21].mxu1  ;;  %v2455_v0 = vpop.f32.mrb[22].mxu0 }
 0x104   :  { %1126 = vst.msk [vmem:[%s3626_s7 + $0x40] sm:$0xf] %vm1109_vm1, %v2252_v49  ;;  %v2319_v59 = vpack.c.bf16 %v1632_v50, %v1632_v50  ;;  %v2253_v60 = vpack.c.bf16 %v806_v51, %v806_v51  ;;  %v747_v2 = vadd.f32 %v2824_v37, %v676_v56  ;;  %v1498_v3 = vmul.f32 %v2819_v35, %v1296_v63  ;;  %v2521_v5 = vpop.f32.mrb[22].mxu1  ;;  %v475_v6 = vpop.f32.mrb[23].mxu0 }
 0x105   :  { %1950 = vst.msk [vmem:[%s3627_s8 + $0x40] sm:$0xf] %vm1933_vm2, %v2316_v53  ;;  %v2317_v1 = vpack.c.bf16 %v1630_v55, %v1630_v55  ;;  %v677_v4 = vmul.f32 %v2455_v0, %v2814_v34  ;;  %v1571_v7 = vadd.f32 %v2830_v40, %v1500_v61  ;;  %v745_v8 = vadd.f32 %v2824_v37, %v674_v62  ;;  %v1299_v11 = vpop.f32.mrb[23].mxu1 }
 0x106   :  { %1129 = vst.msk [vmem:[%s3626_s7 + $0x4c] sm:$0xf] %vm1109_vm1, %v2255_v54  ;;  %1127 = vst.msk [vmem:[%s3626_s7 + $0x44] sm:$0xf] %vm1109_vm1, %v2253_v60  ;;  %v1501_v9 = vmul.f32 %v2521_v5, %v2819_v35  ;;  %v675_v10 = vmul.f32 %v2814_v34, %v475_v6  ;;  %v811_v12 = vmax.f32 %v747_v2, 0.0  ;;  %v1569_v13 = vadd.f32 %v2830_v40, %v1498_v3 }
 0x107   :  { %1953 = vst.msk [vmem:[%s3627_s8 + $0x4c] sm:$0xf] %vm1933_vm2, %v2319_v59  ;;  %1951 = vst.msk [vmem:[%s3627_s8 + $0x44] sm:$0xf] %vm1933_vm2, %v2317_v1  ;;  %v748_v14 = vadd.f32 %v2824_v37, %v677_v4  ;;  %v1499_v15 = vmul.f32 %v2819_v35, %v1299_v11  ;;  %v1635_v16 = vmax.f32 %v1571_v7, 0.0  ;;  %v809_v17 = vmax.f32 %v745_v8, 0.0 }
 0x108   :  { %v1572_v18 = vadd.f32 %v2830_v40, %v1501_v9  ;;  %v746_v19 = vadd.f32 %v2824_v37, %v675_v10  ;;  %v2258_v20 = vpack.c.bf16 %v811_v12, %v811_v12  ;;  %v1633_v21 = vmax.f32 %v1569_v13, 0.0 }
 0x109   :  { %v812_v22 = vmax.f32 %v748_v14, 0.0  ;;  %v1570_v23 = vadd.f32 %v2830_v40, %v1499_v15  ;;  %v2322_v24 = vpack.c.bf16 %v1635_v16, %v1635_v16  ;;  %v2256_v25 = vpack.c.bf16 %v809_v17, %v809_v17  ;;  %v2458_v28 = vpop.f32.mrb[24].mxu0 }
 0x10a   :  { %v1636_v26 = vmax.f32 %v1572_v18, 0.0  ;;  %v810_v27 = vmax.f32 %v746_v19, 0.0  ;;  %1132 = vst.msk [vmem:[%s3626_s7 + $0x58] sm:$0xf] %vm1109_vm1, %v2258_v20  ;;  %v2320_v29 = vpack.c.bf16 %v1633_v21, %v1633_v21  ;;  %v680_v32 = vmul.f32 %v2458_v28, %v2814_v34  ;;  %v2524_v33 = vpop.f32.mrb[24].mxu1  ;;  %v488_v36 = vpop.f32.mrb[25].mxu0 }
 0x10b   :  { %v2259_v30 = vpack.c.bf16 %v812_v22, %v812_v22  ;;  %v1634_v31 = vmax.f32 %v1570_v23, 0.0  ;;  %1956 = vst.msk [vmem:[%s3627_s8 + $0x58] sm:$0xf] %vm1933_vm2, %v2322_v24  ;;  %v1504_v41 = vmul.f32 %v2524_v33, %v2819_v35  ;;  %v678_v42 = vmul.f32 %v2814_v34, %v488_v36  ;;  %v1312_v43 = vpop.f32.mrb[25].mxu1  ;;  %v2459_v44 = vpop.f32.mrb[26].mxu0 }
 0x10c   :  { %1130 = vst.msk [vmem:[%s3626_s7 + $0x50] sm:$0xf] %vm1109_vm1, %v2256_v25  ;;  %v2323_v38 = vpack.c.bf16 %v1636_v26, %v1636_v26  ;;  %v2257_v39 = vpack.c.bf16 %v810_v27, %v810_v27  ;;  %v751_v46 = vadd.f32 %v2824_v37, %v680_v32  ;;  %v1502_v47 = vmul.f32 %v2819_v35, %v1312_v43  ;;  %v2525_v49 = vpop.f32.mrb[26].mxu1  ;;  %v491_v50 = vpop.f32.mrb[27].mxu0 }
 0x10d   :  { %1954 = vst.msk [vmem:[%s3627_s8 + $0x50] sm:$0xf] %vm1933_vm2, %v2320_v29  ;;  %v2321_v45 = vpack.c.bf16 %v1634_v31, %v1634_v31  ;;  %v681_v48 = vmul.f32 %v2459_v44, %v2814_v34  ;;  %v1575_v51 = vadd.f32 %v2830_v40, %v1504_v41  ;;  %v749_v52 = vadd.f32 %v2824_v37, %v678_v42  ;;  %v1315_v55 = vpop.f32.mrb[27].mxu1 }
 0x10e   :  { %1133 = vst.msk [vmem:[%s3626_s7 + $0x5c] sm:$0xf] %vm1109_vm1, %v2259_v30  ;;  %1131 = vst.msk [vmem:[%s3626_s7 + $0x54] sm:$0xf] %vm1109_vm1, %v2257_v39  ;;  %v1505_v53 = vmul.f32 %v2525_v49, %v2819_v35  ;;  %v679_v54 = vmul.f32 %v2814_v34, %v491_v50  ;;  %v815_v56 = vmax.f32 %v751_v46, 0.0  ;;  %v1573_v57 = vadd.f32 %v2830_v40, %v1502_v47 }
 0x10f   :  { %1957 = vst.msk [vmem:[%s3627_s8 + $0x5c] sm:$0xf] %vm1933_vm2, %v2323_v38  ;;  %1955 = vst.msk [vmem:[%s3627_s8 + $0x54] sm:$0xf] %vm1933_vm2, %v2321_v45  ;;  %v752_v58 = vadd.f32 %v2824_v37, %v681_v48  ;;  %v1503_v59 = vmul.f32 %v2819_v35, %v1315_v55  ;;  %v1639_v60 = vmax.f32 %v1575_v51, 0.0  ;;  %v813_v61 = vmax.f32 %v749_v52, 0.0 }
 0x110   :  { %v1576_v62 = vadd.f32 %v2830_v40, %v1505_v53  ;;  %v750_v63 = vadd.f32 %v2824_v37, %v679_v54  ;;  %v2262_v0 = vpack.c.bf16 %v815_v56, %v815_v56  ;;  %v1637_v1 = vmax.f32 %v1573_v57, 0.0 }
 0x111   :  { %v816_v2 = vmax.f32 %v752_v58, 0.0  ;;  %v1574_v3 = vadd.f32 %v2830_v40, %v1503_v59  ;;  %v2326_v4 = vpack.c.bf16 %v1639_v60, %v1639_v60  ;;  %v2260_v5 = vpack.c.bf16 %v813_v61, %v813_v61  ;;  %v2462_v8 = vpop.f32.mrb[28].mxu0 }
 0x112   :  { %v1640_v6 = vmax.f32 %v1576_v62, 0.0  ;;  %v814_v7 = vmax.f32 %v750_v63, 0.0  ;;  %1136 = vst.msk [vmem:[%s3626_s7 + $0x68] sm:$0xf] %vm1109_vm1, %v2262_v0  ;;  %v2324_v9 = vpack.c.bf16 %v1637_v1, %v1637_v1  ;;  %v684_v12 = vmul.f32 %v2462_v8, %v2814_v34  ;;  %v2528_v13 = vpop.f32.mrb[28].mxu1  ;;  %v504_v14 = vpop.f32.mrb[29].mxu0 }
 0x113   :  { %v2263_v10 = vpack.c.bf16 %v816_v2, %v816_v2  ;;  %v1638_v11 = vmax.f32 %v1574_v3, 0.0  ;;  %1960 = vst.msk [vmem:[%s3627_s8 + $0x68] sm:$0xf] %vm1933_vm2, %v2326_v4  ;;  %v1508_v17 = vmul.f32 %v2528_v13, %v2819_v35  ;;  %v682_v18 = vmul.f32 %v2814_v34, %v504_v14  ;;  %v1328_v19 = vpop.f32.mrb[29].mxu1  ;;  %v2463_v20 = vpop.f32.mrb[30].mxu0 }
 0x114   :  { %1134 = vst.msk [vmem:[%s3626_s7 + $0x60] sm:$0xf] %vm1109_vm1, %v2260_v5  ;;  %v2327_v15 = vpack.c.bf16 %v1640_v6, %v1640_v6  ;;  %v2261_v16 = vpack.c.bf16 %v814_v7, %v814_v7  ;;  %v755_v22 = vadd.f32 %v2824_v37, %v684_v12  ;;  %v1506_v23 = vmul.f32 %v2819_v35, %v1328_v19  ;;  %v2529_v25 = vpop.f32.mrb[30].mxu1  ;;  %v507_v26 = vpop.f32.mrb[31].mxu0 }
 0x115   :  { %1958 = vst.msk [vmem:[%s3627_s8 + $0x60] sm:$0xf] %vm1933_vm2, %v2324_v9  ;;  %v2325_v21 = vpack.c.bf16 %v1638_v11, %v1638_v11  ;;  %v685_v24 = vmul.f32 %v2463_v20, %v2814_v34  ;;  %v1579_v27 = vadd.f32 %v2830_v40, %v1508_v17  ;;  %v753_v28 = vadd.f32 %v2824_v37, %v682_v18  ;;  %v1331_v31 = vpop.f32.mrb[31].mxu1 }
 0x116   :  { %1137 = vst.msk [vmem:[%s3626_s7 + $0x6c] sm:$0xf] %vm1109_vm1, %v2263_v10  ;;  %1135 = vst.msk [vmem:[%s3626_s7 + $0x64] sm:$0xf] %vm1109_vm1, %v2261_v16  ;;  %v1509_v29 = vmul.f32 %v2529_v25, %v2819_v35  ;;  %v683_v30 = vmul.f32 %v2814_v34, %v507_v26  ;;  %v819_v32 = vmax.f32 %v755_v22, 0.0  ;;  %v1577_v33 = vadd.f32 %v2830_v40, %v1506_v23 }
 0x117   :  { %1961 = vst.msk [vmem:[%s3627_s8 + $0x6c] sm:$0xf] %vm1933_vm2, %v2327_v15  ;;  %1959 = vst.msk [vmem:[%s3627_s8 + $0x64] sm:$0xf] %vm1933_vm2, %v2325_v21  ;;  %v756_v36 = vadd.f32 %v2824_v37, %v685_v24  ;;  %v1507_v38 = vmul.f32 %v2819_v35, %v1331_v31  ;;  %v1643_v39 = vmax.f32 %v1579_v27, 0.0  ;;  %v817_v41 = vmax.f32 %v753_v28, 0.0 }
 0x118   :  { %v1580_v42 = vadd.f32 %v2830_v40, %v1509_v29  ;;  %v754_v43 = vadd.f32 %v2824_v37, %v683_v30  ;;  %v2266_v44 = vpack.c.bf16 %v819_v32, %v819_v32  ;;  %v1641_v45 = vmax.f32 %v1577_v33, 0.0 }
 0x119   :  { %v820_v46 = vmax.f32 %v756_v36, 0.0  ;;  %v1578_v47 = vadd.f32 %v2830_v40, %v1507_v38  ;;  %v2330_v48 = vpack.c.bf16 %v1643_v39, %v1643_v39  ;;  %v2264_v49 = vpack.c.bf16 %v817_v41, %v817_v41  ;;  %v2466_v52 = vpop.f32.mrb[32].mxu0 }
 0x11a   :  { %v1644_v50 = vmax.f32 %v1580_v42, 0.0  ;;  %v818_v51 = vmax.f32 %v754_v43, 0.0  ;;  %1140 = vst.msk [vmem:[%s3626_s7 + $0x78] sm:$0xf] %vm1109_vm1, %v2266_v44  ;;  %v2328_v53 = vpack.c.bf16 %v1641_v45, %v1641_v45  ;;  %v688_v56 = vmul.f32 %v2466_v52, %v2814_v34  ;;  %v2532_v57 = vpop.f32.mrb[32].mxu1  ;;  %v520_v58 = vpop.f32.mrb[33].mxu0 }
 0x11b   :  { %v2267_v54 = vpack.c.bf16 %v820_v46, %v820_v46  ;;  %v1642_v55 = vmax.f32 %v1578_v47, 0.0  ;;  %1964 = vst.msk [vmem:[%s3627_s8 + $0x78] sm:$0xf] %vm1933_vm2, %v2330_v48  ;;  %v1512_v61 = vmul.f32 %v2532_v57, %v2819_v35  ;;  %v686_v62 = vmul.f32 %v2814_v34, %v520_v58  ;;  %v1344_v63 = vpop.f32.mrb[33].mxu1  ;;  %v2467_v0 = vpop.f32.mrb[34].mxu0 }
 0x11c   :  { %1138 = vst.msk [vmem:[%s3626_s7 + $0x70] sm:$0xf] %vm1109_vm1, %v2264_v49  ;;  %v2331_v59 = vpack.c.bf16 %v1644_v50, %v1644_v50  ;;  %v2265_v60 = vpack.c.bf16 %v818_v51, %v818_v51  ;;  %v759_v2 = vadd.f32 %v2824_v37, %v688_v56  ;;  %v1510_v3 = vmul.f32 %v2819_v35, %v1344_v63  ;;  %v2533_v5 = vpop.f32.mrb[34].mxu1  ;;  %v523_v6 = vpop.f32.mrb[35].mxu0 }
 0x11d   :  { %1962 = vst.msk [vmem:[%s3627_s8 + $0x70] sm:$0xf] %vm1933_vm2, %v2328_v53  ;;  %v2329_v1 = vpack.c.bf16 %v1642_v55, %v1642_v55  ;;  %v689_v4 = vmul.f32 %v2467_v0, %v2814_v34  ;;  %v1583_v7 = vadd.f32 %v2830_v40, %v1512_v61  ;;  %v757_v8 = vadd.f32 %v2824_v37, %v686_v62  ;;  %v1347_v11 = vpop.f32.mrb[35].mxu1 }
 0x11e   :  { %1141 = vst.msk [vmem:[%s3626_s7 + $0x7c] sm:$0xf] %vm1109_vm1, %v2267_v54  ;;  %1139 = vst.msk [vmem:[%s3626_s7 + $0x74] sm:$0xf] %vm1109_vm1, %v2265_v60  ;;  %v1513_v9 = vmul.f32 %v2533_v5, %v2819_v35  ;;  %v687_v10 = vmul.f32 %v2814_v34, %v523_v6  ;;  %v823_v12 = vmax.f32 %v759_v2, 0.0  ;;  %v1581_v13 = vadd.f32 %v2830_v40, %v1510_v3 }
 0x11f   :  { %1965 = vst.msk [vmem:[%s3627_s8 + $0x7c] sm:$0xf] %vm1933_vm2, %v2331_v59  ;;  %1963 = vst.msk [vmem:[%s3627_s8 + $0x74] sm:$0xf] %vm1933_vm2, %v2329_v1  ;;  %v760_v14 = vadd.f32 %v2824_v37, %v689_v4  ;;  %v1511_v15 = vmul.f32 %v2819_v35, %v1347_v11  ;;  %v1647_v16 = vmax.f32 %v1583_v7, 0.0  ;;  %v821_v17 = vmax.f32 %v757_v8, 0.0 }
 0x120   :  { %v1584_v18 = vadd.f32 %v2830_v40, %v1513_v9  ;;  %v758_v19 = vadd.f32 %v2824_v37, %v687_v10  ;;  %v2270_v20 = vpack.c.bf16 %v823_v12, %v823_v12  ;;  %v1645_v21 = vmax.f32 %v1581_v13, 0.0 }
 0x121   :  { %v824_v22 = vmax.f32 %v760_v14, 0.0  ;;  %v1582_v23 = vadd.f32 %v2830_v40, %v1511_v15  ;;  %v2334_v24 = vpack.c.bf16 %v1647_v16, %v1647_v16  ;;  %v2268_v25 = vpack.c.bf16 %v821_v17, %v821_v17  ;;  %v2470_v28 = vpop.f32.mrb[36].mxu0 }
 0x122   :  { %v1648_v26 = vmax.f32 %v1584_v18, 0.0  ;;  %v822_v27 = vmax.f32 %v758_v19, 0.0  ;;  %1144 = vst.msk [vmem:[%s3626_s7 + $0x88] sm:$0xf] %vm1109_vm1, %v2270_v20  ;;  %v2332_v29 = vpack.c.bf16 %v1645_v21, %v1645_v21  ;;  %v692_v32 = vmul.f32 %v2470_v28, %v2814_v34  ;;  %v2536_v33 = vpop.f32.mrb[36].mxu1  ;;  %v536_v36 = vpop.f32.mrb[37].mxu0 }
 0x123   :  { %v2271_v30 = vpack.c.bf16 %v824_v22, %v824_v22  ;;  %v1646_v31 = vmax.f32 %v1582_v23, 0.0  ;;  %1968 = vst.msk [vmem:[%s3627_s8 + $0x88] sm:$0xf] %vm1933_vm2, %v2334_v24  ;;  %v1516_v41 = vmul.f32 %v2536_v33, %v2819_v35  ;;  %v690_v42 = vmul.f32 %v2814_v34, %v536_v36  ;;  %v1360_v43 = vpop.f32.mrb[37].mxu1  ;;  %v2471_v44 = vpop.f32.mrb[38].mxu0 }
 0x124   :  { %1142 = vst.msk [vmem:[%s3626_s7 + $0x80] sm:$0xf] %vm1109_vm1, %v2268_v25  ;;  %v2335_v38 = vpack.c.bf16 %v1648_v26, %v1648_v26  ;;  %v2269_v39 = vpack.c.bf16 %v822_v27, %v822_v27  ;;  %v763_v46 = vadd.f32 %v2824_v37, %v692_v32  ;;  %v1514_v47 = vmul.f32 %v2819_v35, %v1360_v43  ;;  %v2537_v49 = vpop.f32.mrb[38].mxu1  ;;  %v539_v50 = vpop.f32.mrb[39].mxu0 }
 0x125   :  { %1966 = vst.msk [vmem:[%s3627_s8 + $0x80] sm:$0xf] %vm1933_vm2, %v2332_v29  ;;  %v2333_v45 = vpack.c.bf16 %v1646_v31, %v1646_v31  ;;  %v693_v48 = vmul.f32 %v2471_v44, %v2814_v34  ;;  %v1587_v51 = vadd.f32 %v2830_v40, %v1516_v41  ;;  %v761_v52 = vadd.f32 %v2824_v37, %v690_v42  ;;  %v1363_v55 = vpop.f32.mrb[39].mxu1 }
 0x126   :  { %1145 = vst.msk [vmem:[%s3626_s7 + $0x8c] sm:$0xf] %vm1109_vm1, %v2271_v30  ;;  %1143 = vst.msk [vmem:[%s3626_s7 + $0x84] sm:$0xf] %vm1109_vm1, %v2269_v39  ;;  %v1517_v53 = vmul.f32 %v2537_v49, %v2819_v35  ;;  %v691_v54 = vmul.f32 %v2814_v34, %v539_v50  ;;  %v827_v56 = vmax.f32 %v763_v46, 0.0  ;;  %v1585_v57 = vadd.f32 %v2830_v40, %v1514_v47 }
 0x127   :  { %1969 = vst.msk [vmem:[%s3627_s8 + $0x8c] sm:$0xf] %vm1933_vm2, %v2335_v38  ;;  %1967 = vst.msk [vmem:[%s3627_s8 + $0x84] sm:$0xf] %vm1933_vm2, %v2333_v45  ;;  %v764_v58 = vadd.f32 %v2824_v37, %v693_v48  ;;  %v1515_v59 = vmul.f32 %v2819_v35, %v1363_v55  ;;  %v1651_v60 = vmax.f32 %v1587_v51, 0.0  ;;  %v825_v61 = vmax.f32 %v761_v52, 0.0 }
 0x128   :  { %v1588_v62 = vadd.f32 %v2830_v40, %v1517_v53  ;;  %v762_v63 = vadd.f32 %v2824_v37, %v691_v54  ;;  %v2274_v0 = vpack.c.bf16 %v827_v56, %v827_v56  ;;  %v1649_v1 = vmax.f32 %v1585_v57, 0.0 }
 0x129   :  { %v828_v2 = vmax.f32 %v764_v58, 0.0  ;;  %v1586_v3 = vadd.f32 %v2830_v40, %v1515_v59  ;;  %v2338_v4 = vpack.c.bf16 %v1651_v60, %v1651_v60  ;;  %v2272_v5 = vpack.c.bf16 %v825_v61, %v825_v61  ;;  %v2474_v8 = vpop.f32.mrb[40].mxu0  ;;  %v3348_v58 = vld [vmem:[%s3623_s5] ss:$0 sm:$0xff] }
 0x12a   :  { %v1652_v6 = vmax.f32 %v1588_v62, 0.0  ;;  %v826_v7 = vmax.f32 %v762_v63, 0.0  ;;  %1148 = vst.msk [vmem:[%s3626_s7 + $0x98] sm:$0xf] %vm1109_vm1, %v2274_v0  ;;  %v2336_v9 = vpack.c.bf16 %v1649_v1, %v1649_v1  ;;  %v696_v12 = vmul.f32 %v2474_v8, %v2814_v34  ;;  %v2540_v13 = vpop.f32.mrb[40].mxu1  ;;  %v552_v14 = vpop.f32.mrb[41].mxu0 }
 0x12b   :  { %v2275_v10 = vpack.c.bf16 %v828_v2, %v828_v2  ;;  %v1650_v11 = vmax.f32 %v1586_v3, 0.0  ;;  %1972 = vst.msk [vmem:[%s3627_s8 + $0x98] sm:$0xf] %vm1933_vm2, %v2338_v4  ;;  %v1520_v17 = vmul.f32 %v2540_v13, %v2819_v35  ;;  %v694_v18 = vmul.f32 %v2814_v34, %v552_v14  ;;  %v1376_v19 = vpop.f32.mrb[41].mxu1  ;;  %v2475_v20 = vpop.f32.mrb[42].mxu0 }
 0x12c   :  { %1146 = vst.msk [vmem:[%s3626_s7 + $0x90] sm:$0xf] %vm1109_vm1, %v2272_v5  ;;  %v2339_v15 = vpack.c.bf16 %v1652_v6, %v1652_v6  ;;  %v2273_v16 = vpack.c.bf16 %v826_v7, %v826_v7  ;;  %v767_v22 = vadd.f32 %v2824_v37, %v696_v12  ;;  %v1518_v23 = vmul.f32 %v2819_v35, %v1376_v19  ;;  %v2541_v25 = vpop.f32.mrb[42].mxu1  ;;  %v555_v26 = vpop.f32.mrb[43].mxu0  ;;  %v3363_v0 = vld [vmem:[%s3624_s3] ss:$0 sm:$0xff] }
 0x12d   :  { %1970 = vst.msk [vmem:[%s3627_s8 + $0x90] sm:$0xf] %vm1933_vm2, %v2336_v9  ;;  %v2337_v21 = vpack.c.bf16 %v1650_v11, %v1650_v11  ;;  %v697_v24 = vmul.f32 %v2475_v20, %v2814_v34  ;;  %v1591_v27 = vadd.f32 %v2830_v40, %v1520_v17  ;;  %v765_v28 = vadd.f32 %v2824_v37, %v694_v18  ;;  %v1379_v31 = vpop.f32.mrb[43].mxu1  ;;  %v3379_v6 = vld [vmem:[%s3625_s6] ss:$0 sm:$0xff] }
 0x12e   :  { %1149 = vst.msk [vmem:[%s3626_s7 + $0x9c] sm:$0xf] %vm1109_vm1, %v2275_v10  ;;  %1147 = vst.msk [vmem:[%s3626_s7 + $0x94] sm:$0xf] %vm1109_vm1, %v2273_v16  ;;  %v1521_v29 = vmul.f32 %v2541_v25, %v2819_v35  ;;  %v695_v30 = vmul.f32 %v2814_v34, %v555_v26  ;;  %v831_v32 = vmax.f32 %v767_v22, 0.0  ;;  %v1589_v33 = vadd.f32 %v2830_v40, %v1518_v23 }
 0x12f   :  { %1973 = vst.msk [vmem:[%s3627_s8 + $0x9c] sm:$0xf] %vm1933_vm2, %v2339_v15  ;;  %1971 = vst.msk [vmem:[%s3627_s8 + $0x94] sm:$0xf] %vm1933_vm2, %v2337_v21  ;;  %v768_v36 = vadd.f32 %v2824_v37, %v697_v24  ;;  %v1519_v38 = vmul.f32 %v2819_v35, %v1379_v31  ;;  %v1655_v39 = vmax.f32 %v1591_v27, 0.0  ;;  %v829_v41 = vmax.f32 %v765_v28, 0.0 }
 0x130   :  { %v1592_v42 = vadd.f32 %v2830_v40, %v1521_v29  ;;  %v766_v43 = vadd.f32 %v2824_v37, %v695_v30  ;;  %v2278_v34 = vpack.c.bf16 %v831_v32, %v831_v32  ;;  %v1653_v44 = vmax.f32 %v1589_v33, 0.0  ;;  %v3334_v37 = vld [vmem:[%s3622_s2] ss:$0 sm:$0xff] }
 0x131   :  { %v832_v45 = vmax.f32 %v768_v36, 0.0  ;;  %v1590_v46 = vadd.f32 %v2830_v40, %v1519_v38  ;;  %v2342_v47 = vpack.c.bf16 %v1655_v39, %v1655_v39  ;;  %v2276_v48 = vpack.c.bf16 %v829_v41, %v829_v41  ;;  %v2478_v51 = vpop.f32.mrb[44].mxu0 }
 0x132   :  { %v1656_v49 = vmax.f32 %v1592_v42, 0.0  ;;  %v830_v50 = vmax.f32 %v766_v43, 0.0  ;;  %1152 = vst.msk [vmem:[%s3626_s7 + $0xa8] sm:$0xf] %vm1109_vm1, %v2278_v34  ;;  %v2340_v35 = vpack.c.bf16 %v1653_v44, %v1653_v44  ;;  %v700_v40 = vmul.f32 %v3334_v37, %v2478_v51  ;;  %v2544_v54 = vpop.f32.mrb[44].mxu1  ;;  %v568_v55 = vpop.f32.mrb[45].mxu0 }
 0x133   :  { %v2279_v52 = vpack.c.bf16 %v832_v45, %v832_v45  ;;  %v1654_v53 = vmax.f32 %v1590_v46, 0.0  ;;  %1976 = vst.msk [vmem:[%s3627_s8 + $0xa8] sm:$0xf] %vm1933_vm2, %v2342_v47  ;;  %v1524_v59 = vmul.f32 %v3348_v58, %v2544_v54  ;;  %v698_v60 = vmul.f32 %v3334_v37, %v568_v55  ;;  %v1392_v61 = vpop.f32.mrb[45].mxu1  ;;  %v2479_v62 = vpop.f32.mrb[46].mxu0 }
 0x134   :  { %1150 = vst.msk [vmem:[%s3626_s7 + $0xa0] sm:$0xf] %vm1109_vm1, %v2276_v48  ;;  %v2343_v56 = vpack.c.bf16 %v1656_v49, %v1656_v49  ;;  %v2277_v57 = vpack.c.bf16 %v830_v50, %v830_v50  ;;  %v771_v1 = vadd.f32 %v3363_v0, %v700_v40  ;;  %v1522_v2 = vmul.f32 %v3348_v58, %v1392_v61  ;;  %v2545_v4 = vpop.f32.mrb[46].mxu1  ;;  %v571_v5 = vpop.f32.mrb[47].mxu0 }
 0x135   :  { %1974 = vst.msk [vmem:[%s3627_s8 + $0xa0] sm:$0xf] %vm1933_vm2, %v2340_v35  ;;  %v2341_v63 = vpack.c.bf16 %v1654_v53, %v1654_v53  ;;  %v701_v3 = vmul.f32 %v3334_v37, %v2479_v62  ;;  %v1595_v7 = vadd.f32 %v3379_v6, %v1524_v59  ;;  %v769_v8 = vadd.f32 %v3363_v0, %v698_v60  ;;  %v1395_v11 = vpop.f32.mrb[47].mxu1 }
 0x136   :  { %1153 = vst.msk [vmem:[%s3626_s7 + $0xac] sm:$0xf] %vm1109_vm1, %v2279_v52  ;;  %1151 = vst.msk [vmem:[%s3626_s7 + $0xa4] sm:$0xf] %vm1109_vm1, %v2277_v57  ;;  %v1525_v9 = vmul.f32 %v3348_v58, %v2545_v4  ;;  %v699_v10 = vmul.f32 %v3334_v37, %v571_v5  ;;  %v835_v12 = vmax.f32 %v771_v1, 0.0  ;;  %v1593_v13 = vadd.f32 %v3379_v6, %v1522_v2 }
 0x137   :  { %1977 = vst.msk [vmem:[%s3627_s8 + $0xac] sm:$0xf] %vm1933_vm2, %v2343_v56  ;;  %1975 = vst.msk [vmem:[%s3627_s8 + $0xa4] sm:$0xf] %vm1933_vm2, %v2341_v63  ;;  %v772_v14 = vadd.f32 %v3363_v0, %v701_v3  ;;  %v1523_v15 = vmul.f32 %v3348_v58, %v1395_v11  ;;  %v1659_v16 = vmax.f32 %v1595_v7, 0.0  ;;  %v833_v17 = vmax.f32 %v769_v8, 0.0 }
 0x138   :  { %v1596_v18 = vadd.f32 %v3379_v6, %v1525_v9  ;;  %v770_v19 = vadd.f32 %v3363_v0, %v699_v10  ;;  %v2282_v20 = vpack.c.bf16 %v835_v12, %v835_v12  ;;  %v1657_v21 = vmax.f32 %v1593_v13, 0.0 }
 0x139   :  { %v836_v22 = vmax.f32 %v772_v14, 0.0  ;;  %v1594_v23 = vadd.f32 %v3379_v6, %v1523_v15  ;;  %v2346_v24 = vpack.c.bf16 %v1659_v16, %v1659_v16  ;;  %v2280_v25 = vpack.c.bf16 %v833_v17, %v833_v17  ;;  %v2482_v28 = vpop.f32.mrb[48].mxu0 }
 0x13a   :  { %v1660_v26 = vmax.f32 %v1596_v18, 0.0  ;;  %v834_v27 = vmax.f32 %v770_v19, 0.0  ;;  %1156 = vst.msk [vmem:[%s3626_s7 + $0xb8] sm:$0xf] %vm1109_vm1, %v2282_v20  ;;  %v2344_v29 = vpack.c.bf16 %v1657_v21, %v1657_v21  ;;  %v704_v32 = vmul.f32 %v3334_v37, %v2482_v28  ;;  %v2548_v33 = vpop.f32.mrb[48].mxu1  ;;  %v584_v36 = vpop.f32.mrb[49].mxu0 }
 0x13b   :  { %v2283_v30 = vpack.c.bf16 %v836_v22, %v836_v22  ;;  %v1658_v31 = vmax.f32 %v1594_v23, 0.0  ;;  %1980 = vst.msk [vmem:[%s3627_s8 + $0xb8] sm:$0xf] %vm1933_vm2, %v2346_v24  ;;  %v1528_v41 = vmul.f32 %v3348_v58, %v2548_v33  ;;  %v702_v42 = vmul.f32 %v3334_v37, %v584_v36  ;;  %v1408_v43 = vpop.f32.mrb[49].mxu1  ;;  %v2483_v34 = vpop.f32.mrb[50].mxu0 }
 0x13c   :  { %1154 = vst.msk [vmem:[%s3626_s7 + $0xb0] sm:$0xf] %vm1109_vm1, %v2280_v25  ;;  %v2347_v38 = vpack.c.bf16 %v1660_v26, %v1660_v26  ;;  %v2281_v39 = vpack.c.bf16 %v834_v27, %v834_v27  ;;  %v775_v45 = vadd.f32 %v3363_v0, %v704_v32  ;;  %v1526_v46 = vmul.f32 %v3348_v58, %v1408_v43  ;;  %v2549_v48 = vpop.f32.mrb[50].mxu1  ;;  %v587_v49 = vpop.f32.mrb[51].mxu0 }
 0x13d   :  { %1978 = vst.msk [vmem:[%s3627_s8 + $0xb0] sm:$0xf] %vm1933_vm2, %v2344_v29  ;;  %v2345_v44 = vpack.c.bf16 %v1658_v31, %v1658_v31  ;;  %v705_v47 = vmul.f32 %v3334_v37, %v2483_v34  ;;  %v1599_v50 = vadd.f32 %v3379_v6, %v1528_v41  ;;  %v773_v51 = vadd.f32 %v3363_v0, %v702_v42  ;;  %v1411_v53 = vpop.f32.mrb[51].mxu1 }
 0x13e   :  { %1157 = vst.msk [vmem:[%s3626_s7 + $0xbc] sm:$0xf] %vm1109_vm1, %v2283_v30  ;;  %1155 = vst.msk [vmem:[%s3626_s7 + $0xb4] sm:$0xf] %vm1109_vm1, %v2281_v39  ;;  %v1529_v35 = vmul.f32 %v3348_v58, %v2549_v48  ;;  %v703_v52 = vmul.f32 %v3334_v37, %v587_v49  ;;  %v839_v40 = vmax.f32 %v775_v45, 0.0  ;;  %v1597_v54 = vadd.f32 %v3379_v6, %v1526_v46 }
 0x13f   :  { %1981 = vst.msk [vmem:[%s3627_s8 + $0xbc] sm:$0xf] %vm1933_vm2, %v2347_v38  ;;  %1979 = vst.msk [vmem:[%s3627_s8 + $0xb4] sm:$0xf] %vm1933_vm2, %v2345_v44  ;;  %v776_v55 = vadd.f32 %v3363_v0, %v705_v47  ;;  %v1527_v56 = vmul.f32 %v3348_v58, %v1411_v53  ;;  %v1663_v57 = vmax.f32 %v1599_v50, 0.0  ;;  %v837_v59 = vmax.f32 %v773_v51, 0.0 }
 0x140   :  { %v1600_v60 = vadd.f32 %v3379_v6, %v1529_v35  ;;  %v774_v61 = vadd.f32 %v3363_v0, %v703_v52  ;;  %v2286_v62 = vpack.c.bf16 %v839_v40, %v839_v40  ;;  %v1661_v63 = vmax.f32 %v1597_v54, 0.0 }
 0x141   :  { %v840_v1 = vmax.f32 %v776_v55, 0.0  ;;  %v1598_v2 = vadd.f32 %v3379_v6, %v1527_v56  ;;  %v2350_v3 = vpack.c.bf16 %v1663_v57, %v1663_v57  ;;  %v2284_v4 = vpack.c.bf16 %v837_v59, %v837_v59  ;;  %v2486_v8 = vpop.f32.mrb[52].mxu0 }
 0x142   :  { %v1664_v5 = vmax.f32 %v1600_v60, 0.0  ;;  %v838_v7 = vmax.f32 %v774_v61, 0.0  ;;  %1160 = vst.msk [vmem:[%s3626_s7 + $0xc8] sm:$0xf] %vm1109_vm1, %v2286_v62  ;;  %v2348_v9 = vpack.c.bf16 %v1661_v63, %v1661_v63  ;;  %v708_v12 = vmul.f32 %v3334_v37, %v2486_v8  ;;  %v2552_v13 = vpop.f32.mrb[52].mxu1  ;;  %v600_v14 = vpop.f32.mrb[53].mxu0 }
 0x143   :  { %v2287_v10 = vpack.c.bf16 %v840_v1, %v840_v1  ;;  %v1662_v11 = vmax.f32 %v1598_v2, 0.0  ;;  %1984 = vst.msk [vmem:[%s3627_s8 + $0xc8] sm:$0xf] %vm1933_vm2, %v2350_v3  ;;  %v1532_v17 = vmul.f32 %v3348_v58, %v2552_v13  ;;  %v706_v18 = vmul.f32 %v3334_v37, %v600_v14  ;;  %v1424_v19 = vpop.f32.mrb[53].mxu1  ;;  %v2487_v20 = vpop.f32.mrb[54].mxu0 }
 0x144   :  { %1158 = vst.msk [vmem:[%s3626_s7 + $0xc0] sm:$0xf] %vm1109_vm1, %v2284_v4  ;;  %v2351_v15 = vpack.c.bf16 %v1664_v5, %v1664_v5  ;;  %v2285_v16 = vpack.c.bf16 %v838_v7, %v838_v7  ;;  %v779_v22 = vadd.f32 %v3363_v0, %v708_v12  ;;  %v1530_v23 = vmul.f32 %v3348_v58, %v1424_v19  ;;  %v2553_v25 = vpop.f32.mrb[54].mxu1  ;;  %v603_v26 = vpop.f32.mrb[55].mxu0 }
 0x145   :  { %1982 = vst.msk [vmem:[%s3627_s8 + $0xc0] sm:$0xf] %vm1933_vm2, %v2348_v9  ;;  %v2349_v21 = vpack.c.bf16 %v1662_v11, %v1662_v11  ;;  %v709_v24 = vmul.f32 %v3334_v37, %v2487_v20  ;;  %v1603_v27 = vadd.f32 %v3379_v6, %v1532_v17  ;;  %v777_v28 = vadd.f32 %v3363_v0, %v706_v18  ;;  %v1427_v31 = vpop.f32.mrb[55].mxu1 }
 0x146   :  { %1161 = vst.msk [vmem:[%s3626_s7 + $0xcc] sm:$0xf] %vm1109_vm1, %v2287_v10  ;;  %1159 = vst.msk [vmem:[%s3626_s7 + $0xc4] sm:$0xf] %vm1109_vm1, %v2285_v16  ;;  %v1533_v29 = vmul.f32 %v3348_v58, %v2553_v25  ;;  %v707_v30 = vmul.f32 %v3334_v37, %v603_v26  ;;  %v843_v32 = vmax.f32 %v779_v22, 0.0  ;;  %v1601_v33 = vadd.f32 %v3379_v6, %v1530_v23 }
 0x147   :  { %1985 = vst.msk [vmem:[%s3627_s8 + $0xcc] sm:$0xf] %vm1933_vm2, %v2351_v15  ;;  %1983 = vst.msk [vmem:[%s3627_s8 + $0xc4] sm:$0xf] %vm1933_vm2, %v2349_v21  ;;  %v780_v36 = vadd.f32 %v3363_v0, %v709_v24  ;;  %v1531_v38 = vmul.f32 %v3348_v58, %v1427_v31  ;;  %v1667_v39 = vmax.f32 %v1603_v27, 0.0  ;;  %v841_v41 = vmax.f32 %v777_v28, 0.0 }
 0x148   :  { %v1604_v42 = vadd.f32 %v3379_v6, %v1533_v29  ;;  %v778_v43 = vadd.f32 %v3363_v0, %v707_v30  ;;  %v2290_v34 = vpack.c.bf16 %v843_v32, %v843_v32  ;;  %v1665_v44 = vmax.f32 %v1601_v33, 0.0 }
 0x149   :  { %v844_v45 = vmax.f32 %v780_v36, 0.0  ;;  %v1602_v46 = vadd.f32 %v3379_v6, %v1531_v38  ;;  %v2354_v47 = vpack.c.bf16 %v1667_v39, %v1667_v39  ;;  %v2288_v48 = vpack.c.bf16 %v841_v41, %v841_v41  ;;  %v2490_v51 = vpop.f32.mrb[56].mxu0 }
 0x14a   :  { %v1668_v49 = vmax.f32 %v1604_v42, 0.0  ;;  %v842_v50 = vmax.f32 %v778_v43, 0.0  ;;  %1164 = vst.msk [vmem:[%s3626_s7 + $0xd8] sm:$0xf] %vm1109_vm1, %v2290_v34  ;;  %v2352_v35 = vpack.c.bf16 %v1665_v44, %v1665_v44  ;;  %v712_v40 = vmul.f32 %v3334_v37, %v2490_v51  ;;  %v2556_v54 = vpop.f32.mrb[56].mxu1  ;;  %v616_v55 = vpop.f32.mrb[57].mxu0 }
 0x14b   :  { %v2291_v52 = vpack.c.bf16 %v844_v45, %v844_v45  ;;  %v1666_v53 = vmax.f32 %v1602_v46, 0.0  ;;  %1988 = vst.msk [vmem:[%s3627_s8 + $0xd8] sm:$0xf] %vm1933_vm2, %v2354_v47  ;;  %v1536_v59 = vmul.f32 %v3348_v58, %v2556_v54  ;;  %v710_v60 = vmul.f32 %v3334_v37, %v616_v55  ;;  %v1440_v61 = vpop.f32.mrb[57].mxu1  ;;  %v2491_v62 = vpop.f32.mrb[58].mxu0 }
 0x14c   :  { %1162 = vst.msk [vmem:[%s3626_s7 + $0xd0] sm:$0xf] %vm1109_vm1, %v2288_v48  ;;  %v2355_v56 = vpack.c.bf16 %v1668_v49, %v1668_v49  ;;  %v2289_v57 = vpack.c.bf16 %v842_v50, %v842_v50  ;;  %v783_v1 = vadd.f32 %v3363_v0, %v712_v40  ;;  %v1534_v2 = vmul.f32 %v3348_v58, %v1440_v61  ;;  %v2557_v4 = vpop.f32.mrb[58].mxu1  ;;  %v619_v5 = vpop.f32.mrb[59].mxu0 }
 0x14d   :  { %1986 = vst.msk [vmem:[%s3627_s8 + $0xd0] sm:$0xf] %vm1933_vm2, %v2352_v35  ;;  %v2353_v63 = vpack.c.bf16 %v1666_v53, %v1666_v53  ;;  %v713_v3 = vmul.f32 %v3334_v37, %v2491_v62  ;;  %v1607_v7 = vadd.f32 %v3379_v6, %v1536_v59  ;;  %v781_v8 = vadd.f32 %v3363_v0, %v710_v60  ;;  %v1443_v11 = vpop.f32.mrb[59].mxu1 }
 0x14e   :  { %1165 = vst.msk [vmem:[%s3626_s7 + $0xdc] sm:$0xf] %vm1109_vm1, %v2291_v52  ;;  %1163 = vst.msk [vmem:[%s3626_s7 + $0xd4] sm:$0xf] %vm1109_vm1, %v2289_v57  ;;  %v1537_v9 = vmul.f32 %v3348_v58, %v2557_v4  ;;  %v711_v10 = vmul.f32 %v3334_v37, %v619_v5  ;;  %v847_v12 = vmax.f32 %v783_v1, 0.0  ;;  %v1605_v13 = vadd.f32 %v3379_v6, %v1534_v2 }
 0x14f   :  { %1989 = vst.msk [vmem:[%s3627_s8 + $0xdc] sm:$0xf] %vm1933_vm2, %v2355_v56  ;;  %1987 = vst.msk [vmem:[%s3627_s8 + $0xd4] sm:$0xf] %vm1933_vm2, %v2353_v63  ;;  %v784_v14 = vadd.f32 %v3363_v0, %v713_v3  ;;  %v1535_v15 = vmul.f32 %v3348_v58, %v1443_v11  ;;  %v1671_v16 = vmax.f32 %v1607_v7, 0.0  ;;  %v845_v17 = vmax.f32 %v781_v8, 0.0 }
 0x150   :  { %v1608_v18 = vadd.f32 %v3379_v6, %v1537_v9  ;;  %v782_v19 = vadd.f32 %v3363_v0, %v711_v10  ;;  %v2294_v20 = vpack.c.bf16 %v847_v12, %v847_v12  ;;  %v1669_v21 = vmax.f32 %v1605_v13, 0.0 }
 0x151   :  { %v848_v22 = vmax.f32 %v784_v14, 0.0  ;;  %v1606_v23 = vadd.f32 %v3379_v6, %v1535_v15  ;;  %v2358_v24 = vpack.c.bf16 %v1671_v16, %v1671_v16  ;;  %v2292_v25 = vpack.c.bf16 %v845_v17, %v845_v17  ;;  %v2494_v28 = vpop.f32.mrb[60].mxu0 }
 0x152   :  { %v1672_v26 = vmax.f32 %v1608_v18, 0.0  ;;  %v846_v27 = vmax.f32 %v782_v19, 0.0  ;;  %1168 = vst.msk [vmem:[%s3626_s7 + $0xe8] sm:$0xf] %vm1109_vm1, %v2294_v20  ;;  %v2356_v29 = vpack.c.bf16 %v1669_v21, %v1669_v21  ;;  %v716_v32 = vmul.f32 %v3334_v37, %v2494_v28  ;;  %v2560_v33 = vpop.f32.mrb[60].mxu1  ;;  %v632_v36 = vpop.f32.mrb[61].mxu0 }
 0x153   :  { %v2295_v30 = vpack.c.bf16 %v848_v22, %v848_v22  ;;  %v1670_v31 = vmax.f32 %v1606_v23, 0.0  ;;  %1992 = vst.msk [vmem:[%s3627_s8 + $0xe8] sm:$0xf] %vm1933_vm2, %v2358_v24  ;;  %v1540_v41 = vmul.f32 %v3348_v58, %v2560_v33  ;;  %v714_v42 = vmul.f32 %v3334_v37, %v632_v36  ;;  %v1456_v43 = vpop.f32.mrb[61].mxu1  ;;  %v2495_v34 = vpop.f32.mrb[62].mxu0 }
 0x154   :  { %1166 = vst.msk [vmem:[%s3626_s7 + $0xe0] sm:$0xf] %vm1109_vm1, %v2292_v25  ;;  %v2359_v38 = vpack.c.bf16 %v1672_v26, %v1672_v26  ;;  %v2293_v39 = vpack.c.bf16 %v846_v27, %v846_v27  ;;  %v787_v45 = vadd.f32 %v3363_v0, %v716_v32  ;;  %v1538_v46 = vmul.f32 %v3348_v58, %v1456_v43  ;;  %v2561_v48 = vpop.f32.mrb[62].mxu1  ;;  %v635_v49 = vpop.f32.mrb[63].mxu0 }
 0x155   :  { %1990 = vst.msk [vmem:[%s3627_s8 + $0xe0] sm:$0xf] %vm1933_vm2, %v2356_v29  ;;  %v2357_v44 = vpack.c.bf16 %v1670_v31, %v1670_v31  ;;  %v717_v47 = vmul.f32 %v3334_v37, %v2495_v34  ;;  %v1611_v50 = vadd.f32 %v3379_v6, %v1540_v41  ;;  %v785_v51 = vadd.f32 %v3363_v0, %v714_v42  ;;  %v1459_v53 = vpop.f32.mrb[63].mxu1 }
 0x156   :  { %1169 = vst.msk [vmem:[%s3626_s7 + $0xec] sm:$0xf] %vm1109_vm1, %v2295_v30  ;;  %1167 = vst.msk [vmem:[%s3626_s7 + $0xe4] sm:$0xf] %vm1109_vm1, %v2293_v39  ;;  %v1541_v35 = vmul.f32 %v3348_v58, %v2561_v48  ;;  %v715_v52 = vmul.f32 %v3334_v37, %v635_v49  ;;  %v851_v40 = vmax.f32 %v787_v45, 0.0  ;;  %v1609_v54 = vadd.f32 %v3379_v6, %v1538_v46 }
 0x157   :  { %1993 = vst.msk [vmem:[%s3627_s8 + $0xec] sm:$0xf] %vm1933_vm2, %v2359_v38  ;;  %1991 = vst.msk [vmem:[%s3627_s8 + $0xe4] sm:$0xf] %vm1933_vm2, %v2357_v44  ;;  %v788_v55 = vadd.f32 %v3363_v0, %v717_v47  ;;  %v1539_v56 = vmul.f32 %v3348_v58, %v1459_v53  ;;  %v1675_v57 = vmax.f32 %v1611_v50, 0.0  ;;  %v849_v59 = vmax.f32 %v785_v51, 0.0 }
 0x158   :  { %v1612_v60 = vadd.f32 %v3379_v6, %v1541_v35  ;;  %v786_v61 = vadd.f32 %v3363_v0, %v715_v52  ;;  %v2298_v37 = vpack.c.bf16 %v851_v40, %v851_v40  ;;  %v1673_v62 = vmax.f32 %v1609_v54, 0.0 }
 0x159   :  { %v852_v63 = vmax.f32 %v788_v55, 0.0  ;;  %v1610_v1 = vadd.f32 %v3379_v6, %v1539_v56  ;;  %v2362_v2 = vpack.c.bf16 %v1675_v57, %v1675_v57  ;;  %v2296_v3 = vpack.c.bf16 %v849_v59, %v849_v59 }
 0x15a   :  { %v1676_v4 = vmax.f32 %v1612_v60, 0.0  ;;  %v850_v5 = vmax.f32 %v786_v61, 0.0  ;;  %1172 = vst.msk [vmem:[%s3626_s7 + $0xf8] sm:$0xf] %vm1109_vm1, %v2298_v37  ;;  %v2360_v58 = vpack.c.bf16 %v1673_v62, %v1673_v62 }
 0x15b   :  { %v2299_v7 = vpack.c.bf16 %v852_v63, %v852_v63  ;;  %v1674_v8 = vmax.f32 %v1610_v1, 0.0  ;;  %1996 = vst.msk [vmem:[%s3627_s8 + $0xf8] sm:$0xf] %vm1933_vm2, %v2362_v2 }
 0x15c   :  { %1170 = vst.msk [vmem:[%s3626_s7 + $0xf0] sm:$0xf] %vm1109_vm1, %v2296_v3  ;;  %v2363_v0 = vpack.c.bf16 %v1676_v4, %v1676_v4  ;;  %v2297_v6 = vpack.c.bf16 %v850_v5, %v850_v5 }
 0x15d   :  { %1994 = vst.msk [vmem:[%s3627_s8 + $0xf0] sm:$0xf] %vm1933_vm2, %v2360_v58  ;;  %v2361_v9 = vpack.c.bf16 %v1674_v8, %v1674_v8 }
 0x15e   :  { %1173 = vst.msk [vmem:[%s3626_s7 + $0xfc] sm:$0xf] %vm1109_vm1, %v2299_v7  ;;  %1171 = vst.msk [vmem:[%s3626_s7 + $0xf4] sm:$0xf] %vm1109_vm1, %v2297_v6 }
 0x15f   :  { %1997 = vst.msk [vmem:[%s3627_s8 + $0xfc] sm:$0xf] %vm1933_vm2, %v2363_v0  ;;  %1995 = vst.msk [vmem:[%s3627_s8 + $0xf4] sm:$0xf] %vm1933_vm2, %v2361_v9 }

// kernel: aligned_bottleneck_pallas.9
= control target key start
LH: loop header
LB: loop body
LE: loop exit
PB: predicated region body
PF: predicated region fallthrough
CT: control target
= control target key end

     0   :  { %vm414_vm0 = vcmask 1040384   ;;  %vm964_vm1 = vcmask 1041408   ;;  %vm317_vm2 = vcmask 15360   ;;  %vm867_vm3 = vcmask 31744   ;;  %s2998_s3 = inlined_call_operand.vmem [shape: bf16[2,16], index: 3, kind: input, shape index: {}]   ;;  %s2999_s2 = inlined_call_operand.vmem [shape: bf16[4,16], index: 2, kind: input, shape index: {}]   ;;  %s3000_s1 = inlined_call_operand.vmem [shape: bf16[512,2], index: 1, kind: input, shape index: {}]   ;;  %s3001_s0 = inlined_call_operand.vmem [shape: bf16[512,4], index: 0, kind: input, shape index: {}]   ;;  %s3002_s4 = inlined_call_operand.vmem [shape: f32[1,16], index: 4, kind: input, shape index: {}]   ;;  %s3003_s5 = inlined_call_operand.vmem [shape: f32[1,16], index: 5, kind: input, shape index: {}]   ;;  %s3004_s6 = inlined_call_operand.vmem [shape: f32[512,16], index: 6, kind: input, shape index: {}]   ;;  %s3005_s7 = inlined_call_operand.vmem [shape: f32[512,16], index: 7, kind: output, shape index: {}]  }
   0x1   :  { %v156_v0 = vld [vmem:[%s2998_s3] sm:$0x1]  ;;  %v2056_v6 = vld [vmem:[%s3000_s1 + $0x8] sm:$0xff]   ;;  %v2058_v8 = vld [vmem:[%s3000_s1 + $0x10] sm:$0xff]   ;;  %vm1591_vm4 = vcmask 130048  }
   0x2   :  { %v91_v1 = vld [vmem:[%s2999_s2] sm:$0x3]  ;;  %2052 = vmatprep.subr.msk.bf16.mxu1 %vm414_vm0, %v156_v0  ;;  %v416_v2 = vsel %vm414_vm0, %v156_v0, 0  ;;  %v2057_v7 = vld [vmem:[%s3001_s0 + $0x8] sm:$0xff]   ;;  %v2059_v9 = vld [vmem:[%s3001_s0 + $0x10] sm:$0xff]  }
   0x3   :  { %2053 = vmatprep.subr.msk.bf16.mxu0 %vm964_vm1, %v91_v1  ;;  %v966_v3 = vsel %vm964_vm1, %v91_v1, 0  ;;  %v2054_v4 = vld [vmem:[%s3000_s1] sm:$0xff]   ;;  %1857 = vmatpush3.bf16.msra.mxu1 %v416_v2  ;;  %v2060_v10 = vld [vmem:[%s3000_s1 + $0x18] sm:$0xff]   ;;  %v2064_v14 = vld [vmem:[%s3000_s1 + $0x28] sm:$0xff]  }
   0x4   :  { %v2055_v5 = vld [vmem:[%s3001_s0] sm:$0xff]   ;;  %1923 = vmatpush3.bf16.msra.mxu0 %v966_v3  ;;  %1858 = vmatprep.mubr.msk.bf16.mxu1 %vm317_vm2, %v2054_v4  ;;  %v2061_v11 = vld [vmem:[%s3001_s0 + $0x18] sm:$0xff]   ;;  %v2065_v15 = vld [vmem:[%s3001_s0 + $0x28] sm:$0xff]  }
   0x5   :  { %1924 = vmatprep.mubr.msk.bf16.mxu0 %vm867_vm3, %v2055_v5  ;;  %v2062_v12 = vld [vmem:[%s3000_s1 + $0x20] sm:$0xff]   ;;  %v2066_v16 = vld [vmem:[%s3000_s1 + $0x30] sm:$0xff]   ;;  %v2068_v18 = vld [vmem:[%s3000_s1 + $0x38] sm:$0xff]  }
   0x6   :  { %1859 = vmatmul.mubr.msk.bf16.vlgmr.msra.gmra.mrb[0].mxu1 %vm317_vm2, %v2056_v6  ;;  %v2063_v13 = vld [vmem:[%s3001_s0 + $0x20] sm:$0xff]   ;;  %v2067_v17 = vld [vmem:[%s3001_s0 + $0x30] sm:$0xff]   ;;  %v2069_v19 = vld [vmem:[%s3001_s0 + $0x38] sm:$0xff]  }
   0x7   :  { %1925 = vmatmul.mubr.msk.bf16.vlgmr.msra.gmra.mrb[0].mxu0 %vm867_vm3, %v2057_v7  ;;  %1862 = vmatprep.mubr.msk.bf16.mxu1 %vm317_vm2, %v2058_v8  ;;  %v2070_v20 = vld [vmem:[%s3000_s1 + $0x40] sm:$0xff]   ;;  %v2072_v22 = vld [vmem:[%s3000_s1 + $0x48] sm:$0xff]   ;;  %v2074_v24 = vld [vmem:[%s3000_s1 + $0x50] sm:$0xff]  }
   0x8   :  { %1928 = vmatprep.mubr.msk.bf16.mxu0 %vm867_vm3, %v2059_v9  ;;  %v2071_v21 = vld [vmem:[%s3001_s0 + $0x40] sm:$0xff]   ;;  %v2073_v23 = vld [vmem:[%s3001_s0 + $0x48] sm:$0xff]   ;;  %v2075_v25 = vld [vmem:[%s3001_s0 + $0x50] sm:$0xff]  }
   0x9   :  { %v2076_v26 = vld [vmem:[%s3000_s1 + $0x58] sm:$0xff]   ;;  %v2078_v28 = vld [vmem:[%s3000_s1 + $0x60] sm:$0xff]   ;;  %v2080_v30 = vld [vmem:[%s3000_s1 + $0x68] sm:$0xff]  }
   0xa   :  { %v2077_v27 = vld [vmem:[%s3001_s0 + $0x58] sm:$0xff]   ;;  %v2079_v29 = vld [vmem:[%s3001_s0 + $0x60] sm:$0xff]   ;;  %v2081_v31 = vld [vmem:[%s3001_s0 + $0x68] sm:$0xff]  }
   0xb   :  { %v2082_v32 = vld [vmem:[%s3000_s1 + $0x70] sm:$0xff]   ;;  %v2084_v34 = vld [vmem:[%s3000_s1 + $0x78] sm:$0xff]   ;;  %v2086_v36 = vld [vmem:[%s3000_s1 + $0x80] sm:$0xff]  }
   0xc   :  { %v2083_v33 = vld [vmem:[%s3001_s0 + $0x70] sm:$0xff]   ;;  %v2085_v35 = vld [vmem:[%s3001_s0 + $0x78] sm:$0xff]   ;;  %v2087_v37 = vld [vmem:[%s3001_s0 + $0x80] sm:$0xff]  }
   0xd   :  { %v2088_v38 = vld [vmem:[%s3000_s1 + $0x88] sm:$0xff]   ;;  %v2090_v40 = vld [vmem:[%s3000_s1 + $0x90] sm:$0xff]   ;;  %v2092_v42 = vld [vmem:[%s3000_s1 + $0x98] sm:$0xff]  }
   0xe   :  { %1863 = vmatmul.mubr.msk.bf16.gmra.mrb[4].mxu1 %vm317_vm2, %v2060_v10  ;;  %v2089_v39 = vld [vmem:[%s3001_s0 + $0x88] sm:$0xff]   ;;  %v2091_v41 = vld [vmem:[%s3001_s0 + $0x90] sm:$0xff]   ;;  %v2093_v43 = vld [vmem:[%s3001_s0 + $0x98] sm:$0xff]  }
   0xf   :  { %1929 = vmatmul.mubr.msk.bf16.gmra.mrb[4].mxu0 %vm867_vm3, %v2061_v11  ;;  %1866 = vmatprep.mubr.msk.bf16.mxu1 %vm317_vm2, %v2062_v12  ;;  %v2094_v44 = vld [vmem:[%s3000_s1 + $0xa0] sm:$0xff]   ;;  %v2096_v46 = vld [vmem:[%s3000_s1 + $0xa8] sm:$0xff]   ;;  %v2098_v48 = vld [vmem:[%s3000_s1 + $0xb0] sm:$0xff]  }
  0x10   :  { %1932 = vmatprep.mubr.msk.bf16.mxu0 %vm867_vm3, %v2063_v13  ;;  %v2095_v45 = vld [vmem:[%s3001_s0 + $0xa0] sm:$0xff]   ;;  %v2097_v47 = vld [vmem:[%s3001_s0 + $0xa8] sm:$0xff]   ;;  %v2099_v49 = vld [vmem:[%s3001_s0 + $0xb0] sm:$0xff]  }
  0x11   :  { %v2100_v50 = vld [vmem:[%s3000_s1 + $0xb8] sm:$0xff]   ;;  %v2102_v52 = vld [vmem:[%s3000_s1 + $0xc0] sm:$0xff]   ;;  %v2104_v54 = vld [vmem:[%s3000_s1 + $0xc8] sm:$0xff]  }
  0x12   :  { %v2101_v51 = vld [vmem:[%s3001_s0 + $0xb8] sm:$0xff]   ;;  %v2103_v53 = vld [vmem:[%s3001_s0 + $0xc0] sm:$0xff]   ;;  %v2105_v55 = vld [vmem:[%s3001_s0 + $0xc8] sm:$0xff]  }
  0x13   :  { %v2106_v56 = vld [vmem:[%s3000_s1 + $0xd0] sm:$0xff]   ;;  %v2108_v58 = vld [vmem:[%s3000_s1 + $0xd8] sm:$0xff]   ;;  %v2110_v60 = vld [vmem:[%s3000_s1 + $0xe0] sm:$0xff]  }
  0x14   :  { %v2107_v57 = vld [vmem:[%s3001_s0 + $0xd0] sm:$0xff]   ;;  %v2109_v59 = vld [vmem:[%s3001_s0 + $0xd8] sm:$0xff]   ;;  %v2111_v61 = vld [vmem:[%s3001_s0 + $0xe0] sm:$0xff]  }
  0x15   :  { %v2112_v62 = vld [vmem:[%s3000_s1 + $0xe8] sm:$0xff]   ;;  %v2114_v0 = vld [vmem:[%s3000_s1 + $0xf0] sm:$0xff]   ;;  %v2116_v2 = vld [vmem:[%s3000_s1 + $0xf8] sm:$0xff]  }
  0x16   :  { %1867 = vmatmul.mubr.msk.bf16.gmra.mrb[8].mxu1 %vm317_vm2, %v2064_v14  ;;  %v2113_v63 = vld [vmem:[%s3001_s0 + $0xe8] sm:$0xff]   ;;  %v2115_v1 = vld [vmem:[%s3001_s0 + $0xf0] sm:$0xff]   ;;  %v2117_v3 = vld [vmem:[%s3001_s0 + $0xf8] sm:$0xff]  }
  0x17   :  { %1933 = vmatmul.mubr.msk.bf16.gmra.mrb[8].mxu0 %vm867_vm3, %v2065_v15  ;;  %1870 = vmatprep.mubr.msk.bf16.mxu1 %vm317_vm2, %v2066_v16  ;;  %v2425_v6 = vld [vmem:[%s3002_s4] ss:$0 sm:$0xff] }
  0x18   :  { %1936 = vmatprep.mubr.msk.bf16.mxu0 %vm867_vm3, %v2067_v17  ;;  %v2430_v11 = vld [vmem:[%s3003_s5] ss:$0 sm:$0xff] }
  0x1e   :  { %1871 = vmatmul.mubr.msk.bf16.gmra.mrb[12].mxu1 %vm317_vm2, %v2068_v18  ;;  %v1401_v18 = vld [vmem:[%s3004_s6 + $0x10] sm:$0xff] }
  0x1f   :  { %1937 = vmatmul.mubr.msk.bf16.gmra.mrb[12].mxu0 %vm867_vm3, %v2069_v19  ;;  %1874 = vmatprep.mubr.msk.bf16.mxu1 %vm317_vm2, %v2070_v20 }
  0x20   :  { %1940 = vmatprep.mubr.msk.bf16.mxu0 %vm867_vm3, %v2071_v21 }
  0x26   :  { %1875 = vmatmul.mubr.msk.bf16.gmra.mrb[16].mxu1 %vm317_vm2, %v2072_v22  ;;  %v1399_v22 = vld [vmem:[%s3004_s6] sm:$0xff] }
  0x27   :  { %1941 = vmatmul.mubr.msk.bf16.gmra.mrb[16].mxu0 %vm867_vm3, %v2073_v23  ;;  %1878 = vmatprep.mubr.msk.bf16.mxu1 %vm317_vm2, %v2074_v24 }
  0x28   :  { %1944 = vmatprep.mubr.msk.bf16.mxu0 %vm867_vm3, %v2075_v25  ;;  %v1402_v25 = vld [vmem:[%s3004_s6 + $0x18] sm:$0xff] }
  0x2e   :  { %1879 = vmatmul.mubr.msk.bf16.gmra.mrb[20].mxu1 %vm317_vm2, %v2076_v26 }
  0x2f   :  { %1945 = vmatmul.mubr.msk.bf16.gmra.mrb[20].mxu0 %vm867_vm3, %v2077_v27  ;;  %1882 = vmatprep.mubr.msk.bf16.mxu1 %vm317_vm2, %v2078_v28 }
  0x30   :  { %1948 = vmatprep.mubr.msk.bf16.mxu0 %vm867_vm3, %v2079_v29  ;;  %v1400_v29 = vld [vmem:[%s3004_s6 + $0x8] sm:$0xff] }
  0x36   :  { %1883 = vmatmul.mubr.msk.bf16.gmra.mrb[24].mxu1 %vm317_vm2, %v2080_v30 }
  0x37   :  { %1949 = vmatmul.mubr.msk.bf16.gmra.mrb[24].mxu0 %vm867_vm3, %v2081_v31  ;;  %1886 = vmatprep.mubr.msk.bf16.mxu1 %vm317_vm2, %v2082_v32 }
  0x38   :  { %1952 = vmatprep.mubr.msk.bf16.mxu0 %vm867_vm3, %v2083_v33 }
  0x3e   :  { %1887 = vmatmul.mubr.msk.bf16.gmra.mrb[28].mxu1 %vm317_vm2, %v2084_v34 }
  0x3f   :  { %1953 = vmatmul.mubr.msk.bf16.gmra.mrb[28].mxu0 %vm867_vm3, %v2085_v35  ;;  %1890 = vmatprep.mubr.msk.bf16.mxu1 %vm317_vm2, %v2086_v36 }
  0x40   :  { %1956 = vmatprep.mubr.msk.bf16.mxu0 %vm867_vm3, %v2087_v37 }
  0x46   :  { %1891 = vmatmul.mubr.msk.bf16.gmra.mrb[32].mxu1 %vm317_vm2, %v2088_v38 }
  0x47   :  { %1957 = vmatmul.mubr.msk.bf16.gmra.mrb[32].mxu0 %vm867_vm3, %v2089_v39  ;;  %1894 = vmatprep.mubr.msk.bf16.mxu1 %vm317_vm2, %v2090_v40 }
  0x48   :  { %1960 = vmatprep.mubr.msk.bf16.mxu0 %vm867_vm3, %v2091_v41 }
  0x4e   :  { %1895 = vmatmul.mubr.msk.bf16.gmra.mrb[36].mxu1 %vm317_vm2, %v2092_v42 }
  0x4f   :  { %1961 = vmatmul.mubr.msk.bf16.gmra.mrb[36].mxu0 %vm867_vm3, %v2093_v43  ;;  %1898 = vmatprep.mubr.msk.bf16.mxu1 %vm317_vm2, %v2094_v44 }
  0x50   :  { %1964 = vmatprep.mubr.msk.bf16.mxu0 %vm867_vm3, %v2095_v45 }
  0x56   :  { %1899 = vmatmul.mubr.msk.bf16.gmra.mrb[40].mxu1 %vm317_vm2, %v2096_v46 }
  0x57   :  { %1965 = vmatmul.mubr.msk.bf16.gmra.mrb[40].mxu0 %vm867_vm3, %v2097_v47  ;;  %1902 = vmatprep.mubr.msk.bf16.mxu1 %vm317_vm2, %v2098_v48 }
  0x58   :  { %1968 = vmatprep.mubr.msk.bf16.mxu0 %vm867_vm3, %v2099_v49 }
  0x5e   :  { %1903 = vmatmul.mubr.msk.bf16.gmra.mrb[44].mxu1 %vm317_vm2, %v2100_v50  ;;  %v1405_v50 = vld [vmem:[%s3004_s6 + $0x30] sm:$0xff] }
  0x5f   :  { %1969 = vmatmul.mubr.msk.bf16.gmra.mrb[44].mxu0 %vm867_vm3, %v2101_v51  ;;  %1906 = vmatprep.mubr.msk.bf16.mxu1 %vm317_vm2, %v2102_v52 }
  0x60   :  { %1972 = vmatprep.mubr.msk.bf16.mxu0 %vm867_vm3, %v2103_v53 }
  0x66   :  { %1907 = vmatmul.mubr.msk.bf16.gmra.mrb[48].mxu1 %vm317_vm2, %v2104_v54  ;;  %v1403_v54 = vld [vmem:[%s3004_s6 + $0x20] sm:$0xff] }
  0x67   :  { %1973 = vmatmul.mubr.msk.bf16.gmra.mrb[48].mxu0 %vm867_vm3, %v2105_v55  ;;  %1910 = vmatprep.mubr.msk.bf16.mxu1 %vm317_vm2, %v2106_v56 }
  0x68   :  { %1976 = vmatprep.mubr.msk.bf16.mxu0 %vm867_vm3, %v2107_v57  ;;  %v1406_v57 = vld [vmem:[%s3004_s6 + $0x38] sm:$0xff] }
  0x6e   :  { %1911 = vmatmul.mubr.msk.bf16.gmra.mrb[52].mxu1 %vm317_vm2, %v2108_v58 }
  0x6f   :  { %1977 = vmatmul.mubr.msk.bf16.gmra.mrb[52].mxu0 %vm867_vm3, %v2109_v59  ;;  %1914 = vmatprep.mubr.msk.bf16.mxu1 %vm317_vm2, %v2110_v60 }
  0x70   :  { %1980 = vmatprep.mubr.msk.bf16.mxu0 %vm867_vm3, %v2111_v61  ;;  %v1404_v61 = vld [vmem:[%s3004_s6 + $0x28] sm:$0xff] }
  0x76   :  { %1915 = vmatmul.mubr.msk.bf16.gmra.mrb[56].mxu1 %vm317_vm2, %v2112_v62 }
  0x77   :  { %1981 = vmatmul.mubr.msk.bf16.gmra.mrb[56].mxu0 %vm867_vm3, %v2113_v63  ;;  %1918 = vmatprep.mubr.msk.bf16.mxu1 %vm317_vm2, %v2114_v0 }
  0x78   :  { %1984 = vmatprep.mubr.msk.bf16.mxu0 %vm867_vm3, %v2115_v1 }
  0x7e   :  { %1919 = vmatmul.mubr.msk.bf16.gmra.mrb[60].mxu1 %vm317_vm2, %v2116_v2 }
  0x7f   :  { %1985 = vmatmul.mubr.msk.bf16.gmra.mrb[60].mxu0 %vm867_vm3, %v2117_v3 }
  0xd9   :  { %v1860_v4 = vpop.f32.mrb[0].mxu1 }
  0xda   :  { %v1926_v5 = vpop.f32.mrb[0].mxu0  ;;  %v452_v7 = vpop.f32.mrb[1].mxu1 }
  0xdb   :  { %v1011_v8 = vadd.f32 %v1926_v5, %v1860_v4  ;;  %v1002_v9 = vpop.f32.mrb[1].mxu0  ;;  %v1861_v10 = vpop.f32.mrb[2].mxu1 }
  0xdc   :  { %v1003_v12 = vadd.f32 %v1002_v9, %v452_v7  ;;  %v1927_v13 = vpop.f32.mrb[2].mxu0  ;;  %v455_v14 = vpop.f32.mrb[3].mxu1 }
  0xdd   :  { %v1266_v15 = vmul.f32 %v2425_v6, %v1011_v8  ;;  %v1014_v16 = vadd.f32 %v1927_v13, %v1861_v10  ;;  %v1005_v17 = vpop.f32.mrb[3].mxu0 }
  0xde   :  { %v1264_v19 = vmul.f32 %v2425_v6, %v1003_v12  ;;  %v1006_v20 = vadd.f32 %v1005_v17, %v455_v14 }
  0xdf   :  { %v1337_v21 = vadd.f32 %v2430_v11, %v1266_v15  ;;  %v1267_v23 = vmul.f32 %v2425_v6, %v1014_v16 }
  0xe0   :  { %v1335_v24 = vadd.f32 %v2430_v11, %v1264_v19  ;;  %v1265_v26 = vmul.f32 %v2425_v6, %v1006_v20  ;;  %v1409_v20 = vld [vmem:[%s3004_s6 + $0x50] sm:$0xff] }
  0xe1   :  { %v1465_v27 = vadd.f32 %v1401_v18, %v1337_v21  ;;  %v1338_v28 = vadd.f32 %v2430_v11, %v1267_v23  ;;  %v1864_v30 = vpop.f32.mrb[4].mxu1 }
  0xe2   :  { %v1463_v31 = vadd.f32 %v1399_v22, %v1335_v24  ;;  %v1336_v32 = vadd.f32 %v2430_v11, %v1265_v26  ;;  %v1930_v33 = vpop.f32.mrb[4].mxu0  ;;  %v468_v34 = vpop.f32.mrb[5].mxu1  ;;  %v1407_v24 = vld [vmem:[%s3004_s6 + $0x40] sm:$0xff] }
  0xe3   :  { %v1529_v35 = vmax.f32 %v1465_v27, 0.0  ;;  %v1466_v36 = vadd.f32 %v1402_v25, %v1338_v28  ;;  %v1027_v37 = vadd.f32 %v1930_v33, %v1864_v30  ;;  %v1018_v38 = vpop.f32.mrb[5].mxu0  ;;  %v1865_v39 = vpop.f32.mrb[6].mxu1  ;;  %v1410_v27 = vld [vmem:[%s3004_s6 + $0x58] sm:$0xff] }
  0xe4   :  { %v1527_v40 = vmax.f32 %v1463_v31, 0.0  ;;  %v1464_v41 = vadd.f32 %v1400_v29, %v1336_v32  ;;  %v1019_v42 = vadd.f32 %v1018_v38, %v468_v34  ;;  %v1931_v43 = vpop.f32.mrb[6].mxu0  ;;  %v471_v44 = vpop.f32.mrb[7].mxu1  ;;  %v1408_v31 = vld [vmem:[%s3004_s6 + $0x48] sm:$0xff] }
  0xe5   :  { %1594 = vst.msk [vmem:[%s3005_s7 + $0x10] sm:$0xff] %vm1591_vm4, %v1529_v35  ;;  %v1530_v45 = vmax.f32 %v1466_v36, 0.0  ;;  %v1270_v46 = vmul.f32 %v2425_v6, %v1027_v37  ;;  %v1030_v47 = vadd.f32 %v1931_v43, %v1865_v39  ;;  %v1021_v48 = vpop.f32.mrb[7].mxu0 }
  0xe6   :  { %1592 = vst.msk [vmem:[%s3005_s7] sm:$0xff] %vm1591_vm4, %v1527_v40  ;;  %v1528_v49 = vmax.f32 %v1464_v41, 0.0  ;;  %v1268_v51 = vmul.f32 %v2425_v6, %v1019_v42  ;;  %v1022_v52 = vadd.f32 %v1021_v48, %v471_v44 }
  0xe7   :  { %1595 = vst.msk [vmem:[%s3005_s7 + $0x18] sm:$0xff] %vm1591_vm4, %v1530_v45  ;;  %v1341_v53 = vadd.f32 %v2430_v11, %v1270_v46  ;;  %v1271_v55 = vmul.f32 %v2425_v6, %v1030_v47 }
  0xe8   :  { %1593 = vst.msk [vmem:[%s3005_s7 + $0x8] sm:$0xff] %vm1591_vm4, %v1528_v49  ;;  %v1339_v56 = vadd.f32 %v2430_v11, %v1268_v51  ;;  %v1269_v58 = vmul.f32 %v2425_v6, %v1022_v52  ;;  %v1413_v52 = vld [vmem:[%s3004_s6 + $0x70] sm:$0xff] }
  0xe9   :  { %v1469_v59 = vadd.f32 %v1405_v50, %v1341_v53  ;;  %v1342_v60 = vadd.f32 %v2430_v11, %v1271_v55  ;;  %v1868_v62 = vpop.f32.mrb[8].mxu1 }
  0xea   :  { %v1467_v63 = vadd.f32 %v1403_v54, %v1339_v56  ;;  %v1340_v0 = vadd.f32 %v2430_v11, %v1269_v58  ;;  %v1934_v1 = vpop.f32.mrb[8].mxu0  ;;  %v484_v2 = vpop.f32.mrb[9].mxu1  ;;  %v1411_v56 = vld [vmem:[%s3004_s6 + $0x60] sm:$0xff] }
  0xeb   :  { %v1533_v3 = vmax.f32 %v1469_v59, 0.0  ;;  %v1470_v4 = vadd.f32 %v1406_v57, %v1342_v60  ;;  %v1043_v5 = vadd.f32 %v1934_v1, %v1868_v62  ;;  %v1034_v7 = vpop.f32.mrb[9].mxu0  ;;  %v1869_v8 = vpop.f32.mrb[10].mxu1  ;;  %v1414_v59 = vld [vmem:[%s3004_s6 + $0x78] sm:$0xff] }
  0xec   :  { %v1531_v9 = vmax.f32 %v1467_v63, 0.0  ;;  %v1468_v10 = vadd.f32 %v1404_v61, %v1340_v0  ;;  %v1035_v12 = vadd.f32 %v1034_v7, %v484_v2  ;;  %v1935_v13 = vpop.f32.mrb[10].mxu0  ;;  %v487_v14 = vpop.f32.mrb[11].mxu1  ;;  %v1412_v63 = vld [vmem:[%s3004_s6 + $0x68] sm:$0xff] }
  0xed   :  { %1598 = vst.msk [vmem:[%s3005_s7 + $0x30] sm:$0xff] %vm1591_vm4, %v1533_v3  ;;  %v1534_v15 = vmax.f32 %v1470_v4, 0.0  ;;  %v1274_v16 = vmul.f32 %v2425_v6, %v1043_v5  ;;  %v1046_v17 = vadd.f32 %v1935_v13, %v1869_v8  ;;  %v1037_v18 = vpop.f32.mrb[11].mxu0 }
  0xee   :  { %1596 = vst.msk [vmem:[%s3005_s7 + $0x20] sm:$0xff] %vm1591_vm4, %v1531_v9  ;;  %v1532_v19 = vmax.f32 %v1468_v10, 0.0  ;;  %v1272_v21 = vmul.f32 %v2425_v6, %v1035_v12  ;;  %v1038_v22 = vadd.f32 %v1037_v18, %v487_v14 }
  0xef   :  { %1599 = vst.msk [vmem:[%s3005_s7 + $0x38] sm:$0xff] %vm1591_vm4, %v1534_v15  ;;  %v1345_v23 = vadd.f32 %v2430_v11, %v1274_v16  ;;  %v1275_v25 = vmul.f32 %v2425_v6, %v1046_v17 }
  0xf0   :  { %1597 = vst.msk [vmem:[%s3005_s7 + $0x28] sm:$0xff] %vm1591_vm4, %v1532_v19  ;;  %v1343_v26 = vadd.f32 %v2430_v11, %v1272_v21  ;;  %v1273_v28 = vmul.f32 %v2425_v6, %v1038_v22  ;;  %v1417_v22 = vld [vmem:[%s3004_s6 + $0x90] sm:$0xff] }
  0xf1   :  { %v1473_v29 = vadd.f32 %v1409_v20, %v1345_v23  ;;  %v1346_v30 = vadd.f32 %v2430_v11, %v1275_v25  ;;  %v1872_v32 = vpop.f32.mrb[12].mxu1 }
  0xf2   :  { %v1471_v33 = vadd.f32 %v1407_v24, %v1343_v26  ;;  %v1344_v34 = vadd.f32 %v2430_v11, %v1273_v28  ;;  %v1938_v35 = vpop.f32.mrb[12].mxu0  ;;  %v500_v36 = vpop.f32.mrb[13].mxu1  ;;  %v1415_v26 = vld [vmem:[%s3004_s6 + $0x80] sm:$0xff] }
  0xf3   :  { %v1537_v37 = vmax.f32 %v1473_v29, 0.0  ;;  %v1474_v38 = vadd.f32 %v1410_v27, %v1346_v30  ;;  %v1059_v39 = vadd.f32 %v1938_v35, %v1872_v32  ;;  %v1050_v40 = vpop.f32.mrb[13].mxu0  ;;  %v1873_v41 = vpop.f32.mrb[14].mxu1  ;;  %v1418_v29 = vld [vmem:[%s3004_s6 + $0x98] sm:$0xff] }
  0xf4   :  { %v1535_v42 = vmax.f32 %v1471_v33, 0.0  ;;  %v1472_v43 = vadd.f32 %v1408_v31, %v1344_v34  ;;  %v1051_v44 = vadd.f32 %v1050_v40, %v500_v36  ;;  %v1939_v45 = vpop.f32.mrb[14].mxu0  ;;  %v503_v46 = vpop.f32.mrb[15].mxu1  ;;  %v1416_v33 = vld [vmem:[%s3004_s6 + $0x88] sm:$0xff] }
  0xf5   :  { %1602 = vst.msk [vmem:[%s3005_s7 + $0x50] sm:$0xff] %vm1591_vm4, %v1537_v37  ;;  %v1538_v47 = vmax.f32 %v1474_v38, 0.0  ;;  %v1278_v48 = vmul.f32 %v2425_v6, %v1059_v39  ;;  %v1062_v49 = vadd.f32 %v1939_v45, %v1873_v41  ;;  %v1053_v50 = vpop.f32.mrb[15].mxu0 }
  0xf6   :  { %1600 = vst.msk [vmem:[%s3005_s7 + $0x40] sm:$0xff] %vm1591_vm4, %v1535_v42  ;;  %v1536_v51 = vmax.f32 %v1472_v43, 0.0  ;;  %v1276_v53 = vmul.f32 %v2425_v6, %v1051_v44  ;;  %v1054_v54 = vadd.f32 %v1053_v50, %v503_v46 }
  0xf7   :  { %1603 = vst.msk [vmem:[%s3005_s7 + $0x58] sm:$0xff] %vm1591_vm4, %v1538_v47  ;;  %v1349_v55 = vadd.f32 %v2430_v11, %v1278_v48  ;;  %v1279_v57 = vmul.f32 %v2425_v6, %v1062_v49 }
  0xf8   :  { %1601 = vst.msk [vmem:[%s3005_s7 + $0x48] sm:$0xff] %vm1591_vm4, %v1536_v51  ;;  %v1347_v58 = vadd.f32 %v2430_v11, %v1276_v53  ;;  %v1277_v60 = vmul.f32 %v2425_v6, %v1054_v54  ;;  %v1421_v54 = vld [vmem:[%s3004_s6 + $0xb0] sm:$0xff] }
  0xf9   :  { %v1477_v61 = vadd.f32 %v1413_v52, %v1349_v55  ;;  %v1350_v62 = vadd.f32 %v2430_v11, %v1279_v57  ;;  %v1876_v0 = vpop.f32.mrb[16].mxu1 }
  0xfa   :  { %v1475_v1 = vadd.f32 %v1411_v56, %v1347_v58  ;;  %v1348_v2 = vadd.f32 %v2430_v11, %v1277_v60  ;;  %v1942_v3 = vpop.f32.mrb[16].mxu0  ;;  %v516_v4 = vpop.f32.mrb[17].mxu1  ;;  %v1419_v58 = vld [vmem:[%s3004_s6 + $0xa0] sm:$0xff] }
  0xfb   :  { %v1541_v5 = vmax.f32 %v1477_v61, 0.0  ;;  %v1478_v7 = vadd.f32 %v1414_v59, %v1350_v62  ;;  %v1075_v8 = vadd.f32 %v1942_v3, %v1876_v0  ;;  %v1066_v9 = vpop.f32.mrb[17].mxu0  ;;  %v1877_v10 = vpop.f32.mrb[18].mxu1  ;;  %v1422_v61 = vld [vmem:[%s3004_s6 + $0xb8] sm:$0xff] }
  0xfc   :  { %v1539_v12 = vmax.f32 %v1475_v1, 0.0  ;;  %v1476_v13 = vadd.f32 %v1412_v63, %v1348_v2  ;;  %v1067_v14 = vadd.f32 %v1066_v9, %v516_v4  ;;  %v1943_v15 = vpop.f32.mrb[18].mxu0  ;;  %v519_v16 = vpop.f32.mrb[19].mxu1  ;;  %v1420_v1 = vld [vmem:[%s3004_s6 + $0xa8] sm:$0xff] }
  0xfd   :  { %1606 = vst.msk [vmem:[%s3005_s7 + $0x70] sm:$0xff] %vm1591_vm4, %v1541_v5  ;;  %v1542_v17 = vmax.f32 %v1478_v7, 0.0  ;;  %v1282_v18 = vmul.f32 %v2425_v6, %v1075_v8  ;;  %v1078_v19 = vadd.f32 %v1943_v15, %v1877_v10  ;;  %v1069_v20 = vpop.f32.mrb[19].mxu0 }
  0xfe   :  { %1604 = vst.msk [vmem:[%s3005_s7 + $0x60] sm:$0xff] %vm1591_vm4, %v1539_v12  ;;  %v1540_v21 = vmax.f32 %v1476_v13, 0.0  ;;  %v1280_v23 = vmul.f32 %v2425_v6, %v1067_v14  ;;  %v1070_v24 = vadd.f32 %v1069_v20, %v519_v16 }
  0xff   :  { %1607 = vst.msk [vmem:[%s3005_s7 + $0x78] sm:$0xff] %vm1591_vm4, %v1542_v17  ;;  %v1353_v25 = vadd.f32 %v2430_v11, %v1282_v18  ;;  %v1283_v27 = vmul.f32 %v2425_v6, %v1078_v19 }
 0x100   :  { %1605 = vst.msk [vmem:[%s3005_s7 + $0x68] sm:$0xff] %vm1591_vm4, %v1540_v21  ;;  %v1351_v28 = vadd.f32 %v2430_v11, %v1280_v23  ;;  %v1281_v30 = vmul.f32 %v2425_v6, %v1070_v24  ;;  %v1425_v24 = vld [vmem:[%s3004_s6 + $0xd0] sm:$0xff] }
 0x101   :  { %v1481_v31 = vadd.f32 %v1417_v22, %v1353_v25  ;;  %v1354_v32 = vadd.f32 %v2430_v11, %v1283_v27  ;;  %v1880_v34 = vpop.f32.mrb[20].mxu1 }
 0x102   :  { %v1479_v35 = vadd.f32 %v1415_v26, %v1351_v28  ;;  %v1352_v36 = vadd.f32 %v2430_v11, %v1281_v30  ;;  %v1946_v37 = vpop.f32.mrb[20].mxu0  ;;  %v532_v38 = vpop.f32.mrb[21].mxu1  ;;  %v1423_v28 = vld [vmem:[%s3004_s6 + $0xc0] sm:$0xff] }
 0x103   :  { %v1545_v39 = vmax.f32 %v1481_v31, 0.0  ;;  %v1482_v40 = vadd.f32 %v1418_v29, %v1354_v32  ;;  %v1091_v41 = vadd.f32 %v1946_v37, %v1880_v34  ;;  %v1082_v42 = vpop.f32.mrb[21].mxu0  ;;  %v1881_v43 = vpop.f32.mrb[22].mxu1  ;;  %v1426_v31 = vld [vmem:[%s3004_s6 + $0xd8] sm:$0xff] }
 0x104   :  { %v1543_v44 = vmax.f32 %v1479_v35, 0.0  ;;  %v1480_v45 = vadd.f32 %v1416_v33, %v1352_v36  ;;  %v1083_v46 = vadd.f32 %v1082_v42, %v532_v38  ;;  %v1947_v47 = vpop.f32.mrb[22].mxu0  ;;  %v535_v48 = vpop.f32.mrb[23].mxu1  ;;  %v1424_v35 = vld [vmem:[%s3004_s6 + $0xc8] sm:$0xff] }
 0x105   :  { %1610 = vst.msk [vmem:[%s3005_s7 + $0x90] sm:$0xff] %vm1591_vm4, %v1545_v39  ;;  %v1546_v49 = vmax.f32 %v1482_v40, 0.0  ;;  %v1286_v50 = vmul.f32 %v2425_v6, %v1091_v41  ;;  %v1094_v51 = vadd.f32 %v1947_v47, %v1881_v43  ;;  %v1085_v52 = vpop.f32.mrb[23].mxu0 }
 0x106   :  { %1608 = vst.msk [vmem:[%s3005_s7 + $0x80] sm:$0xff] %vm1591_vm4, %v1543_v44  ;;  %v1544_v53 = vmax.f32 %v1480_v45, 0.0  ;;  %v1284_v55 = vmul.f32 %v2425_v6, %v1083_v46  ;;  %v1086_v56 = vadd.f32 %v1085_v52, %v535_v48 }
 0x107   :  { %1611 = vst.msk [vmem:[%s3005_s7 + $0x98] sm:$0xff] %vm1591_vm4, %v1546_v49  ;;  %v1357_v57 = vadd.f32 %v2430_v11, %v1286_v50  ;;  %v1287_v59 = vmul.f32 %v2425_v6, %v1094_v51 }
 0x108   :  { %1609 = vst.msk [vmem:[%s3005_s7 + $0x88] sm:$0xff] %vm1591_vm4, %v1544_v53  ;;  %v1355_v60 = vadd.f32 %v2430_v11, %v1284_v55  ;;  %v1285_v62 = vmul.f32 %v2425_v6, %v1086_v56  ;;  %v1429_v56 = vld [vmem:[%s3004_s6 + $0xf0] sm:$0xff] }
 0x109   :  { %v1485_v63 = vadd.f32 %v1421_v54, %v1357_v57  ;;  %v1358_v0 = vadd.f32 %v2430_v11, %v1287_v59  ;;  %v1884_v2 = vpop.f32.mrb[24].mxu1 }
 0x10a   :  { %v1483_v3 = vadd.f32 %v1419_v58, %v1355_v60  ;;  %v1356_v4 = vadd.f32 %v2430_v11, %v1285_v62  ;;  %v1950_v5 = vpop.f32.mrb[24].mxu0  ;;  %v548_v7 = vpop.f32.mrb[25].mxu1  ;;  %v1427_v60 = vld [vmem:[%s3004_s6 + $0xe0] sm:$0xff] }
 0x10b   :  { %v1549_v8 = vmax.f32 %v1485_v63, 0.0  ;;  %v1486_v9 = vadd.f32 %v1422_v61, %v1358_v0  ;;  %v1107_v10 = vadd.f32 %v1950_v5, %v1884_v2  ;;  %v1098_v12 = vpop.f32.mrb[25].mxu0  ;;  %v1885_v13 = vpop.f32.mrb[26].mxu1  ;;  %v1430_v63 = vld [vmem:[%s3004_s6 + $0xf8] sm:$0xff] }
 0x10c   :  { %v1547_v14 = vmax.f32 %v1483_v3, 0.0  ;;  %v1484_v15 = vadd.f32 %v1420_v1, %v1356_v4  ;;  %v1099_v16 = vadd.f32 %v1098_v12, %v548_v7  ;;  %v1951_v17 = vpop.f32.mrb[26].mxu0  ;;  %v551_v18 = vpop.f32.mrb[27].mxu1  ;;  %v1428_v3 = vld [vmem:[%s3004_s6 + $0xe8] sm:$0xff] }
 0x10d   :  { %1614 = vst.msk [vmem:[%s3005_s7 + $0xb0] sm:$0xff] %vm1591_vm4, %v1549_v8  ;;  %v1550_v19 = vmax.f32 %v1486_v9, 0.0  ;;  %v1290_v20 = vmul.f32 %v2425_v6, %v1107_v10  ;;  %v1110_v21 = vadd.f32 %v1951_v17, %v1885_v13  ;;  %v1101_v22 = vpop.f32.mrb[27].mxu0 }
 0x10e   :  { %1612 = vst.msk [vmem:[%s3005_s7 + $0xa0] sm:$0xff] %vm1591_vm4, %v1547_v14  ;;  %v1548_v23 = vmax.f32 %v1484_v15, 0.0  ;;  %v1288_v25 = vmul.f32 %v2425_v6, %v1099_v16  ;;  %v1102_v26 = vadd.f32 %v1101_v22, %v551_v18 }
 0x10f   :  { %1615 = vst.msk [vmem:[%s3005_s7 + $0xb8] sm:$0xff] %vm1591_vm4, %v1550_v19  ;;  %v1361_v27 = vadd.f32 %v2430_v11, %v1290_v20  ;;  %v1291_v29 = vmul.f32 %v2425_v6, %v1110_v21 }
 0x110   :  { %1613 = vst.msk [vmem:[%s3005_s7 + $0xa8] sm:$0xff] %vm1591_vm4, %v1548_v23  ;;  %v1359_v30 = vadd.f32 %v2430_v11, %v1288_v25  ;;  %v1289_v32 = vmul.f32 %v2425_v6, %v1102_v26  ;;  %v1433_v26 = vld [vmem:[%s3004_s6 + $0x110] sm:$0xff] }
 0x111   :  { %v1489_v33 = vadd.f32 %v1425_v24, %v1361_v27  ;;  %v1362_v34 = vadd.f32 %v2430_v11, %v1291_v29  ;;  %v1888_v36 = vpop.f32.mrb[28].mxu1 }
 0x112   :  { %v1487_v37 = vadd.f32 %v1423_v28, %v1359_v30  ;;  %v1360_v38 = vadd.f32 %v2430_v11, %v1289_v32  ;;  %v1954_v39 = vpop.f32.mrb[28].mxu0  ;;  %v564_v40 = vpop.f32.mrb[29].mxu1  ;;  %v1431_v30 = vld [vmem:[%s3004_s6 + $0x100] sm:$0xff] }
 0x113   :  { %v1553_v41 = vmax.f32 %v1489_v33, 0.0  ;;  %v1490_v42 = vadd.f32 %v1426_v31, %v1362_v34  ;;  %v1123_v43 = vadd.f32 %v1954_v39, %v1888_v36  ;;  %v1114_v44 = vpop.f32.mrb[29].mxu0  ;;  %v1889_v45 = vpop.f32.mrb[30].mxu1  ;;  %v1434_v33 = vld [vmem:[%s3004_s6 + $0x118] sm:$0xff] }
 0x114   :  { %v1551_v46 = vmax.f32 %v1487_v37, 0.0  ;;  %v1488_v47 = vadd.f32 %v1424_v35, %v1360_v38  ;;  %v1115_v48 = vadd.f32 %v1114_v44, %v564_v40  ;;  %v1955_v49 = vpop.f32.mrb[30].mxu0  ;;  %v567_v50 = vpop.f32.mrb[31].mxu1  ;;  %v1432_v37 = vld [vmem:[%s3004_s6 + $0x108] sm:$0xff] }
 0x115   :  { %1618 = vst.msk [vmem:[%s3005_s7 + $0xd0] sm:$0xff] %vm1591_vm4, %v1553_v41  ;;  %v1554_v51 = vmax.f32 %v1490_v42, 0.0  ;;  %v1294_v52 = vmul.f32 %v2425_v6, %v1123_v43  ;;  %v1126_v53 = vadd.f32 %v1955_v49, %v1889_v45  ;;  %v1117_v54 = vpop.f32.mrb[31].mxu0 }
 0x116   :  { %1616 = vst.msk [vmem:[%s3005_s7 + $0xc0] sm:$0xff] %vm1591_vm4, %v1551_v46  ;;  %v1552_v55 = vmax.f32 %v1488_v47, 0.0  ;;  %v1292_v57 = vmul.f32 %v2425_v6, %v1115_v48  ;;  %v1118_v58 = vadd.f32 %v1117_v54, %v567_v50 }
 0x117   :  { %1619 = vst.msk [vmem:[%s3005_s7 + $0xd8] sm:$0xff] %vm1591_vm4, %v1554_v51  ;;  %v1365_v59 = vadd.f32 %v2430_v11, %v1294_v52  ;;  %v1295_v61 = vmul.f32 %v2425_v6, %v1126_v53 }
 0x118   :  { %1617 = vst.msk [vmem:[%s3005_s7 + $0xc8] sm:$0xff] %vm1591_vm4, %v1552_v55  ;;  %v1363_v62 = vadd.f32 %v2430_v11, %v1292_v57  ;;  %v1293_v0 = vmul.f32 %v2425_v6, %v1118_v58  ;;  %v1437_v58 = vld [vmem:[%s3004_s6 + $0x130] sm:$0xff] }
 0x119   :  { %v1493_v1 = vadd.f32 %v1429_v56, %v1365_v59  ;;  %v1366_v2 = vadd.f32 %v2430_v11, %v1295_v61  ;;  %v1892_v4 = vpop.f32.mrb[32].mxu1 }
 0x11a   :  { %v1491_v5 = vadd.f32 %v1427_v60, %v1363_v62  ;;  %v1364_v7 = vadd.f32 %v2430_v11, %v1293_v0  ;;  %v1958_v8 = vpop.f32.mrb[32].mxu0  ;;  %v580_v9 = vpop.f32.mrb[33].mxu1  ;;  %v1435_v62 = vld [vmem:[%s3004_s6 + $0x120] sm:$0xff] }
 0x11b   :  { %v1557_v10 = vmax.f32 %v1493_v1, 0.0  ;;  %v1494_v12 = vadd.f32 %v1430_v63, %v1366_v2  ;;  %v1139_v13 = vadd.f32 %v1958_v8, %v1892_v4  ;;  %v1130_v14 = vpop.f32.mrb[33].mxu0  ;;  %v1893_v15 = vpop.f32.mrb[34].mxu1  ;;  %v1438_v1 = vld [vmem:[%s3004_s6 + $0x138] sm:$0xff] }
 0x11c   :  { %v1555_v16 = vmax.f32 %v1491_v5, 0.0  ;;  %v1492_v17 = vadd.f32 %v1428_v3, %v1364_v7  ;;  %v1131_v18 = vadd.f32 %v1130_v14, %v580_v9  ;;  %v1959_v19 = vpop.f32.mrb[34].mxu0  ;;  %v583_v20 = vpop.f32.mrb[35].mxu1  ;;  %v1436_v5 = vld [vmem:[%s3004_s6 + $0x128] sm:$0xff] }
 0x11d   :  { %1622 = vst.msk [vmem:[%s3005_s7 + $0xf0] sm:$0xff] %vm1591_vm4, %v1557_v10  ;;  %v1558_v21 = vmax.f32 %v1494_v12, 0.0  ;;  %v1298_v22 = vmul.f32 %v2425_v6, %v1139_v13  ;;  %v1142_v23 = vadd.f32 %v1959_v19, %v1893_v15  ;;  %v1133_v24 = vpop.f32.mrb[35].mxu0 }
 0x11e   :  { %1620 = vst.msk [vmem:[%s3005_s7 + $0xe0] sm:$0xff] %vm1591_vm4, %v1555_v16  ;;  %v1556_v25 = vmax.f32 %v1492_v17, 0.0  ;;  %v1296_v27 = vmul.f32 %v2425_v6, %v1131_v18  ;;  %v1134_v28 = vadd.f32 %v1133_v24, %v583_v20 }
 0x11f   :  { %1623 = vst.msk [vmem:[%s3005_s7 + $0xf8] sm:$0xff] %vm1591_vm4, %v1558_v21  ;;  %v1369_v29 = vadd.f32 %v2430_v11, %v1298_v22  ;;  %v1299_v31 = vmul.f32 %v2425_v6, %v1142_v23 }
 0x120   :  { %1621 = vst.msk [vmem:[%s3005_s7 + $0xe8] sm:$0xff] %vm1591_vm4, %v1556_v25  ;;  %v1367_v32 = vadd.f32 %v2430_v11, %v1296_v27  ;;  %v1297_v34 = vmul.f32 %v2425_v6, %v1134_v28  ;;  %v1441_v28 = vld [vmem:[%s3004_s6 + $0x150] sm:$0xff] }
 0x121   :  { %v1497_v35 = vadd.f32 %v1433_v26, %v1369_v29  ;;  %v1370_v36 = vadd.f32 %v2430_v11, %v1299_v31  ;;  %v1896_v38 = vpop.f32.mrb[36].mxu1 }
 0x122   :  { %v1495_v39 = vadd.f32 %v1431_v30, %v1367_v32  ;;  %v1368_v40 = vadd.f32 %v2430_v11, %v1297_v34  ;;  %v1962_v41 = vpop.f32.mrb[36].mxu0  ;;  %v596_v42 = vpop.f32.mrb[37].mxu1  ;;  %v1439_v32 = vld [vmem:[%s3004_s6 + $0x140] sm:$0xff] }
 0x123   :  { %v1561_v43 = vmax.f32 %v1497_v35, 0.0  ;;  %v1498_v44 = vadd.f32 %v1434_v33, %v1370_v36  ;;  %v1155_v45 = vadd.f32 %v1962_v41, %v1896_v38  ;;  %v1146_v46 = vpop.f32.mrb[37].mxu0  ;;  %v1897_v47 = vpop.f32.mrb[38].mxu1  ;;  %v1442_v35 = vld [vmem:[%s3004_s6 + $0x158] sm:$0xff] }
 0x124   :  { %v1559_v48 = vmax.f32 %v1495_v39, 0.0  ;;  %v1496_v49 = vadd.f32 %v1432_v37, %v1368_v40  ;;  %v1147_v50 = vadd.f32 %v1146_v46, %v596_v42  ;;  %v1963_v51 = vpop.f32.mrb[38].mxu0  ;;  %v599_v52 = vpop.f32.mrb[39].mxu1  ;;  %v1440_v39 = vld [vmem:[%s3004_s6 + $0x148] sm:$0xff] }
 0x125   :  { %1626 = vst.msk [vmem:[%s3005_s7 + $0x110] sm:$0xff] %vm1591_vm4, %v1561_v43  ;;  %v1562_v53 = vmax.f32 %v1498_v44, 0.0  ;;  %v1302_v54 = vmul.f32 %v2425_v6, %v1155_v45  ;;  %v1158_v55 = vadd.f32 %v1963_v51, %v1897_v47  ;;  %v1149_v56 = vpop.f32.mrb[39].mxu0 }
 0x126   :  { %1624 = vst.msk [vmem:[%s3005_s7 + $0x100] sm:$0xff] %vm1591_vm4, %v1559_v48  ;;  %v1560_v57 = vmax.f32 %v1496_v49, 0.0  ;;  %v1300_v59 = vmul.f32 %v2425_v6, %v1147_v50  ;;  %v1150_v60 = vadd.f32 %v1149_v56, %v599_v52 }
 0x127   :  { %1627 = vst.msk [vmem:[%s3005_s7 + $0x118] sm:$0xff] %vm1591_vm4, %v1562_v53  ;;  %v1373_v61 = vadd.f32 %v2430_v11, %v1302_v54  ;;  %v1303_v63 = vmul.f32 %v2425_v6, %v1158_v55 }
 0x128   :  { %1625 = vst.msk [vmem:[%s3005_s7 + $0x108] sm:$0xff] %vm1591_vm4, %v1560_v57  ;;  %v1371_v0 = vadd.f32 %v2430_v11, %v1300_v59  ;;  %v1301_v2 = vmul.f32 %v2425_v6, %v1150_v60  ;;  %v1445_v60 = vld [vmem:[%s3004_s6 + $0x170] sm:$0xff] }
 0x129   :  { %v1501_v3 = vadd.f32 %v1437_v58, %v1373_v61  ;;  %v1374_v4 = vadd.f32 %v2430_v11, %v1303_v63  ;;  %v1900_v7 = vpop.f32.mrb[40].mxu1 }
 0x12a   :  { %v1499_v8 = vadd.f32 %v1435_v62, %v1371_v0  ;;  %v1372_v9 = vadd.f32 %v2430_v11, %v1301_v2  ;;  %v1966_v10 = vpop.f32.mrb[40].mxu0  ;;  %v612_v12 = vpop.f32.mrb[41].mxu1  ;;  %v1443_v0 = vld [vmem:[%s3004_s6 + $0x160] sm:$0xff] }
 0x12b   :  { %v1565_v13 = vmax.f32 %v1501_v3, 0.0  ;;  %v1502_v14 = vadd.f32 %v1438_v1, %v1374_v4  ;;  %v1171_v15 = vadd.f32 %v1966_v10, %v1900_v7  ;;  %v1162_v16 = vpop.f32.mrb[41].mxu0  ;;  %v1901_v17 = vpop.f32.mrb[42].mxu1  ;;  %v1446_v3 = vld [vmem:[%s3004_s6 + $0x178] sm:$0xff] }
 0x12c   :  { %v1563_v18 = vmax.f32 %v1499_v8, 0.0  ;;  %v1500_v19 = vadd.f32 %v1436_v5, %v1372_v9  ;;  %v1163_v20 = vadd.f32 %v1162_v16, %v612_v12  ;;  %v1967_v21 = vpop.f32.mrb[42].mxu0  ;;  %v615_v22 = vpop.f32.mrb[43].mxu1  ;;  %v1444_v8 = vld [vmem:[%s3004_s6 + $0x168] sm:$0xff] }
 0x12d   :  { %1630 = vst.msk [vmem:[%s3005_s7 + $0x130] sm:$0xff] %vm1591_vm4, %v1565_v13  ;;  %v1566_v23 = vmax.f32 %v1502_v14, 0.0  ;;  %v1306_v24 = vmul.f32 %v2425_v6, %v1171_v15  ;;  %v1174_v25 = vadd.f32 %v1967_v21, %v1901_v17  ;;  %v1165_v26 = vpop.f32.mrb[43].mxu0 }
 0x12e   :  { %1628 = vst.msk [vmem:[%s3005_s7 + $0x120] sm:$0xff] %vm1591_vm4, %v1563_v18  ;;  %v1564_v27 = vmax.f32 %v1500_v19, 0.0  ;;  %v1304_v29 = vmul.f32 %v2425_v6, %v1163_v20  ;;  %v1166_v30 = vadd.f32 %v1165_v26, %v615_v22 }
 0x12f   :  { %1631 = vst.msk [vmem:[%s3005_s7 + $0x138] sm:$0xff] %vm1591_vm4, %v1566_v23  ;;  %v1377_v31 = vadd.f32 %v2430_v11, %v1306_v24  ;;  %v1307_v33 = vmul.f32 %v2425_v6, %v1174_v25 }
 0x130   :  { %1629 = vst.msk [vmem:[%s3005_s7 + $0x128] sm:$0xff] %vm1591_vm4, %v1564_v27  ;;  %v1375_v34 = vadd.f32 %v2430_v11, %v1304_v29  ;;  %v1305_v36 = vmul.f32 %v2425_v6, %v1166_v30  ;;  %v1449_v30 = vld [vmem:[%s3004_s6 + $0x190] sm:$0xff] }
 0x131   :  { %v1505_v37 = vadd.f32 %v1441_v28, %v1377_v31  ;;  %v1378_v38 = vadd.f32 %v2430_v11, %v1307_v33  ;;  %v1904_v40 = vpop.f32.mrb[44].mxu1 }
 0x132   :  { %v1503_v41 = vadd.f32 %v1439_v32, %v1375_v34  ;;  %v1376_v42 = vadd.f32 %v2430_v11, %v1305_v36  ;;  %v1970_v43 = vpop.f32.mrb[44].mxu0  ;;  %v628_v44 = vpop.f32.mrb[45].mxu1  ;;  %v1447_v34 = vld [vmem:[%s3004_s6 + $0x180] sm:$0xff] }
 0x133   :  { %v1569_v45 = vmax.f32 %v1505_v37, 0.0  ;;  %v1506_v46 = vadd.f32 %v1442_v35, %v1378_v38  ;;  %v1187_v47 = vadd.f32 %v1970_v43, %v1904_v40  ;;  %v1178_v48 = vpop.f32.mrb[45].mxu0  ;;  %v1905_v49 = vpop.f32.mrb[46].mxu1  ;;  %v1450_v37 = vld [vmem:[%s3004_s6 + $0x198] sm:$0xff] }
 0x134   :  { %v1567_v50 = vmax.f32 %v1503_v41, 0.0  ;;  %v1504_v51 = vadd.f32 %v1440_v39, %v1376_v42  ;;  %v1179_v52 = vadd.f32 %v1178_v48, %v628_v44  ;;  %v1971_v53 = vpop.f32.mrb[46].mxu0  ;;  %v631_v54 = vpop.f32.mrb[47].mxu1  ;;  %v1448_v41 = vld [vmem:[%s3004_s6 + $0x188] sm:$0xff] }
 0x135   :  { %1634 = vst.msk [vmem:[%s3005_s7 + $0x150] sm:$0xff] %vm1591_vm4, %v1569_v45  ;;  %v1570_v55 = vmax.f32 %v1506_v46, 0.0  ;;  %v1310_v56 = vmul.f32 %v2425_v6, %v1187_v47  ;;  %v1190_v57 = vadd.f32 %v1971_v53, %v1905_v49  ;;  %v1181_v58 = vpop.f32.mrb[47].mxu0 }
 0x136   :  { %1632 = vst.msk [vmem:[%s3005_s7 + $0x140] sm:$0xff] %vm1591_vm4, %v1567_v50  ;;  %v1568_v59 = vmax.f32 %v1504_v51, 0.0  ;;  %v1308_v61 = vmul.f32 %v2425_v6, %v1179_v52  ;;  %v1182_v62 = vadd.f32 %v1181_v58, %v631_v54 }
 0x137   :  { %1635 = vst.msk [vmem:[%s3005_s7 + $0x158] sm:$0xff] %vm1591_vm4, %v1570_v55  ;;  %v1381_v63 = vadd.f32 %v2430_v11, %v1310_v56  ;;  %v1311_v1 = vmul.f32 %v2425_v6, %v1190_v57 }
 0x138   :  { %1633 = vst.msk [vmem:[%s3005_s7 + $0x148] sm:$0xff] %vm1591_vm4, %v1568_v59  ;;  %v1379_v2 = vadd.f32 %v2430_v11, %v1308_v61  ;;  %v1309_v4 = vmul.f32 %v2425_v6, %v1182_v62  ;;  %v1453_v62 = vld [vmem:[%s3004_s6 + $0x1b0] sm:$0xff] }
 0x139   :  { %v1509_v5 = vadd.f32 %v1445_v60, %v1381_v63  ;;  %v1382_v7 = vadd.f32 %v2430_v11, %v1311_v1  ;;  %v1908_v9 = vpop.f32.mrb[48].mxu1 }
 0x13a   :  { %v1507_v10 = vadd.f32 %v1443_v0, %v1379_v2  ;;  %v1380_v12 = vadd.f32 %v2430_v11, %v1309_v4  ;;  %v1974_v13 = vpop.f32.mrb[48].mxu0  ;;  %v644_v14 = vpop.f32.mrb[49].mxu1  ;;  %v1451_v2 = vld [vmem:[%s3004_s6 + $0x1a0] sm:$0xff] }
 0x13b   :  { %v1573_v15 = vmax.f32 %v1509_v5, 0.0  ;;  %v1510_v16 = vadd.f32 %v1446_v3, %v1382_v7  ;;  %v1203_v17 = vadd.f32 %v1974_v13, %v1908_v9  ;;  %v1194_v18 = vpop.f32.mrb[49].mxu0  ;;  %v1909_v19 = vpop.f32.mrb[50].mxu1  ;;  %v1454_v5 = vld [vmem:[%s3004_s6 + $0x1b8] sm:$0xff] }
 0x13c   :  { %v1571_v20 = vmax.f32 %v1507_v10, 0.0  ;;  %v1508_v21 = vadd.f32 %v1444_v8, %v1380_v12  ;;  %v1195_v22 = vadd.f32 %v1194_v18, %v644_v14  ;;  %v1975_v23 = vpop.f32.mrb[50].mxu0  ;;  %v647_v24 = vpop.f32.mrb[51].mxu1  ;;  %v1452_v10 = vld [vmem:[%s3004_s6 + $0x1a8] sm:$0xff] }
 0x13d   :  { %1638 = vst.msk [vmem:[%s3005_s7 + $0x170] sm:$0xff] %vm1591_vm4, %v1573_v15  ;;  %v1574_v25 = vmax.f32 %v1510_v16, 0.0  ;;  %v1314_v26 = vmul.f32 %v2425_v6, %v1203_v17  ;;  %v1206_v27 = vadd.f32 %v1975_v23, %v1909_v19  ;;  %v1197_v28 = vpop.f32.mrb[51].mxu0 }
 0x13e   :  { %1636 = vst.msk [vmem:[%s3005_s7 + $0x160] sm:$0xff] %vm1591_vm4, %v1571_v20  ;;  %v1572_v29 = vmax.f32 %v1508_v21, 0.0  ;;  %v1312_v31 = vmul.f32 %v2425_v6, %v1195_v22  ;;  %v1198_v32 = vadd.f32 %v1197_v28, %v647_v24 }
 0x13f   :  { %1639 = vst.msk [vmem:[%s3005_s7 + $0x178] sm:$0xff] %vm1591_vm4, %v1574_v25  ;;  %v1385_v33 = vadd.f32 %v2430_v11, %v1314_v26  ;;  %v1315_v35 = vmul.f32 %v2425_v6, %v1206_v27 }
 0x140   :  { %1637 = vst.msk [vmem:[%s3005_s7 + $0x168] sm:$0xff] %vm1591_vm4, %v1572_v29  ;;  %v1383_v36 = vadd.f32 %v2430_v11, %v1312_v31  ;;  %v1313_v38 = vmul.f32 %v2425_v6, %v1198_v32  ;;  %v1457_v31 = vld [vmem:[%s3004_s6 + $0x1d0] sm:$0xff] }
 0x141   :  { %v1513_v39 = vadd.f32 %v1449_v30, %v1385_v33  ;;  %v1386_v40 = vadd.f32 %v2430_v11, %v1315_v35  ;;  %v1912_v42 = vpop.f32.mrb[52].mxu1 }
 0x142   :  { %v1511_v43 = vadd.f32 %v1447_v34, %v1383_v36  ;;  %v1384_v44 = vadd.f32 %v2430_v11, %v1313_v38  ;;  %v1978_v45 = vpop.f32.mrb[52].mxu0  ;;  %v660_v46 = vpop.f32.mrb[53].mxu1  ;;  %v2119_v34 = vld [vmem:[%s3003_s5] ss:$0 sm:$0xff] }
 0x143   :  { %v1577_v47 = vmax.f32 %v1513_v39, 0.0  ;;  %v1514_v48 = vadd.f32 %v1450_v37, %v1386_v40  ;;  %v1219_v49 = vadd.f32 %v1978_v45, %v1912_v42  ;;  %v1210_v50 = vpop.f32.mrb[53].mxu0  ;;  %v1913_v51 = vpop.f32.mrb[54].mxu1  ;;  %v1455_v36 = vld [vmem:[%s3004_s6 + $0x1c0] sm:$0xff]  ;;  %v1458_v39 = vld [vmem:[%s3004_s6 + $0x1d8] sm:$0xff] }
 0x144   :  { %v1575_v52 = vmax.f32 %v1511_v43, 0.0  ;;  %v1512_v53 = vadd.f32 %v1448_v41, %v1384_v44  ;;  %v1211_v54 = vadd.f32 %v1210_v50, %v660_v46  ;;  %v1979_v55 = vpop.f32.mrb[54].mxu0  ;;  %v663_v56 = vpop.f32.mrb[55].mxu1  ;;  %v1456_v43 = vld [vmem:[%s3004_s6 + $0x1c8] sm:$0xff] }
 0x145   :  { %1642 = vst.msk [vmem:[%s3005_s7 + $0x190] sm:$0xff] %vm1591_vm4, %v1577_v47  ;;  %v1578_v57 = vmax.f32 %v1514_v48, 0.0  ;;  %v1318_v58 = vmul.f32 %v2425_v6, %v1219_v49  ;;  %v1222_v59 = vadd.f32 %v1979_v55, %v1913_v51  ;;  %v1213_v60 = vpop.f32.mrb[55].mxu0 }
 0x146   :  { %1640 = vst.msk [vmem:[%s3005_s7 + $0x180] sm:$0xff] %vm1591_vm4, %v1575_v52  ;;  %v1576_v61 = vmax.f32 %v1512_v53, 0.0  ;;  %v1316_v63 = vmul.f32 %v2425_v6, %v1211_v54  ;;  %v1214_v0 = vadd.f32 %v1213_v60, %v663_v56 }
 0x147   :  { %1643 = vst.msk [vmem:[%s3005_s7 + $0x198] sm:$0xff] %vm1591_vm4, %v1578_v57  ;;  %v1389_v1 = vadd.f32 %v2430_v11, %v1318_v58  ;;  %v1319_v3 = vmul.f32 %v2425_v6, %v1222_v59 }
 0x148   :  { %1641 = vst.msk [vmem:[%s3005_s7 + $0x188] sm:$0xff] %vm1591_vm4, %v1576_v61  ;;  %v1387_v4 = vadd.f32 %v2430_v11, %v1316_v63  ;;  %v1317_v7 = vmul.f32 %v2425_v6, %v1214_v0  ;;  %v1461_v0 = vld [vmem:[%s3004_s6 + $0x1f0] sm:$0xff] }
 0x149   :  { %v1517_v8 = vadd.f32 %v1453_v62, %v1389_v1  ;;  %v1390_v9 = vadd.f32 %v2430_v11, %v1319_v3  ;;  %v1916_v12 = vpop.f32.mrb[56].mxu1 }
 0x14a   :  { %v1515_v13 = vadd.f32 %v1451_v2, %v1387_v4  ;;  %v1388_v14 = vadd.f32 %v2430_v11, %v1317_v7  ;;  %v1982_v15 = vpop.f32.mrb[56].mxu0  ;;  %v676_v16 = vpop.f32.mrb[57].mxu1  ;;  %v2118_v11 = vld [vmem:[%s3002_s4] ss:$0 sm:$0xff] }
 0x14b   :  { %v1581_v17 = vmax.f32 %v1517_v8, 0.0  ;;  %v1518_v18 = vadd.f32 %v1454_v5, %v1390_v9  ;;  %v1235_v19 = vadd.f32 %v1982_v15, %v1916_v12  ;;  %v1226_v20 = vpop.f32.mrb[57].mxu0  ;;  %v1917_v21 = vpop.f32.mrb[58].mxu1  ;;  %v1459_v4 = vld [vmem:[%s3004_s6 + $0x1e0] sm:$0xff]  ;;  %v1462_v8 = vld [vmem:[%s3004_s6 + $0x1f8] sm:$0xff] }
 0x14c   :  { %v1579_v22 = vmax.f32 %v1515_v13, 0.0  ;;  %v1516_v6 = vadd.f32 %v1452_v10, %v1388_v14  ;;  %v1227_v23 = vadd.f32 %v1226_v20, %v676_v16  ;;  %v1983_v24 = vpop.f32.mrb[58].mxu0  ;;  %v679_v25 = vpop.f32.mrb[59].mxu1  ;;  %v1460_v13 = vld [vmem:[%s3004_s6 + $0x1e8] sm:$0xff] }
 0x14d   :  { %1646 = vst.msk [vmem:[%s3005_s7 + $0x1b0] sm:$0xff] %vm1591_vm4, %v1581_v17  ;;  %v1582_v26 = vmax.f32 %v1518_v18, 0.0  ;;  %v1322_v27 = vmul.f32 %v2118_v11, %v1235_v19  ;;  %v1238_v28 = vadd.f32 %v1983_v24, %v1917_v21  ;;  %v1229_v29 = vpop.f32.mrb[59].mxu0 }
 0x14e   :  { %1644 = vst.msk [vmem:[%s3005_s7 + $0x1a0] sm:$0xff] %vm1591_vm4, %v1579_v22  ;;  %v1580_v30 = vmax.f32 %v1516_v6, 0.0  ;;  %v1320_v32 = vmul.f32 %v2118_v11, %v1227_v23  ;;  %v1230_v33 = vadd.f32 %v1229_v29, %v679_v25 }
 0x14f   :  { %1647 = vst.msk [vmem:[%s3005_s7 + $0x1b8] sm:$0xff] %vm1591_vm4, %v1582_v26  ;;  %v1393_v35 = vadd.f32 %v2119_v34, %v1322_v27  ;;  %v1323_v37 = vmul.f32 %v2118_v11, %v1238_v28 }
 0x150   :  { %1645 = vst.msk [vmem:[%s3005_s7 + $0x1a8] sm:$0xff] %vm1591_vm4, %v1580_v30  ;;  %v1391_v38 = vadd.f32 %v2119_v34, %v1320_v32  ;;  %v1321_v40 = vmul.f32 %v2118_v11, %v1230_v33 }
 0x151   :  { %v1521_v41 = vadd.f32 %v1457_v31, %v1393_v35  ;;  %v1394_v42 = vadd.f32 %v2119_v34, %v1323_v37  ;;  %v1920_v44 = vpop.f32.mrb[60].mxu1 }
 0x152   :  { %v1519_v45 = vadd.f32 %v1455_v36, %v1391_v38  ;;  %v1392_v46 = vadd.f32 %v2119_v34, %v1321_v40  ;;  %v1986_v47 = vpop.f32.mrb[60].mxu0  ;;  %v692_v48 = vpop.f32.mrb[61].mxu1 }
 0x153   :  { %v1585_v49 = vmax.f32 %v1521_v41, 0.0  ;;  %v1522_v50 = vadd.f32 %v1458_v39, %v1394_v42  ;;  %v1251_v51 = vadd.f32 %v1986_v47, %v1920_v44  ;;  %v1242_v52 = vpop.f32.mrb[61].mxu0  ;;  %v1921_v53 = vpop.f32.mrb[62].mxu1 }
 0x154   :  { %v1583_v54 = vmax.f32 %v1519_v45, 0.0  ;;  %v1520_v55 = vadd.f32 %v1456_v43, %v1392_v46  ;;  %v1243_v56 = vadd.f32 %v1242_v52, %v692_v48  ;;  %v1987_v57 = vpop.f32.mrb[62].mxu0  ;;  %v695_v58 = vpop.f32.mrb[63].mxu1 }
 0x155   :  { %1650 = vst.msk [vmem:[%s3005_s7 + $0x1d0] sm:$0xff] %vm1591_vm4, %v1585_v49  ;;  %v1586_v59 = vmax.f32 %v1522_v50, 0.0  ;;  %v1326_v60 = vmul.f32 %v2118_v11, %v1251_v51  ;;  %v1254_v61 = vadd.f32 %v1987_v57, %v1921_v53  ;;  %v1245_v62 = vpop.f32.mrb[63].mxu0 }
 0x156   :  { %1648 = vst.msk [vmem:[%s3005_s7 + $0x1c0] sm:$0xff] %vm1591_vm4, %v1583_v54  ;;  %v1584_v63 = vmax.f32 %v1520_v55, 0.0  ;;  %v1324_v1 = vmul.f32 %v2118_v11, %v1243_v56  ;;  %v1246_v2 = vadd.f32 %v1245_v62, %v695_v58 }
 0x157   :  { %1651 = vst.msk [vmem:[%s3005_s7 + $0x1d8] sm:$0xff] %vm1591_vm4, %v1586_v59  ;;  %v1397_v3 = vadd.f32 %v2119_v34, %v1326_v60  ;;  %v1327_v5 = vmul.f32 %v2118_v11, %v1254_v61 }
 0x158   :  { %1649 = vst.msk [vmem:[%s3005_s7 + $0x1c8] sm:$0xff] %vm1591_vm4, %v1584_v63  ;;  %v1395_v7 = vadd.f32 %v2119_v34, %v1324_v1  ;;  %v1325_v9 = vmul.f32 %v2118_v11, %v1246_v2 }
 0x159   :  { %v1525_v10 = vadd.f32 %v1461_v0, %v1397_v3  ;;  %v1398_v12 = vadd.f32 %v2119_v34, %v1327_v5 }
 0x15a   :  { %v1523_v14 = vadd.f32 %v1459_v4, %v1395_v7  ;;  %v1396_v15 = vadd.f32 %v2119_v34, %v1325_v9 }
 0x15b   :  { %v1589_v16 = vmax.f32 %v1525_v10, 0.0  ;;  %v1526_v17 = vadd.f32 %v1462_v8, %v1398_v12 }
 0x15c   :  { %v1587_v18 = vmax.f32 %v1523_v14, 0.0  ;;  %v1524_v19 = vadd.f32 %v1460_v13, %v1396_v15 }
 0x15d   :  { %1654 = vst.msk [vmem:[%s3005_s7 + $0x1f0] sm:$0xff] %vm1591_vm4, %v1589_v16  ;;  %v1590_v20 = vmax.f32 %v1526_v17, 0.0 }
 0x15e   :  { %1652 = vst.msk [vmem:[%s3005_s7 + $0x1e0] sm:$0xff] %vm1591_vm4, %v1587_v18  ;;  %v1588_v21 = vmax.f32 %v1524_v19, 0.0 }
 0x15f   :  { %1655 = vst.msk [vmem:[%s3005_s7 + $0x1f8] sm:$0xff] %vm1591_vm4, %v1590_v20 }
 0x160   :  { %1653 = vst.msk [vmem:[%s3005_s7 + $0x1e8] sm:$0xff] %vm1591_vm4, %v1588_v21 }

// kernel: aligned_bottleneck_pallas.6
= control target key start
LH: loop header
LB: loop body
LE: loop exit
PB: predicated region body
PF: predicated region fallthrough
CT: control target
= control target key end

     0   :  { %s3928_s15 = smov 0   ;;  %s4960_s0 = inlined_call_operand.vmem [shape: bf16[2,18,18,4], index: 0, kind: input, shape index: {}]   ;;  %s4961_s1 = inlined_call_operand.vmem [shape: bf16[9,4,4], index: 1, kind: input, shape index: {}]   ;;  %s4962_s2 = inlined_call_operand.vmem [shape: f32[1,4], index: 2, kind: input, shape index: {}]   ;;  %s4963_s3 = inlined_call_operand.vmem [shape: f32[1,4], index: 3, kind: input, shape index: {}]   ;;  %s4964_s4 = inlined_call_operand.vmem [shape: bf16[2,256,4], index: 4, kind: output, shape index: {}]  }
   0x1 LB: > { %s2876_s16 = sadd.s32 4294967295, %s3901_s15   ;;  %p2880_p0 = scmp.ge.s32.totalorder %s3901_s15, 1  ;;  %s3901_s15 = sphi %s3928_s15, %s14_s15  }
   0x2   : > { %p162_p1 = scmp.lt.s32.totalorder %s3901_s15, 3 }
   0x4   : > { %p163_p2 = pnand %p2880_p0, %p162_p1 }
   0x6   : > { %166 = sbr.rel (%p163_p2) target bundleno = 537 (0x219), region = 36 }
   0xd   : > { %v2900_v0 = vld [vmem:[%s4961_s1 + $0x2] sm:$0x3]  ;;  %vm552_vm0 = vcmask 1041408   ;;  %v3942_v1 = vld [vmem:[%s4961_s1 + $0x8] sm:$0x3]  ;;  %p188_p3 = scmp.lt.s32.totalorder %s2876_s16, 1 }
   0xe   : > { %3840 = vmatprep.subr.msk.bf16.mxu1 %vm552_vm0, %v2900_v0  ;;  %3844 = vmatprep.subr.msk.bf16.mxu0 %vm552_vm0, %v3942_v1  ;;  %v554_v2 = vsel %vm552_vm0, %v2900_v0, 0  ;;  %v3950_v3 = vsel %vm552_vm0, %v3942_v1, 0  ;;  %v323_v4 = vld [vmem:[%s4961_s1] sm:$0x3]  ;;  %v2985_v5 = vld [vmem:[%s4961_s1 + $0xa] sm:$0x3] }
   0xf   : > { %5003 = vst [vmem:[#allocation2_spill] sm:$0xff] %v3950_v3  ;;  %3277 = vmatpush3.bf16.msra.mxu1 %v554_v2  ;;  %3413 = vmatpush3.bf16.msra.mxu0 %v3950_v3  ;;  %s5045_s16 = smov (!%p188_p3, %s2876_s16), 1  ;;  %vm372_vm1 = vcmask 1046528   ;;  %vm503_vm2 = vcmask 31744   ;;  %v766_v37 = vsel %vm552_vm0, %v323_v4, 0  ;;  %v1732_v43 = vsel %vm552_vm0, %v2985_v5, 0 }
  0x10   : > { %3841 = vmatprep.subr.msk.bf16.mxu1 %vm552_vm0, %v323_v4  ;;  %3846 = vmatprep.subr.msk.bf16.mxu0 %vm552_vm0, %v2985_v5  ;;  %s3850_s25 = smul.u32 216, %s5045_s16  ;;  %v4038_v44 = vld [vmem:[%s4961_s1 + $0x4] sm:$0x3]  ;;  %v4082_v2 = vld [vmem:[%s4961_s1 + $0xc] sm:$0x3]  ;;  %vm929_vm3 = vcmask 1045504  }
  0x11   : > { %s3090_s19 = sshll.u32 %s5045_s16, 7  ;;  %vm2788_vm4 = vcmask 27648  }
  0x12   : > { %s3967_s28 = scalar_lea.vmem %s4960_s0, %s3850_s25  ;;  %s4827_s22 = scalar_lea.vmem %s4964_s4, %s3090_s19 }
  0x13   : > { %v3970_v6 = vld [vmem:[%s3967_s28] sm:$0xff]   ;;  %v3973_v7 = vld [vmem:[%s3967_s28 + $0x8] sm:$0x1]  ;;  %v3976_v8 = vld [vmem:[%s3967_s28 + $0xc] sm:$0xff]  }
  0x14   : > { %v4967_v9 = vunpack.c.l.bf16 %v3970_v6  ;;  %v4966_v10 = vunpack.c.h.bf16 %v3970_v6  ;;  %v4965_v11 = vunpack.c.l.bf16 %v3973_v7  ;;  %v3982_v12 = vld [vmem:[%s3967_s28 + $0x14] sm:$0x1]  ;;  %v256_v13 = vunpack.c.l.bf16 %v3976_v8  ;;  %v3986_v14 = vld [vmem:[%s3967_s28 + $0x18] sm:$0xff]   ;;  %v4002_v23 = vld [vmem:[%s3967_s28 + $0x20] sm:$0x1] }
  0x15   : > { %v257_v15 = vunpack.c.h.bf16 %v3976_v8  ;;  %v258_v16 = vunpack.c.l.bf16 %v3982_v12  ;;  %v259_v20 = vunpack.c.l.bf16 %v3986_v14  ;;  %v4009_v27 = vld [vmem:[%s3967_s28 + $0x24] sm:$0xff]   ;;  %v260_v31 = vunpack.c.h.bf16 %v3986_v14  ;;  %v4018_v34 = vld [vmem:[%s3967_s28 + $0x2c] sm:$0x1]  ;;  %v4021_v35 = vld [vmem:[%s3967_s28 + $0x30] sm:$0xff]  }
  0x16   : > { %v373_v17 = vrot.slane %v4967_v9, 1  ;;  %v374_v18 = vrot.slane %v4966_v10, 1  ;;  %v376_v19 = vrot.slane %v4965_v11, 1  ;;  %v378_v21 = vrot.slane %v256_v13, 1  ;;  %v4028_v40 = vld [vmem:[%s3967_s28 + $0x38] sm:$0x1] }
  0x17   : > { %v379_v22 = vrot.slane %v257_v15, 1  ;;  %v381_v26 = vrot.slane %v258_v16, 1  ;;  %v261_v32 = vunpack.c.l.bf16 %v4002_v23  ;;  %v383_v33 = vrot.slane %v259_v20, 1  ;;  %v4049_v49 = vld [vmem:[%s3967_s28 + $0x3c] sm:$0xff]   ;;  %v4056_v54 = vld [vmem:[%s3967_s28 + $0x44] sm:$0x1] }
  0x18   : > { %v375_v24 = vsel %vm372_vm1, %v373_v17, %v374_v18  ;;  %v377_v25 = vsel %vm372_vm1, %v374_v18, %v376_v19  ;;  %v262_v38 = vunpack.c.l.bf16 %v4009_v27  ;;  %v263_v39 = vunpack.c.h.bf16 %v4009_v27  ;;  %v4059_v55 = vld [vmem:[%s3967_s28 + $0x48] sm:$0xff]   ;;  %v4077_v0 = vld [vmem:[%s3967_s28 + $0x50] sm:$0x1]  ;;  %v4093_v19 = vld [vmem:[%s3967_s28 + $0x54] sm:$0xff]  }
  0x19   : > { %v485_v28 = vpack.c.bf16 %v377_v25, %v375_v24  ;;  %v380_v29 = vsel %vm372_vm1, %v378_v21, %v379_v22  ;;  %v382_v30 = vsel %vm372_vm1, %v379_v22, %v381_v26  ;;  %v384_v41 = vrot.slane %v260_v31, 1  ;;  %v4102_v26 = vld [vmem:[%s3967_s28 + $0x5c] sm:$0x1] }
  0x1a   : > { %v486_v36 = vpack.c.bf16 %v382_v30, %v380_v29  ;;  %v386_v42 = vrot.slane %v261_v32, 1  ;;  %v264_v45 = vunpack.c.l.bf16 %v4018_v34  ;;  %v388_v46 = vrot.slane %v262_v38, 1 }
  0x1b   : > { %3278 = vmatprep.mubr.msk.bf16.mxu1 %vm503_vm2, %v485_v28  ;;  %v389_v47 = vrot.slane %v263_v39, 1  ;;  %v265_v48 = vunpack.c.l.bf16 %v4021_v35  ;;  %v385_v50 = vsel %vm372_vm1, %v383_v33, %v384_v41  ;;  %v266_v52 = vunpack.c.h.bf16 %v4021_v35 }
  0x1c   : > { %3414 = vmatprep.mubr.msk.bf16.mxu0 %vm503_vm2, %v486_v36  ;;  %3279 = vmatmul.mubr.msk.bf16.vlgmr.msra.gmra.mrb[0].mxu1 %vm503_vm2, %v486_v36  ;;  %v387_v51 = vsel %vm372_vm1, %v384_v41, %v386_v42  ;;  %v267_v53 = vunpack.c.l.bf16 %v4028_v40  ;;  %v391_v58 = vrot.slane %v264_v45, 1  ;;  %v268_v62 = vunpack.c.l.bf16 %v4049_v49 }
  0x1d   : > { %3311 = vmatpush3.bf16.msra.mxu1 %v766_v37  ;;  %v4061_v56 = vpack.c.bf16 %v387_v51, %v385_v50  ;;  %v390_v57 = vsel %vm372_vm1, %v388_v46, %v389_v47  ;;  %v393_v59 = vrot.slane %v265_v48, 1  ;;  %v394_v60 = vrot.slane %v266_v52, 1  ;;  %v4129_v51 = vld [vmem:[%s3967_s28 + $0x60] sm:$0xff]  }
  0x1e   : > { %3842 = vmatprep.subr.msk.bf16.mxu1 %vm552_vm0, %v4038_v44  ;;  %v396_v61 = vrot.slane %v267_v53, 1  ;;  %v269_v63 = vunpack.c.h.bf16 %v4049_v49  ;;  %v392_v4 = vsel %vm372_vm1, %v389_v47, %v391_v58  ;;  %v4983_v5 = vunpack.c.l.bf16 %v4056_v54  ;;  %v4136_v58 = vld [vmem:[%s3967_s28 + $0x68] sm:$0x1] }
  0x1f   : > { %3415 = vmatmul.mubr.msk.bf16.vlgmr.msra.gmra.mrb[0].mxu0 %vm503_vm2, %v4061_v56  ;;  %3282 = vmatprep.mubr.msk.bf16.mxu1 %vm503_vm2, %v4061_v56  ;;  %v4982_v17 = vunpack.c.l.bf16 %v4059_v55  ;;  %v4977_v18 = vunpack.c.h.bf16 %v4059_v55  ;;  %v4095_v21 = vpack.c.bf16 %v392_v4, %v390_v57  ;;  %v395_v22 = vsel %vm372_vm1, %v393_v59, %v394_v60 }
  0x20   : > { %3447 = vmatpush3.bf16.msra.mxu0 %v1732_v43  ;;  %v397_v24 = vsel %vm372_vm1, %v394_v60, %v396_v61  ;;  %v398_v25 = vrot.slane %v268_v62, 1  ;;  %v399_v29 = vrot.slane %v269_v63, 1  ;;  %v401_v30 = vrot.slane %v4983_v5, 1 }
  0x21   : > { %v4104_v28 = vpack.c.bf16 %v397_v24, %v395_v22  ;;  %v4974_v33 = vunpack.c.l.bf16 %v4077_v0  ;;  %3847 = vmatprep.subr.msk.bf16.mxu0 %vm552_vm0, %v4082_v2  ;;  %3418 = vmatprep.mubr.msk.bf16.mxu0 %vm503_vm2, %v4095_v21  ;;  %v403_v36 = vrot.slane %v4982_v17, 1  ;;  %v404_v37 = vrot.slane %v4977_v18, 1 }
  0x22   : > { %v4973_v41 = vunpack.c.l.bf16 %v4093_v19  ;;  %v4972_v42 = vunpack.c.h.bf16 %v4093_v19  ;;  %v400_v43 = vsel %vm372_vm1, %v398_v25, %v399_v29  ;;  %v402_v46 = vsel %vm372_vm1, %v399_v29, %v401_v30  ;;  %v4154_v30 = vld [vmem:[%s3967_s28 + $0x6c] sm:$0xff]  }
  0x23   : > { %v406_v47 = vrot.slane %v4974_v33, 1  ;;  %v4968_v50 = vunpack.c.l.bf16 %v4102_v26  ;;  %v4133_v57 = vpack.c.bf16 %v402_v46, %v400_v43  ;;  %v4971_v4 = vunpack.c.l.bf16 %v4129_v51 }
  0x24   : > { %3283 = vmatmul.mubr.msk.bf16.gmra.mrb[4].mxu1 %vm503_vm2, %v4095_v21  ;;  %v408_v59 = vrot.slane %v4973_v41, 1  ;;  %v409_v60 = vrot.slane %v4972_v42, 1  ;;  %v405_v22 = vsel %vm372_vm1, %v403_v36, %v404_v37  ;;  %v4970_v25 = vunpack.c.h.bf16 %v4129_v51  ;;  %v4161_v36 = vld [vmem:[%s3967_s28 + $0x74] sm:$0x1] }
  0x25   : > { %3286 = vmatprep.mubr.msk.bf16.mxu1 %vm503_vm2, %v4104_v28  ;;  %v411_v61 = vrot.slane %v4968_v50, 1  ;;  %v407_v24 = vsel %vm372_vm1, %v404_v37, %v406_v47  ;;  %v4969_v29 = vunpack.c.l.bf16 %v4136_v58  ;;  %v935_v43 = vrot.slane %v256_v13, 2  ;;  %v4172_v50 = vld [vmem:[%s3967_s28 + $0x78] sm:$0xff]   ;;  %v4175_v13 = vld [vmem:[%s3967_s28 + $0x80] sm:$0x1] }
  0x26   : > { %v410_v46 = vsel %vm372_vm1, %v408_v59, %v409_v60  ;;  %v936_v37 = vrot.slane %v257_v15, 2  ;;  %v938_v47 = vrot.slane %v258_v16, 2  ;;  %v4167_v10 = vpack.c.bf16 %v407_v24, %v405_v22 }
  0x27   : > { %3419 = vmatmul.mubr.msk.bf16.gmra.mrb[4].mxu0 %vm503_vm2, %v4104_v28  ;;  %v412_v11 = vsel %vm372_vm1, %v409_v60, %v411_v61  ;;  %v413_v9 = vrot.slane %v4971_v4, 1  ;;  %v414_v59 = vrot.slane %v4970_v25, 1  ;;  %v416_v15 = vrot.slane %v4969_v29, 1 }
  0x28   : > { %3422 = vmatprep.mubr.msk.bf16.mxu0 %vm503_vm2, %v4133_v57  ;;  %v4976_v12 = vunpack.c.l.bf16 %v4154_v30  ;;  %v4975_v16 = vunpack.c.h.bf16 %v4154_v30  ;;  %v4187_v60 = vpack.c.bf16 %v412_v11, %v410_v46  ;;  %v4981_v61 = vunpack.c.l.bf16 %v4161_v36 }
  0x29   : > { %v940_v22 = vrot.slane %v259_v20, 2  ;;  %v4979_v24 = vunpack.c.l.bf16 %v4172_v50  ;;  %v4978_v29 = vunpack.c.h.bf16 %v4172_v50  ;;  %v4980_v25 = vunpack.c.l.bf16 %v4175_v13 }
  0x2a   : > { %v941_v4 = vrot.slane %v260_v31, 2  ;;  %v943_v42 = vrot.slane %v261_v32, 2  ;;  %v937_v11 = vsel %vm929_vm3, %v935_v43, %v936_v37  ;;  %v939_v46 = vsel %vm929_vm3, %v936_v37, %v938_v47  ;;  %v4210_v31 = vld [vmem:[%s3967_s28 + $0x84] sm:$0xff]   ;;  %v4213_v32 = vld [vmem:[%s3967_s28 + $0x8c] sm:$0x1] }
  0x2b   : > { %v415_v20 = vsel %vm372_vm1, %v413_v9, %v414_v59  ;;  %v417_v41 = vsel %vm372_vm1, %v414_v59, %v416_v15  ;;  %v418_v33 = vrot.slane %v4976_v12, 1  ;;  %v419_v23 = vrot.slane %v4975_v16, 1  ;;  %v4228_v15 = vld [vmem:[%s3967_s28 + $0x90] sm:$0xff]  }
  0x2c   : > { %3287 = vmatmul.mubr.msk.bf16.gmra.mrb[8].mxu1 %vm503_vm2, %v4133_v57  ;;  %v421_v43 = vrot.slane %v4981_v61, 1  ;;  %v4219_v9 = vpack.c.bf16 %v939_v46, %v937_v11  ;;  %v423_v37 = vrot.slane %v4979_v24, 1  ;;  %v424_v47 = vrot.slane %v4978_v29, 1  ;;  %v4236_v46 = vld [vmem:[%s3967_s28 + $0x98] sm:$0x1] }
  0x2d   : > { %3290 = vmatprep.mubr.msk.bf16.mxu1 %vm503_vm2, %v4167_v10  ;;  %v426_v59 = vrot.slane %v4980_v25, 1  ;;  %v4230_v16 = vpack.c.bf16 %v417_v41, %v415_v20  ;;  %v4989_v12 = vunpack.c.l.bf16 %v4210_v31  ;;  %v4988_v18 = vunpack.c.h.bf16 %v4210_v31 }
  0x2e   : > { %v4984_v11 = vunpack.c.l.bf16 %v4213_v32  ;;  %v420_v29 = vsel %vm372_vm1, %v418_v33, %v419_v23  ;;  %v942_v24 = vsel %vm929_vm3, %v940_v22, %v941_v4  ;;  %v944_v25 = vsel %vm929_vm3, %v941_v4, %v943_v42 }
  0x2f   : > { %3423 = vmatmul.mubr.msk.bf16.gmra.mrb[8].mxu0 %vm503_vm2, %v4167_v10  ;;  %v945_v41 = vrot.slane %v262_v38, 2  ;;  %v422_v20 = vsel %vm372_vm1, %v419_v23, %v421_v43  ;;  %v946_v61 = vrot.slane %v263_v39, 2  ;;  %v4987_v17 = vunpack.c.l.bf16 %v4228_v15 }
  0x30   : > { %3426 = vmatprep.mubr.msk.bf16.mxu0 %vm503_vm2, %v4187_v60  ;;  %v4985_v5 = vunpack.c.h.bf16 %v4228_v15  ;;  %v425_v33 = vsel %vm372_vm1, %v423_v37, %v424_v47  ;;  %v427_v42 = vsel %vm372_vm1, %v424_v47, %v426_v59  ;;  %v948_v38 = vrot.slane %v264_v45, 2 }
  0x31   : > { %v4986_v4 = vunpack.c.l.bf16 %v4236_v46  ;;  %v428_v22 = vrot.slane %v4989_v12, 1  ;;  %v429_v39 = vrot.slane %v4988_v18, 1  ;;  %v431_v23 = vrot.slane %v4984_v11, 1  ;;  %v4279_v11 = vld [vmem:[%s3967_s28 + $0x9c] sm:$0xff]  }
  0x32   : > { %v4265_v43 = vpack.c.bf16 %v422_v20, %v420_v29  ;;  %v4267_v37 = vpack.c.bf16 %v944_v25, %v942_v24  ;;  %v4271_v34 = vpack.c.bf16 %v427_v42, %v425_v33  ;;  %v947_v45 = vsel %vm929_vm3, %v945_v41, %v946_v61  ;;  %v4289_v41 = vld [vmem:[%s3967_s28 + $0xa4] sm:$0x1] }
  0x33   : > { %v433_v47 = vrot.slane %v4987_v17, 1  ;;  %v434_v59 = vrot.slane %v4985_v5, 1  ;;  %v949_v25 = vsel %vm929_vm3, %v946_v61, %v948_v38  ;;  %v950_v29 = vrot.slane %v265_v48, 2  ;;  %v4298_v38 = vld [vmem:[%s3967_s28 + $0xa8] sm:$0xff]   ;;  %v4301_v48 = vld [vmem:[%s3967_s28 + $0xb0] sm:$0x1] }
  0x34   : > { %3291 = vmatmul.mubr.msk.bf16.gmra.mrb[12].mxu1 %vm503_vm2, %v4187_v60  ;;  %v951_v24 = vrot.slane %v266_v52, 2  ;;  %v436_v20 = vrot.slane %v4986_v4, 1  ;;  %v430_v33 = vsel %vm372_vm1, %v428_v22, %v429_v39  ;;  %v432_v42 = vsel %vm372_vm1, %v429_v39, %v431_v23 }
  0x35   : > { %3294 = vmatprep.mubr.msk.bf16.mxu1 %vm503_vm2, %v4230_v16  ;;  %v953_v5 = vrot.slane %v267_v53, 2  ;;  %v955_v61 = vrot.slane %v268_v62, 2  ;;  %v956_v52 = vrot.slane %v269_v63, 2  ;;  %v5004_v22 = vunpack.c.l.bf16 %v4056_v54 }
  0x36   : > { %v4995_v39 = vunpack.c.l.bf16 %v4279_v11  ;;  %v4994_v40 = vunpack.c.h.bf16 %v4279_v11  ;;  %v1934_v53 = vsel %vm552_vm0, %v4082_v2, 0  ;;  %v4315_v62 = vpack.c.bf16 %v949_v25, %v947_v45 }
  0x37   : > { %3427 = vmatmul.mubr.msk.bf16.gmra.mrb[12].mxu0 %vm503_vm2, %v4230_v16  ;;  %v958_v4 = vrot.slane %v5004_v22, 2  ;;  %v435_v23 = vsel %vm372_vm1, %v433_v47, %v434_v59  ;;  %v4992_v17 = vunpack.c.l.bf16 %v4289_v41  ;;  %v437_v63 = vsel %vm372_vm1, %v434_v59, %v436_v20  ;;  %v4330_v47 = vld [vmem:[%s4961_s1 + $0xe] sm:$0x3] }
  0x38   : > { %3448 = vmatprep.mubr.msk.bf16.mxu0 %vm503_vm2, %v4219_v9  ;;  %v4990_v54 = vunpack.c.l.bf16 %v4298_v38  ;;  %v4991_v22 = vunpack.c.h.bf16 %v4298_v38  ;;  %v4993_v18 = vunpack.c.l.bf16 %v4301_v48  ;;  %v4323_v12 = vpack.c.bf16 %v432_v42, %v430_v33 }
  0x39   : > { %v952_v2 = vsel %vm929_vm3, %v950_v29, %v951_v24  ;;  %v954_v45 = vsel %vm929_vm3, %v951_v24, %v953_v5  ;;  %v957_v59 = vsel %vm929_vm3, %v955_v61, %v956_v52  ;;  %v959_v25 = vsel %vm929_vm3, %v956_v52, %v958_v4  ;;  %v4355_v52 = vld [vmem:[%s3967_s28 + $0xb4] sm:$0xff]  }
  0x3a   : > { %5005 = vst [vmem:[#allocation3_spill] sm:$0xff] %v4323_v12  ;;  %v438_v20 = vrot.slane %v4995_v39, 1  ;;  %v439_v29 = vrot.slane %v4994_v40, 1  ;;  %v4342_v5 = vpack.c.bf16 %v437_v63, %v435_v23  ;;  %v441_v24 = vrot.slane %v4992_v17, 1 }
  0x3b   : > { %v4346_v33 = vpack.c.bf16 %v954_v45, %v952_v2  ;;  %v443_v4 = vrot.slane %v4990_v54, 1  ;;  %v444_v42 = vrot.slane %v4991_v22, 1  ;;  %v446_v61 = vrot.slane %v4993_v18, 1 }
  0x3c   : > { %3295 = vmatmul.mubr.msk.bf16.gmra.mrb[16].mxu1 %vm503_vm2, %v4265_v43  ;;  %v4362_v23 = vpack.c.bf16 %v959_v25, %v957_v59  ;;  %v5006_v63 = vunpack.c.l.bf16 %v4059_v55  ;;  %v5007_v45 = vunpack.c.h.bf16 %v4059_v55  ;;  %v5008_v22 = vunpack.c.l.bf16 %v4077_v0 }
  0x3d   : > { %3298 = vmatprep.mubr.msk.bf16.mxu1 %vm503_vm2, %v4271_v34  ;;  %v440_v18 = vsel %vm372_vm1, %v438_v20, %v439_v29  ;;  %v5009_v40 = vunpack.c.l.bf16 %v4093_v19  ;;  %v5010_v59 = vunpack.c.h.bf16 %v4093_v19  ;;  %v5011_v3 = vunpack.c.l.bf16 %v4102_v26 }
  0x3e   : > { %v960_v2 = vrot.slane %v5006_v63, 2  ;;  %v961_v54 = vrot.slane %v5007_v45, 2  ;;  %v963_v17 = vrot.slane %v5008_v22, 2  ;;  %v442_v0 = vsel %vm372_vm1, %v439_v29, %v441_v24 }
  0x3f   : > { %3449 = vmatmul.mubr.msk.bf16.vlgmr.msra.gmra.mrb[0].mxu0 %vm503_vm2, %v4267_v37  ;;  %v965_v39 = vrot.slane %v5009_v40, 2  ;;  %v966_v25 = vrot.slane %v5010_v59, 2  ;;  %v968_v63 = vrot.slane %v5011_v3, 2  ;;  %v5000_v22 = vunpack.c.l.bf16 %v4355_v52 }
  0x40   : > { %3481 = vmatpush3.bf16.msra.mxu0 %v1934_v53  ;;  %3452 = vmatprep.mubr.msk.bf16.mxu0 %vm503_vm2, %v4315_v62  ;;  %v4358_v53 = vld [vmem:[%s3967_s28 + $0xbc] sm:$0x1]  ;;  %v4999_v45 = vunpack.c.h.bf16 %v4355_v52  ;;  %v447_v40 = vsel %vm372_vm1, %v444_v42, %v446_v61  ;;  %v962_v59 = vsel %vm929_vm3, %v960_v2, %v961_v54  ;;  %v4390_v3 = vpack.c.bf16 %v442_v0, %v440_v18 }
  0x41   : > { %3848 = vmatprep.subr.msk.bf16.mxu0 %vm552_vm0, %v4330_v47  ;;  %v964_v26 = vsel %vm929_vm3, %v961_v54, %v963_v17  ;;  %v967_v29 = vsel %vm929_vm3, %v965_v39, %v966_v25  ;;  %v969_v24 = vsel %vm929_vm3, %v966_v25, %v968_v63  ;;  %v5013_v18 = vunpack.c.l.bf16 %v4358_v53 }
  0x42   : > { %v4407_v17 = vpack.c.bf16 %v964_v26, %v962_v59  ;;  %v4409_v39 = vpack.c.bf16 %v969_v24, %v967_v29  ;;  %v5014_v54 = vunpack.c.l.bf16 %v4129_v51  ;;  %v5015_v63 = vunpack.c.h.bf16 %v4129_v51 }
  0x43   : > { %v451_v61 = vrot.slane %v5013_v18, 1  ;;  %v5017_v59 = vunpack.c.l.bf16 %v4154_v30  ;;  %v5018_v29 = vunpack.c.h.bf16 %v4154_v30 }
  0x44   : > { %3299 = vmatmul.mubr.msk.bf16.gmra.mrb[20].mxu1 %vm503_vm2, %v4323_v12  ;;  %v445_v12 = vsel %vm372_vm1, %v443_v4, %v444_v42  ;;  %v448_v4 = vrot.slane %v5000_v22, 1  ;;  %v449_v42 = vrot.slane %v4999_v45, 1  ;;  %v971_v0 = vrot.slane %v5015_v63, 2 }
  0x45   : > { %3302 = vmatprep.mubr.msk.bf16.mxu1 %vm503_vm2, %v4342_v5  ;;  %v4397_v20 = vpack.c.bf16 %v447_v40, %v445_v12  ;;  %v970_v12 = vrot.slane %v5014_v54, 2  ;;  %v5016_v40 = vunpack.c.l.bf16 %v4136_v58  ;;  %v975_v26 = vrot.slane %v5017_v59, 2 }
  0x46   : > { %v450_v2 = vsel %vm372_vm1, %v448_v4, %v449_v42  ;;  %v452_v25 = vsel %vm372_vm1, %v449_v42, %v451_v61  ;;  %v976_v24 = vrot.slane %v5018_v29, 2  ;;  %v5019_v54 = vunpack.c.l.bf16 %v4161_v36 }
  0x47   : > { %3453 = vmatmul.mubr.msk.bf16.gmra.mrb[4].mxu0 %vm503_vm2, %v4346_v33  ;;  %5012 = vst [vmem:[#allocation4_spill] sm:$0xff] %v4397_v20  ;;  %v973_v18 = vrot.slane %v5016_v40, 2  ;;  %v5020_v22 = vunpack.c.l.bf16 %v3970_v6  ;;  %v5021_v42 = vunpack.c.h.bf16 %v3970_v6  ;;  %v5022_v63 = vunpack.c.l.bf16 %v3973_v7 }
  0x48   : > { %3456 = vmatprep.mubr.msk.bf16.mxu0 %vm503_vm2, %v4362_v23  ;;  %v978_v45 = vrot.slane %v5019_v54, 2  ;;  %v4435_v58 = vpack.c.bf16 %v452_v25, %v450_v2  ;;  %v972_v36 = vsel %vm929_vm3, %v970_v12, %v971_v0  ;;  %v5023_v2 = vunpack.c.l.bf16 %v4172_v50 }
  0x49   : > { %v930_v4 = vrot.slane %v5020_v22, 2  ;;  %v931_v61 = vrot.slane %v5021_v42, 2  ;;  %v974_v40 = vsel %vm929_vm3, %v971_v0, %v973_v18  ;;  %v977_v22 = vsel %vm929_vm3, %v975_v26, %v976_v24 }
  0x4a   : > { %v979_v59 = vsel %vm929_vm3, %v976_v24, %v978_v45  ;;  %v4448_v7 = vpack.c.bf16 %v974_v40, %v972_v36  ;;  %v980_v25 = vrot.slane %v5023_v2, 2  ;;  %v5024_v45 = vunpack.c.h.bf16 %v4172_v50 }
  0x4b   : > { %v4444_v29 = vsel %vm929_vm3, %v930_v4, %v931_v61  ;;  %v4457_v12 = vpack.c.bf16 %v979_v59, %v977_v22  ;;  %v5025_v18 = vunpack.c.l.bf16 %v4175_v13  ;;  %v5026_v4 = vunpack.c.l.bf16 %v4210_v31 }
  0x4c   : > { %3303 = vmatmul.mubr.msk.bf16.gmra.mrb[24].mxu1 %vm503_vm2, %v4390_v3  ;;  %v981_v0 = vrot.slane %v5024_v45, 2  ;;  %v1109_v40 = vsel %vm552_vm0, %v4038_v44, 0  ;;  %v5029_v44 = vunpack.c.l.bf16 %v4228_v15 }
  0x4d   : > { %3306 = vmatprep.mubr.msk.bf16.mxu1 %vm503_vm2, %v4397_v20  ;;  %v933_v20 = vrot.slane %v5022_v63, 2  ;;  %v983_v26 = vrot.slane %v5025_v18, 2  ;;  %v985_v42 = vrot.slane %v5026_v4, 2  ;;  %v5028_v63 = vunpack.c.l.bf16 %v4213_v32  ;;  %v4484_v32 = vld [vmem:[%s4961_s1 + $0x6] sm:$0x3] }
  0x4e   : > { %v982_v13 = vsel %vm929_vm3, %v980_v25, %v981_v0  ;;  %v990_v45 = vrot.slane %v5029_v44, 2 }
  0x4f   : > { %3457 = vmatmul.mubr.msk.bf16.gmra.mrb[8].mxu0 %vm503_vm2, %v4407_v17  ;;  %v4453_v54 = vsel %vm929_vm3, %v931_v61, %v933_v20  ;;  %v5027_v20 = vunpack.c.h.bf16 %v4210_v31  ;;  %v984_v36 = vsel %vm929_vm3, %v981_v0, %v983_v26  ;;  %v5030_v0 = vunpack.c.h.bf16 %v4228_v15 }
  0x50   : > { %3460 = vmatprep.mubr.msk.bf16.mxu0 %vm503_vm2, %v4409_v39  ;;  %v1042_v24 = vpack.c.bf16 %v4453_v54, %v4444_v29  ;;  %v4488_v2 = vpack.c.bf16 %v984_v36, %v982_v13  ;;  %v5031_v26 = vunpack.c.l.bf16 %v4236_v46  ;;  %v252_v54 = vld [vmem:[%s3967_s28 + $0xd4] sm:$0x1] }
  0x51   : > { %v986_v61 = vrot.slane %v5027_v20, 2  ;;  %v991_v18 = vrot.slane %v5030_v0, 2  ;;  %v5036_v0 = vunpack.c.h.bf16 %v4298_v38 }
  0x52   : > { %v993_v4 = vrot.slane %v5031_v26, 2 }
  0x53   : > { %v987_v22 = vsel %vm929_vm3, %v985_v42, %v986_v61  ;;  %v5032_v42 = vunpack.c.l.bf16 %v4279_v11  ;;  %v992_v46 = vsel %vm929_vm3, %v990_v45, %v991_v18  ;;  %v1001_v26 = vrot.slane %v5036_v0, 2 }
  0x54   : > { %3307 = vmatmul.mubr.msk.bf16.gmra.mrb[28].mxu1 %vm503_vm2, %v4435_v58  ;;  %v994_v36 = vsel %vm929_vm3, %v991_v18, %v993_v4  ;;  %v5037_v18 = vunpack.c.l.bf16 %v4301_v48 }
  0x55   : > { %3312 = vmatprep.mubr.msk.bf16.mxu1 %vm503_vm2, %v3970_v6  ;;  %v988_v6 = vrot.slane %v5028_v63, 2  ;;  %v995_v20 = vrot.slane %v5032_v42, 2  ;;  %v5038_v42 = vunpack.c.l.bf16 %v4355_v52 }
  0x56   : > { %v1003_v4 = vrot.slane %v5037_v18, 2 }
  0x57   : > { %3461 = vmatmul.mubr.msk.bf16.gmra.mrb[12].mxu0 %vm503_vm2, %v4448_v7  ;;  %v989_v59 = vsel %vm929_vm3, %v986_v61, %v988_v6  ;;  %v5033_v61 = vunpack.c.h.bf16 %v4279_v11  ;;  %v5034_v6 = vunpack.c.l.bf16 %v4289_v41 }
  0x58   : > { %3464 = vmatprep.mubr.msk.bf16.mxu0 %vm503_vm2, %v4457_v12  ;;  %v4492_v25 = vpack.c.bf16 %v989_v59, %v987_v22  ;;  %v4518_v22 = vpack.c.bf16 %v994_v36, %v992_v46  ;;  %v5035_v59 = vunpack.c.l.bf16 %v4298_v38  ;;  %v4537_v46 = vld [vmem:[%s3967_s28 + $0xc0] sm:$0xff]   ;;  %v249_v36 = vld [vmem:[%s3967_s28 + $0xc8] sm:$0x1]  ;;  %v1004_v48 = vsel %vm929_vm3, %v1001_v26, %v1003_v4 }
  0x59   : > { %v996_v63 = vrot.slane %v5033_v61, 2  ;;  %v998_v13 = vrot.slane %v5034_v6, 2  ;;  %v5039_v61 = vunpack.c.h.bf16 %v4355_v52  ;;  %v5040_v6 = vunpack.c.l.bf16 %v4358_v53 }
  0x5a   : > { %v1000_v44 = vrot.slane %v5035_v59, 2  ;;  %v302_v59 = vunpack.c.h.bf16 %v4537_v46  ;;  %v303_v0 = vunpack.c.l.bf16 %v249_v36 }
  0x5b   : > { %v999_v41 = vsel %vm929_vm3, %v996_v63, %v998_v13  ;;  %v1008_v13 = vrot.slane %v5040_v6, 2 }
  0x5c   : > { %3313 = vmatmul.mubr.msk.bf16.vlgmr.msra.gmra.mrb[0].mxu1 %vm503_vm2, %v3976_v8  ;;  %v1719_v4 = vrot.slane %v302_v59, 2  ;;  %v1512_v36 = vrot.slane %v303_v0, 1 }
  0x5d   : > { %3345 = vmatpush3.bf16.msra.mxu1 %v1109_v40  ;;  %3316 = vmatprep.mubr.msk.bf16.mxu1 %vm503_vm2, %v3986_v14  ;;  %v997_v40 = vsel %vm929_vm3, %v995_v20, %v996_v63  ;;  %v1005_v20 = vrot.slane %v5038_v42, 2  ;;  %v1006_v63 = vrot.slane %v5039_v61, 2  ;;  %v1721_v61 = vrot.slane %v303_v0, 2 }
  0x5e   : > { %3843 = vmatprep.subr.msk.bf16.mxu1 %vm552_vm0, %v4484_v32  ;;  %v4526_v45 = vpack.c.bf16 %v999_v41, %v997_v40  ;;  %v1002_v40 = vsel %vm929_vm3, %v1000_v44, %v1001_v26  ;;  %v301_v41 = vunpack.c.l.bf16 %v4537_v46  ;;  %v306_v0 = vunpack.c.l.bf16 %v252_v54 }
  0x5f   : > { %3465 = vmatmul.mubr.msk.bf16.gmra.mrb[16].mxu0 %vm503_vm2, %v4488_v2  ;;  %v1007_v53 = vsel %vm929_vm3, %v1005_v20, %v1006_v63  ;;  %v1009_v18 = vsel %vm929_vm3, %v1006_v63, %v1008_v13  ;;  %v4552_v42 = vpack.c.bf16 %v1004_v48, %v1002_v40  ;;  %v1510_v20 = vrot.slane %v302_v59, 1  ;;  %v3037_v59 = vld [vmem:[%s4961_s1 + $0x10] sm:$0x3] }
  0x60   : > { %3468 = vmatprep.mubr.msk.bf16.mxu0 %vm503_vm2, %v4492_v25  ;;  %v4556_v44 = vpack.c.bf16 %v1009_v18, %v1007_v53  ;;  %v1718_v26 = vrot.slane %v301_v41, 2  ;;  %v1509_v6 = vrot.slane %v301_v41, 1  ;;  %v1722_v13 = vsel %vm929_vm3, %v1719_v4, %v1721_v61 }
  0x61   : > { %v1513_v48 = vsel %vm372_vm1, %v1510_v20, %v1512_v36  ;;  %v2146_v41 = vsel %vm552_vm0, %v4330_v47, 0  ;;  %v1311_v47 = vsel %vm552_vm0, %v4484_v32, 0 }
  0x62   : > { %v1720_v63 = vsel %vm929_vm3, %v1718_v26, %v1719_v4  ;;  %v1511_v40 = vsel %vm372_vm1, %v1509_v6, %v1510_v20  ;;  %v2344_v26 = vrot.slane %v306_v0, 2  ;;  %v2355_v20 = vsel %vm552_vm0, %v3037_v59, 0 }
  0x63   : > { %v4566_v53 = vpack.c.bf16 %v1513_v48, %v1511_v40  ;;  %v4570_v18 = vpack.c.bf16 %v1722_v13, %v1720_v63 }
  0x64   : > { %3317 = vmatmul.mubr.msk.bf16.gmra.mrb[4].mxu1 %vm503_vm2, %v4009_v27 }
  0x65   : > { %3320 = vmatprep.mubr.msk.bf16.mxu1 %vm503_vm2, %v4021_v35 }
  0x67   : > { %3469 = vmatmul.mubr.msk.bf16.gmra.mrb[20].mxu0 %vm503_vm2, %v4518_v22 }
  0x68   : > { %3472 = vmatprep.mubr.msk.bf16.mxu0 %vm503_vm2, %v4526_v45 }
  0x6c   : > { %3321 = vmatmul.mubr.msk.bf16.gmra.mrb[8].mxu1 %vm503_vm2, %v4049_v49 }
  0x6d   : > { %3324 = vmatprep.mubr.msk.bf16.mxu1 %vm503_vm2, %v4059_v55 }
  0x6f   : > { %3473 = vmatmul.mubr.msk.bf16.gmra.mrb[24].mxu0 %vm503_vm2, %v4552_v42 }
  0x70   : > { %3476 = vmatprep.mubr.msk.bf16.mxu0 %vm503_vm2, %v4556_v44 }
  0x74   : > { %3325 = vmatmul.mubr.msk.bf16.gmra.mrb[12].mxu1 %vm503_vm2, %v4093_v19 }
  0x75   : > { %3328 = vmatprep.mubr.msk.bf16.mxu1 %vm503_vm2, %v4129_v51 }
  0x77   : > { %3477 = vmatmul.mubr.msk.bf16.gmra.mrb[28].mxu0 %vm503_vm2, %v4570_v18 }
  0x78   : > { %3482 = vmatprep.mubr.msk.bf16.mxu0 %vm503_vm2, %v3986_v14 }
  0x7c   : > { %3329 = vmatmul.mubr.msk.bf16.gmra.mrb[16].mxu1 %vm503_vm2, %v4154_v30 }
  0x7d   : > { %3332 = vmatprep.mubr.msk.bf16.mxu1 %vm503_vm2, %v4172_v50 }
  0x7f   : > { %3483 = vmatmul.mubr.msk.bf16.vlgmr.msra.gmra.mrb[0].mxu0 %vm503_vm2, %v4009_v27 }
  0x80   : > { %3515 = vmatpush3.bf16.msra.mxu0 %v2146_v41  ;;  %3486 = vmatprep.mubr.msk.bf16.mxu0 %vm503_vm2, %v4021_v35 }
  0x81   : > { %3849 = vmatprep.subr.msk.bf16.mxu0 %vm552_vm0, %v3037_v59 }
  0x84   : > { %3333 = vmatmul.mubr.msk.bf16.gmra.mrb[20].mxu1 %vm503_vm2, %v4210_v31 }
  0x85   : > { %3336 = vmatprep.mubr.msk.bf16.mxu1 %vm503_vm2, %v4228_v15 }
  0x87   : > { %3487 = vmatmul.mubr.msk.bf16.gmra.mrb[4].mxu0 %vm503_vm2, %v4049_v49 }
  0x88   : > { %3490 = vmatprep.mubr.msk.bf16.mxu0 %vm503_vm2, %v4059_v55 }
  0x8c   : > { %3337 = vmatmul.mubr.msk.bf16.gmra.mrb[24].mxu1 %vm503_vm2, %v4279_v11 }
  0x8d   : > { %3340 = vmatprep.mubr.msk.bf16.mxu1 %vm503_vm2, %v4298_v38 }
  0x8f   : > { %3491 = vmatmul.mubr.msk.bf16.gmra.mrb[8].mxu0 %vm503_vm2, %v4093_v19 }
  0x90   : > { %3494 = vmatprep.mubr.msk.bf16.mxu0 %vm503_vm2, %v4129_v51 }
  0x94   : > { %3341 = vmatmul.mubr.msk.bf16.gmra.mrb[28].mxu1 %vm503_vm2, %v4355_v52 }
  0x95   : > { %3346 = vmatprep.mubr.msk.bf16.mxu1 %vm503_vm2, %v1042_v24 }
  0x97   : > { %3495 = vmatmul.mubr.msk.bf16.gmra.mrb[12].mxu0 %vm503_vm2, %v4154_v30 }
  0x98   : > { %3498 = vmatprep.mubr.msk.bf16.mxu0 %vm503_vm2, %v4172_v50 }
  0x9c   : > { %3347 = vmatmul.mubr.msk.bf16.vlgmr.msra.gmra.mrb[0].mxu1 %vm503_vm2, %v4219_v9 }
  0x9d   : > { %3379 = vmatpush3.bf16.msra.mxu1 %v1311_v47  ;;  %3350 = vmatprep.mubr.msk.bf16.mxu1 %vm503_vm2, %v4267_v37 }
  0x9e   : > { %3845 = vmatprep.subr.msk.bf16.mxu1 %vm552_vm0, %v3942_v1  ;;  %v250_v1 = vld [vmem:[%s3967_s28 + $0xcc] sm:$0xff]  }
  0x9f   : > { %3499 = vmatmul.mubr.msk.bf16.gmra.mrb[16].mxu0 %vm503_vm2, %v4210_v31  ;;  %v304_v9 = vunpack.c.l.bf16 %v250_v1  ;;  %v305_v29 = vunpack.c.h.bf16 %v250_v1 }
  0xa0   : > { %3502 = vmatprep.mubr.msk.bf16.mxu0 %vm503_vm2, %v4228_v15 }
  0xa1   : > { %v2341_v24 = vrot.slane %v304_v9, 2  ;;  %v2342_v32 = vrot.slane %v305_v29, 2 }
  0xa3   : > { %v4651_v4 = vsel %vm929_vm3, %v2341_v24, %v2342_v32  ;;  %v4656_v61 = vsel %vm929_vm3, %v2342_v32, %v2344_v26 }
  0xa4   : > { %3351 = vmatmul.mubr.msk.bf16.gmra.mrb[4].mxu1 %vm503_vm2, %v4315_v62  ;;  %v2348_v6 = vpack.c.bf16 %v4656_v61, %v4651_v4 }
  0xa5   : > { %3354 = vmatprep.mubr.msk.bf16.mxu1 %vm503_vm2, %v4346_v33 }
  0xa7   : > { %3503 = vmatmul.mubr.msk.bf16.gmra.mrb[20].mxu0 %vm503_vm2, %v4279_v11 }
  0xa8   : > { %3506 = vmatprep.mubr.msk.bf16.mxu0 %vm503_vm2, %v4298_v38 }
  0xac   : > { %3355 = vmatmul.mubr.msk.bf16.gmra.mrb[8].mxu1 %vm503_vm2, %v4362_v23 }
  0xad   : > { %3358 = vmatprep.mubr.msk.bf16.mxu1 %vm503_vm2, %v4407_v17 }
  0xaf   : > { %3507 = vmatmul.mubr.msk.bf16.gmra.mrb[24].mxu0 %vm503_vm2, %v4355_v52 }
  0xb0   : > { %3510 = vmatprep.mubr.msk.bf16.mxu0 %vm503_vm2, %v4537_v46 }
  0xb4   : > { %3359 = vmatmul.mubr.msk.bf16.gmra.mrb[12].mxu1 %vm503_vm2, %v4409_v39 }
  0xb5   : > { %3362 = vmatprep.mubr.msk.bf16.mxu1 %vm503_vm2, %v4448_v7 }
  0xb7   : > { %3511 = vmatmul.mubr.msk.bf16.gmra.mrb[28].mxu0 %vm503_vm2, %v250_v1 }
  0xb8   : > { %3516 = vmatprep.mubr.msk.bf16.mxu0 %vm503_vm2, %v4061_v56  ;;  %v5042_v56 = vld [vmem:[#allocation3_spill] sm:$0xff] }
  0xbc   : > { %3363 = vmatmul.mubr.msk.bf16.gmra.mrb[16].mxu1 %vm503_vm2, %v4457_v12 }
  0xbd   : > { %3366 = vmatprep.mubr.msk.bf16.mxu1 %vm503_vm2, %v4488_v2 }
  0xbf   : > { %3517 = vmatmul.mubr.msk.bf16.vlgmr.msra.gmra.mrb[0].mxu0 %vm503_vm2, %v4095_v21  ;;  %v2135_v21 = vrot.slane %v306_v0, 1 }
  0xc0   : > { %3549 = vmatpush3.bf16.msra.mxu0 %v2355_v20  ;;  %3520 = vmatprep.mubr.msk.bf16.mxu0 %vm503_vm2, %v4104_v28 }
  0xc4   : > { %3367 = vmatmul.mubr.msk.bf16.gmra.mrb[20].mxu1 %vm503_vm2, %v4492_v25 }
  0xc5   : > { %3370 = vmatprep.mubr.msk.bf16.mxu1 %vm503_vm2, %v4518_v22 }
  0xc7   : > { %3521 = vmatmul.mubr.msk.bf16.gmra.mrb[4].mxu0 %vm503_vm2, %v4133_v57 }
  0xc8   : > { %3524 = vmatprep.mubr.msk.bf16.mxu0 %vm503_vm2, %v4167_v10  ;;  %v5041_v10 = vld [vmem:[#allocation2_spill] sm:$0xff] }
  0xcc   : > { %3371 = vmatmul.mubr.msk.bf16.gmra.mrb[24].mxu1 %vm503_vm2, %v4526_v45 }
  0xcd   : > { %3374 = vmatprep.mubr.msk.bf16.mxu1 %vm503_vm2, %v4552_v42 }
  0xcf   : > { %3525 = vmatmul.mubr.msk.bf16.gmra.mrb[8].mxu0 %vm503_vm2, %v4187_v60 }
  0xd0   : > { %3528 = vmatprep.mubr.msk.bf16.mxu0 %vm503_vm2, %v4230_v16 }
  0xd4   : > { %3375 = vmatmul.mubr.msk.bf16.gmra.mrb[28].mxu1 %vm503_vm2, %v4556_v44 }
  0xd5   : > { %3380 = vmatprep.mubr.msk.bf16.mxu1 %vm503_vm2, %v3976_v8  ;;  %v5043_v8 = vld [vmem:[#allocation4_spill] sm:$0xff] }
  0xd7   : > { %3529 = vmatmul.mubr.msk.bf16.gmra.mrb[12].mxu0 %vm503_vm2, %v4265_v43 }
  0xd8   : > { %3532 = vmatprep.mubr.msk.bf16.mxu0 %vm503_vm2, %v4271_v34 }
  0xdc   : > { %3381 = vmatmul.mubr.msk.bf16.vlgmr.msra.gmra.mrb[0].mxu1 %vm503_vm2, %v3986_v14  ;;  %v2132_v14 = vrot.slane %v304_v9, 1 }
  0xdd   : > { %3583 = vmatpush3.bf16.msra.mxu1 %v5041_v10  ;;  %3384 = vmatprep.mubr.msk.bf16.mxu1 %vm503_vm2, %v4009_v27  ;;  %v2133_v27 = vrot.slane %v305_v29, 1 }
  0xdf   : > { %3533 = vmatmul.mubr.msk.bf16.gmra.mrb[16].mxu0 %vm503_vm2, %v5042_v56 }
  0xe0   : > { %3536 = vmatprep.mubr.msk.bf16.mxu0 %vm503_vm2, %v4342_v5 }
  0xe4   : > { %3385 = vmatmul.mubr.msk.bf16.gmra.mrb[4].mxu1 %vm503_vm2, %v4021_v35  ;;  %v2134_v35 = vsel %vm372_vm1, %v2132_v14, %v2133_v27 }
  0xe5   : > { %3388 = vmatprep.mubr.msk.bf16.mxu1 %vm503_vm2, %v4049_v49  ;;  %v2136_v49 = vsel %vm372_vm1, %v2133_v27, %v2135_v21 }
  0xe7   : > { %3537 = vmatmul.mubr.msk.bf16.gmra.mrb[20].mxu0 %vm503_vm2, %v4390_v3 }
  0xe8   : > { %3540 = vmatprep.mubr.msk.bf16.mxu0 %vm503_vm2, %v5043_v8 }
  0xec   : > { %3389 = vmatmul.mubr.msk.bf16.gmra.mrb[8].mxu1 %vm503_vm2, %v4059_v55  ;;  %v2139_v55 = vpack.c.bf16 %v2136_v49, %v2134_v35 }
  0xed   : > { %3392 = vmatprep.mubr.msk.bf16.mxu1 %vm503_vm2, %v4093_v19 }
  0xef   : > { %3541 = vmatmul.mubr.msk.bf16.gmra.mrb[24].mxu0 %vm503_vm2, %v4435_v58 }
  0xf0   : > { %3544 = vmatprep.mubr.msk.bf16.mxu0 %vm503_vm2, %v4566_v53 }
  0xf4   : > { %3393 = vmatmul.mubr.msk.bf16.gmra.mrb[12].mxu1 %vm503_vm2, %v4129_v51 }
  0xf5   : > { %3396 = vmatprep.mubr.msk.bf16.mxu1 %vm503_vm2, %v4154_v30 }
  0xf7   : > { %3545 = vmatmul.mubr.msk.bf16.gmra.mrb[28].mxu0 %vm503_vm2, %v2139_v55 }
  0xf8   : > { %3550 = vmatprep.mubr.msk.bf16.mxu0 %vm503_vm2, %v4267_v37 }
  0xfc   : > { %3397 = vmatmul.mubr.msk.bf16.gmra.mrb[16].mxu1 %vm503_vm2, %v4172_v50 }
  0xfd   : > { %3400 = vmatprep.mubr.msk.bf16.mxu1 %vm503_vm2, %v4210_v31 }
  0xff   : > { %3551 = vmatmul.mubr.msk.bf16.vlgmr.msra.gmra.mrb[0].mxu0 %vm503_vm2, %v4315_v62 }
 0x100   : > { %3554 = vmatprep.mubr.msk.bf16.mxu0 %vm503_vm2, %v4346_v33  ;;  %v4809_v33 = vld [vmem:[%s4962_s2] ss:$0 sm:$0xff] }
 0x104   : > { %3401 = vmatmul.mubr.msk.bf16.gmra.mrb[20].mxu1 %vm503_vm2, %v4228_v15 }
 0x105   : > { %3404 = vmatprep.mubr.msk.bf16.mxu1 %vm503_vm2, %v4279_v11 }
 0x107   : > { %3555 = vmatmul.mubr.msk.bf16.gmra.mrb[4].mxu0 %vm503_vm2, %v4362_v23 }
 0x108   : > { %3558 = vmatprep.mubr.msk.bf16.mxu0 %vm503_vm2, %v4407_v17 }
 0x10c   : > { %3405 = vmatmul.mubr.msk.bf16.gmra.mrb[24].mxu1 %vm503_vm2, %v4298_v38 }
 0x10d   : > { %3408 = vmatprep.mubr.msk.bf16.mxu1 %vm503_vm2, %v4355_v52 }
 0x10f   : > { %3559 = vmatmul.mubr.msk.bf16.gmra.mrb[8].mxu0 %vm503_vm2, %v4409_v39 }
 0x110   : > { %3562 = vmatprep.mubr.msk.bf16.mxu0 %vm503_vm2, %v4448_v7 }
 0x114   : > { %3409 = vmatmul.mubr.msk.bf16.gmra.mrb[28].mxu1 %vm503_vm2, %v4537_v46 }
 0x115   : > { %3430 = vmatprep.mubr.msk.bf16.mxu1 %vm503_vm2, %v4265_v43 }
 0x117   : > { %3563 = vmatmul.mubr.msk.bf16.gmra.mrb[12].mxu0 %vm503_vm2, %v4457_v12 }
 0x118   : > { %3566 = vmatprep.mubr.msk.bf16.mxu0 %vm503_vm2, %v4488_v2 }
 0x11c   : > { %3431 = vmatmul.mubr.msk.bf16.vlgmr.msra.gmra.mrb[16].mxu1 %vm503_vm2, %v4271_v34 }
 0x11d   : > { %3434 = vmatprep.mubr.msk.bf16.mxu1 %vm503_vm2, %v5042_v56 }
 0x11f   : > { %3567 = vmatmul.mubr.msk.bf16.gmra.mrb[16].mxu0 %vm503_vm2, %v4492_v25 }
 0x120   : > { %3570 = vmatprep.mubr.msk.bf16.mxu0 %vm503_vm2, %v4518_v22 }
 0x124   : > { %3435 = vmatmul.mubr.msk.bf16.gmra.mrb[20].mxu1 %vm503_vm2, %v4342_v5 }
 0x125   : > { %3438 = vmatprep.mubr.msk.bf16.mxu1 %vm503_vm2, %v4390_v3  ;;  %v4814_v3 = vld [vmem:[%s4963_s3] ss:$0 sm:$0xff] }
 0x127   : > { %3571 = vmatmul.mubr.msk.bf16.gmra.mrb[20].mxu0 %vm503_vm2, %v4526_v45 }
 0x128   : > { %3574 = vmatprep.mubr.msk.bf16.mxu0 %vm503_vm2, %v4552_v42 }
 0x12c   : > { %3439 = vmatmul.mubr.msk.bf16.gmra.mrb[24].mxu1 %vm503_vm2, %v5043_v8 }
 0x12d   : > { %3442 = vmatprep.mubr.msk.bf16.mxu1 %vm503_vm2, %v4435_v58 }
 0x12f   : > { %3575 = vmatmul.mubr.msk.bf16.gmra.mrb[24].mxu0 %vm503_vm2, %v4556_v44 }
 0x130   : > { %3578 = vmatprep.mubr.msk.bf16.mxu0 %vm503_vm2, %v4570_v18 }
 0x134   : > { %3443 = vmatmul.mubr.msk.bf16.gmra.mrb[28].mxu1 %vm503_vm2, %v4566_v53 }
 0x137   : > { %3579 = vmatmul.mubr.msk.bf16.gmra.mrb[28].mxu0 %vm503_vm2, %v2348_v6 }
 0x1af   : > { %v3382_v19 = vpop.f32.mrb[0].mxu1 }
 0x1b0   : > { %v1347_v28 = vpop.f32.mrb[1].mxu1 }
 0x1b1   : > { %v3383_v50 = vpop.f32.mrb[2].mxu1 }
 0x1b2   : > { %v1350_v51 = vpop.f32.mrb[3].mxu1 }
 0x1b7   : > { %v3386_v57 = vpop.f32.mrb[4].mxu1 }
 0x1b8   : > { %v1363_v30 = vpop.f32.mrb[5].mxu1 }
 0x1b9   : > { %v3387_v16 = vpop.f32.mrb[6].mxu1 }
 0x1ba   : > { %v1366_v60 = vpop.f32.mrb[7].mxu1 }
 0x1bf   : > { %v3390_v31 = vpop.f32.mrb[8].mxu1 }
 0x1c0   : > { %v4792_v15 = vpop.f32.mrb[9].mxu1 }
 0x1c1   : > { %v4794_v11 = vpop.f32.mrb[10].mxu1 }
 0x1c2   : > { %v4796_v43 = vpop.f32.mrb[11].mxu1 }
 0x1c7   : > { %v4798_v37 = vpop.f32.mrb[12].mxu1 }
 0x1c8   : > { %v4800_v34 = vpop.f32.mrb[13].mxu1 }
 0x1c9   : > { %v4802_v38 = vpop.f32.mrb[14].mxu1 }
 0x1ca   : > { %v4804_v62 = vpop.f32.mrb[15].mxu1 }
 0x1d2   : > { %v3552_v5 = vpop.f32.mrb[0].mxu0 }
 0x1d3   : > { %v3584_v52 = vadd.f32 %v3552_v5, %v3382_v19  ;;  %v2391_v23 = vpop.f32.mrb[1].mxu0 }
 0x1d4   : > { %v3585_v17 = vadd.f32 %v2391_v23, %v1347_v28  ;;  %v3553_v39 = vpop.f32.mrb[2].mxu0 }
 0x1d5   : > { %v2559_v58 = vmul.f32 %v3584_v52, %v4809_v33  ;;  %v3586_v7 = vadd.f32 %v3553_v39, %v3383_v50  ;;  %v2394_v12 = vpop.f32.mrb[3].mxu0 }
 0x1d6   : > { %v2557_v2 = vmul.f32 %v3585_v17, %v4809_v33  ;;  %v3587_v25 = vadd.f32 %v2394_v12, %v1350_v51 }
 0x1d7   : > { %v2598_v22 = vadd.f32 %v4814_v3, %v2559_v58  ;;  %v2560_v45 = vmul.f32 %v3586_v7, %v4809_v33 }
 0x1d8   : > { %v2596_v46 = vadd.f32 %v4814_v3, %v2557_v2  ;;  %v2558_v42 = vmul.f32 %v3587_v25, %v4809_v33 }
 0x1d9   : > { %v2630_v44 = vmax.f32 %v2598_v22, 0.0  ;;  %v2599_v36 = vadd.f32 %v4814_v3, %v2560_v45 }
 0x1da   : > { %v2628_v63 = vmax.f32 %v2596_v46, 0.0  ;;  %v2597_v13 = vadd.f32 %v4814_v3, %v2558_v42  ;;  %v3556_v40 = vpop.f32.mrb[4].mxu0 }
 0x1db   : > { %v3093_v48 = vpack.c.bf16 %v2630_v44, %v2630_v44  ;;  %v2631_v53 = vmax.f32 %v2599_v36, 0.0  ;;  %v3588_v18 = vadd.f32 %v3556_v40, %v3386_v57  ;;  %v2407_v41 = vpop.f32.mrb[5].mxu0 }
 0x1dc   : > { %v3091_v59 = vpack.c.bf16 %v2628_v63, %v2628_v63  ;;  %v2629_v47 = vmax.f32 %v2597_v13, 0.0  ;;  %v3589_v1 = vadd.f32 %v2407_v41, %v1363_v30  ;;  %v3557_v9 = vpop.f32.mrb[6].mxu0 }
 0x1dd   : > { %2791 = vst.msk [vmem:[%s4827_s22 + $0x8] sm:$0xf] %vm2788_vm4, %v3093_v48  ;;  %v3094_v29 = vpack.c.bf16 %v2631_v53, %v2631_v53  ;;  %v2563_v54 = vmul.f32 %v3588_v18, %v4809_v33  ;;  %v3590_v24 = vadd.f32 %v3557_v9, %v3387_v16  ;;  %v2410_v32 = vpop.f32.mrb[7].mxu0 }
 0x1de   : > { %2789 = vst.msk [vmem:[%s4827_s22] sm:$0xf] %vm2788_vm4, %v3091_v59  ;;  %v3092_v0 = vpack.c.bf16 %v2629_v47, %v2629_v47  ;;  %v2561_v26 = vmul.f32 %v3589_v1, %v4809_v33  ;;  %v3591_v4 = vadd.f32 %v2410_v32, %v1366_v60 }
 0x1df   : > { %2792 = vst.msk [vmem:[%s4827_s22 + $0xc] sm:$0xf] %vm2788_vm4, %v3094_v29  ;;  %v2602_v61 = vadd.f32 %v4814_v3, %v2563_v54  ;;  %v2564_v6 = vmul.f32 %v3590_v24, %v4809_v33 }
 0x1e0   : > { %2790 = vst.msk [vmem:[%s4827_s22 + $0x4] sm:$0xf] %vm2788_vm4, %v3092_v0  ;;  %v2600_v20 = vadd.f32 %v4814_v3, %v2561_v26  ;;  %v2562_v10 = vmul.f32 %v3591_v4, %v4809_v33 }
 0x1e1   : > { %v2634_v56 = vmax.f32 %v2602_v61, 0.0  ;;  %v2603_v8 = vadd.f32 %v4814_v3, %v2564_v6 }
 0x1e2   : > { %v2632_v14 = vmax.f32 %v2600_v20, 0.0  ;;  %v2601_v27 = vadd.f32 %v4814_v3, %v2562_v10  ;;  %v3560_v21 = vpop.f32.mrb[8].mxu0 }
 0x1e3   : > { %v3097_v35 = vpack.c.bf16 %v2634_v56, %v2634_v56  ;;  %v2635_v49 = vmax.f32 %v2603_v8, 0.0  ;;  %v3592_v55 = vadd.f32 %v3560_v21, %v3390_v31  ;;  %v2423_v19 = vpop.f32.mrb[9].mxu0 }
 0x1e4   : > { %v3095_v28 = vpack.c.bf16 %v2632_v14, %v2632_v14  ;;  %v2633_v50 = vmax.f32 %v2601_v27, 0.0  ;;  %v3593_v51 = vadd.f32 %v2423_v19, %v4792_v15  ;;  %v3561_v57 = vpop.f32.mrb[10].mxu0 }
 0x1e5   : > { %2795 = vst.msk [vmem:[%s4827_s22 + $0x18] sm:$0xf] %vm2788_vm4, %v3097_v35  ;;  %v3098_v30 = vpack.c.bf16 %v2635_v49, %v2635_v49  ;;  %v2567_v16 = vmul.f32 %v3592_v55, %v4809_v33  ;;  %v3594_v60 = vadd.f32 %v3561_v57, %v4794_v11  ;;  %v2426_v5 = vpop.f32.mrb[11].mxu0 }
 0x1e6   : > { %2793 = vst.msk [vmem:[%s4827_s22 + $0x10] sm:$0xf] %vm2788_vm4, %v3095_v28  ;;  %v3096_v52 = vpack.c.bf16 %v2633_v50, %v2633_v50  ;;  %v2565_v31 = vmul.f32 %v3593_v51, %v4809_v33  ;;  %v3595_v23 = vadd.f32 %v2426_v5, %v4796_v43 }
 0x1e7   : > { %2796 = vst.msk [vmem:[%s4827_s22 + $0x1c] sm:$0xf] %vm2788_vm4, %v3098_v30  ;;  %v2606_v15 = vadd.f32 %v4814_v3, %v2567_v16  ;;  %v2568_v17 = vmul.f32 %v3594_v60, %v4809_v33 }
 0x1e8   : > { %2794 = vst.msk [vmem:[%s4827_s22 + $0x14] sm:$0xf] %vm2788_vm4, %v3096_v52  ;;  %v2604_v39 = vadd.f32 %v4814_v3, %v2565_v31  ;;  %v2566_v11 = vmul.f32 %v3595_v23, %v4809_v33 }
 0x1e9   : > { %v2638_v58 = vmax.f32 %v2606_v15, 0.0  ;;  %v2607_v7 = vadd.f32 %v4814_v3, %v2568_v17 }
 0x1ea   : > { %v2636_v12 = vmax.f32 %v2604_v39, 0.0  ;;  %v2605_v43 = vadd.f32 %v4814_v3, %v2566_v11  ;;  %v3564_v2 = vpop.f32.mrb[12].mxu0 }
 0x1eb   : > { %v3101_v25 = vpack.c.bf16 %v2638_v58, %v2638_v58  ;;  %v2639_v22 = vmax.f32 %v2607_v7, 0.0  ;;  %v3596_v45 = vadd.f32 %v3564_v2, %v4798_v37  ;;  %v2439_v46 = vpop.f32.mrb[13].mxu0 }
 0x1ec   : > { %v3099_v42 = vpack.c.bf16 %v2636_v12, %v2636_v12  ;;  %v2637_v44 = vmax.f32 %v2605_v43, 0.0  ;;  %v3597_v36 = vadd.f32 %v2439_v46, %v4800_v34  ;;  %v3565_v63 = vpop.f32.mrb[14].mxu0 }
 0x1ed   : > { %2799 = vst.msk [vmem:[%s4827_s22 + $0x28] sm:$0xf] %vm2788_vm4, %v3101_v25  ;;  %v3102_v13 = vpack.c.bf16 %v2639_v22, %v2639_v22  ;;  %v2571_v40 = vmul.f32 %v3596_v45, %v4809_v33  ;;  %v3598_v48 = vadd.f32 %v3565_v63, %v4802_v38  ;;  %v2442_v53 = vpop.f32.mrb[15].mxu0 }
 0x1ee   : > { %2797 = vst.msk [vmem:[%s4827_s22 + $0x20] sm:$0xf] %vm2788_vm4, %v3099_v42  ;;  %v3100_v18 = vpack.c.bf16 %v2637_v44, %v2637_v44  ;;  %v2569_v37 = vmul.f32 %v3597_v36, %v4809_v33  ;;  %v3599_v41 = vadd.f32 %v2442_v53, %v4804_v62 }
 0x1ef   : > { %v3432_v59 = vpop.f32.mrb[16].mxu1  ;;  %2800 = vst.msk [vmem:[%s4827_s22 + $0x2c] sm:$0xf] %vm2788_vm4, %v3102_v13  ;;  %v2610_v34 = vadd.f32 %v4814_v3, %v2571_v40  ;;  %v2572_v47 = vmul.f32 %v3598_v48, %v4809_v33 }
 0x1f0   : > { %v1623_v1 = vpop.f32.mrb[17].mxu1  ;;  %2798 = vst.msk [vmem:[%s4827_s22 + $0x24] sm:$0xf] %vm2788_vm4, %v3100_v18  ;;  %v2608_v38 = vadd.f32 %v4814_v3, %v2569_v37  ;;  %v2570_v9 = vmul.f32 %v3599_v41, %v4809_v33 }
 0x1f1   : > { %v3433_v29 = vpop.f32.mrb[18].mxu1  ;;  %v2642_v54 = vmax.f32 %v2610_v34, 0.0  ;;  %v2611_v24 = vadd.f32 %v4814_v3, %v2572_v47 }
 0x1f2   : > { %v1626_v62 = vpop.f32.mrb[19].mxu1  ;;  %v2640_v32 = vmax.f32 %v2608_v38, 0.0  ;;  %v2609_v0 = vadd.f32 %v4814_v3, %v2570_v9  ;;  %v3568_v26 = vpop.f32.mrb[16].mxu0 }
 0x1f3   : > { %v3105_v4 = vpack.c.bf16 %v2642_v54, %v2642_v54  ;;  %v2643_v61 = vmax.f32 %v2611_v24, 0.0  ;;  %v3600_v6 = vadd.f32 %v3568_v26, %v3432_v59  ;;  %v2455_v20 = vpop.f32.mrb[17].mxu0 }
 0x1f4   : > { %v3103_v10 = vpack.c.bf16 %v2640_v32, %v2640_v32  ;;  %v2641_v56 = vmax.f32 %v2609_v0, 0.0  ;;  %v3601_v8 = vadd.f32 %v2455_v20, %v1623_v1  ;;  %v3569_v14 = vpop.f32.mrb[18].mxu0 }
 0x1f5   : > { %2803 = vst.msk [vmem:[%s4827_s22 + $0x38] sm:$0xf] %vm2788_vm4, %v3105_v4  ;;  %v3106_v27 = vpack.c.bf16 %v2643_v61, %v2643_v61  ;;  %v2575_v21 = vmul.f32 %v3600_v6, %v4809_v33  ;;  %v3602_v35 = vadd.f32 %v3569_v14, %v3433_v29  ;;  %v2458_v49 = vpop.f32.mrb[19].mxu0 }
 0x1f6   : > { %2801 = vst.msk [vmem:[%s4827_s22 + $0x30] sm:$0xf] %vm2788_vm4, %v3103_v10  ;;  %v3104_v55 = vpack.c.bf16 %v2641_v56, %v2641_v56  ;;  %v2573_v19 = vmul.f32 %v3601_v8, %v4809_v33  ;;  %v3603_v28 = vadd.f32 %v2458_v49, %v1626_v62 }
 0x1f7   : > { %v3436_v50 = vpop.f32.mrb[20].mxu1  ;;  %2804 = vst.msk [vmem:[%s4827_s22 + $0x3c] sm:$0xf] %vm2788_vm4, %v3106_v27  ;;  %v2614_v51 = vadd.f32 %v4814_v3, %v2575_v21  ;;  %v2576_v57 = vmul.f32 %v3602_v35, %v4809_v33 }
 0x1f8   : > { %v1639_v30 = vpop.f32.mrb[21].mxu1  ;;  %2802 = vst.msk [vmem:[%s4827_s22 + $0x34] sm:$0xf] %vm2788_vm4, %v3104_v55  ;;  %v2612_v16 = vadd.f32 %v4814_v3, %v2573_v19  ;;  %v2574_v60 = vmul.f32 %v3603_v28, %v4809_v33 }
 0x1f9   : > { %v3437_v5 = vpop.f32.mrb[22].mxu1  ;;  %v2646_v52 = vmax.f32 %v2614_v51, 0.0  ;;  %v2615_v31 = vadd.f32 %v4814_v3, %v2576_v57 }
 0x1fa   : > { %v1642_v23 = vpop.f32.mrb[23].mxu1  ;;  %v2644_v15 = vmax.f32 %v2612_v16, 0.0  ;;  %v2613_v17 = vadd.f32 %v4814_v3, %v2574_v60  ;;  %v3572_v39 = vpop.f32.mrb[20].mxu0 }
 0x1fb   : > { %v3109_v11 = vpack.c.bf16 %v2646_v52, %v2646_v52  ;;  %v2647_v58 = vmax.f32 %v2615_v31, 0.0  ;;  %v3604_v7 = vadd.f32 %v3572_v39, %v3436_v50  ;;  %v2471_v12 = vpop.f32.mrb[21].mxu0 }
 0x1fc   : > { %v3107_v43 = vpack.c.bf16 %v2644_v15, %v2644_v15  ;;  %v2645_v2 = vmax.f32 %v2613_v17, 0.0  ;;  %v3605_v25 = vadd.f32 %v2471_v12, %v1639_v30  ;;  %v3573_v22 = vpop.f32.mrb[22].mxu0 }
 0x1fd   : > { %2807 = vst.msk [vmem:[%s4827_s22 + $0x48] sm:$0xf] %vm2788_vm4, %v3109_v11  ;;  %v3110_v45 = vpack.c.bf16 %v2647_v58, %v2647_v58  ;;  %v2579_v46 = vmul.f32 %v3604_v7, %v4809_v33  ;;  %v3606_v42 = vadd.f32 %v3573_v22, %v3437_v5  ;;  %v2474_v44 = vpop.f32.mrb[23].mxu0 }
 0x1fe   : > { %2805 = vst.msk [vmem:[%s4827_s22 + $0x40] sm:$0xf] %vm2788_vm4, %v3107_v43  ;;  %v3108_v36 = vpack.c.bf16 %v2645_v2, %v2645_v2  ;;  %v2577_v63 = vmul.f32 %v3605_v25, %v4809_v33  ;;  %v3607_v13 = vadd.f32 %v2474_v44, %v1642_v23 }
 0x1ff   : > { %v3440_v40 = vpop.f32.mrb[24].mxu1  ;;  %2808 = vst.msk [vmem:[%s4827_s22 + $0x4c] sm:$0xf] %vm2788_vm4, %v3110_v45  ;;  %v2618_v48 = vadd.f32 %v4814_v3, %v2579_v46  ;;  %v2580_v53 = vmul.f32 %v3606_v42, %v4809_v33 }
 0x200   : > { %v1655_v18 = vpop.f32.mrb[25].mxu1  ;;  %2806 = vst.msk [vmem:[%s4827_s22 + $0x44] sm:$0xf] %vm2788_vm4, %v3108_v36  ;;  %v2616_v37 = vadd.f32 %v4814_v3, %v2577_v63  ;;  %v2578_v41 = vmul.f32 %v3607_v13, %v4809_v33 }
 0x201   : > { %v3441_v59 = vpop.f32.mrb[26].mxu1  ;;  %v2650_v34 = vmax.f32 %v2618_v48, 0.0  ;;  %v2619_v47 = vadd.f32 %v4814_v3, %v2580_v53 }
 0x202   : > { %v1658_v1 = vpop.f32.mrb[27].mxu1  ;;  %v2648_v38 = vmax.f32 %v2616_v37, 0.0  ;;  %v2617_v9 = vadd.f32 %v4814_v3, %v2578_v41  ;;  %v3576_v29 = vpop.f32.mrb[24].mxu0 }
 0x203   : > { %v3113_v54 = vpack.c.bf16 %v2650_v34, %v2650_v34  ;;  %v2651_v24 = vmax.f32 %v2619_v47, 0.0  ;;  %v3608_v62 = vadd.f32 %v3576_v29, %v3440_v40  ;;  %v2487_v32 = vpop.f32.mrb[25].mxu0 }
 0x204   : > { %v3111_v0 = vpack.c.bf16 %v2648_v38, %v2648_v38  ;;  %v2649_v26 = vmax.f32 %v2617_v9, 0.0  ;;  %v3609_v4 = vadd.f32 %v2487_v32, %v1655_v18  ;;  %v3577_v61 = vpop.f32.mrb[26].mxu0 }
 0x205   : > { %2811 = vst.msk [vmem:[%s4827_s22 + $0x58] sm:$0xf] %vm2788_vm4, %v3113_v54  ;;  %v3114_v6 = vpack.c.bf16 %v2651_v24, %v2651_v24  ;;  %v2583_v20 = vmul.f32 %v3608_v62, %v4809_v33  ;;  %v3610_v10 = vadd.f32 %v3577_v61, %v3441_v59  ;;  %v2490_v56 = vpop.f32.mrb[27].mxu0 }
 0x206   : > { %2809 = vst.msk [vmem:[%s4827_s22 + $0x50] sm:$0xf] %vm2788_vm4, %v3111_v0  ;;  %v3112_v8 = vpack.c.bf16 %v2649_v26, %v2649_v26  ;;  %v2581_v14 = vmul.f32 %v3609_v4, %v4809_v33  ;;  %v3611_v27 = vadd.f32 %v2490_v56, %v1658_v1 }
 0x207   : > { %v3444_v21 = vpop.f32.mrb[28].mxu1  ;;  %2812 = vst.msk [vmem:[%s4827_s22 + $0x5c] sm:$0xf] %vm2788_vm4, %v3114_v6  ;;  %v2622_v35 = vadd.f32 %v4814_v3, %v2583_v20  ;;  %v2584_v49 = vmul.f32 %v3610_v10, %v4809_v33 }
 0x208   : > { %v1671_v55 = vpop.f32.mrb[29].mxu1  ;;  %2810 = vst.msk [vmem:[%s4827_s22 + $0x54] sm:$0xf] %vm2788_vm4, %v3112_v8  ;;  %v2620_v19 = vadd.f32 %v4814_v3, %v2581_v14  ;;  %v2582_v28 = vmul.f32 %v3611_v27, %v4809_v33 }
 0x209   : > { %v3445_v50 = vpop.f32.mrb[30].mxu1  ;;  %v2654_v51 = vmax.f32 %v2622_v35, 0.0  ;;  %v2623_v57 = vadd.f32 %v4814_v3, %v2584_v49 }
 0x20a   : > { %v1674_v30 = vpop.f32.mrb[31].mxu1  ;;  %v2652_v16 = vmax.f32 %v2620_v19, 0.0  ;;  %v2621_v60 = vadd.f32 %v4814_v3, %v2582_v28  ;;  %v3580_v5 = vpop.f32.mrb[28].mxu0 }
 0x20b   : > { %v3117_v52 = vpack.c.bf16 %v2654_v51, %v2654_v51  ;;  %v2655_v31 = vmax.f32 %v2623_v57, 0.0  ;;  %v3612_v23 = vadd.f32 %v3580_v5, %v3444_v21  ;;  %v2503_v15 = vpop.f32.mrb[29].mxu0 }
 0x20c   : > { %v3115_v17 = vpack.c.bf16 %v2652_v16, %v2652_v16  ;;  %v2653_v39 = vmax.f32 %v2621_v60, 0.0  ;;  %v3613_v11 = vadd.f32 %v2503_v15, %v1671_v55  ;;  %v3581_v58 = vpop.f32.mrb[30].mxu0 }
 0x20d   : > { %2815 = vst.msk [vmem:[%s4827_s22 + $0x68] sm:$0xf] %vm2788_vm4, %v3117_v52  ;;  %v3118_v7 = vpack.c.bf16 %v2655_v31, %v2655_v31  ;;  %v2587_v12 = vmul.f32 %v3612_v23, %v4809_v33  ;;  %v3614_v43 = vadd.f32 %v3581_v58, %v3445_v50  ;;  %v2506_v2 = vpop.f32.mrb[31].mxu0 }
 0x20e   : > { %2813 = vst.msk [vmem:[%s4827_s22 + $0x60] sm:$0xf] %vm2788_vm4, %v3115_v17  ;;  %v3116_v25 = vpack.c.bf16 %v2653_v39, %v2653_v39  ;;  %v2585_v22 = vmul.f32 %v3613_v11, %v4809_v33  ;;  %v3615_v45 = vadd.f32 %v2506_v2, %v1674_v30 }
 0x20f   : > { %2816 = vst.msk [vmem:[%s4827_s22 + $0x6c] sm:$0xf] %vm2788_vm4, %v3118_v7  ;;  %v2626_v46 = vadd.f32 %v4814_v3, %v2587_v12  ;;  %v2588_v42 = vmul.f32 %v3614_v43, %v4809_v33 }
 0x210   : > { %2814 = vst.msk [vmem:[%s4827_s22 + $0x64] sm:$0xf] %vm2788_vm4, %v3116_v25  ;;  %v2624_v44 = vadd.f32 %v4814_v3, %v2585_v22  ;;  %v2586_v36 = vmul.f32 %v3615_v45, %v4809_v33 }
 0x211   : > { %v2658_v63 = vmax.f32 %v2626_v46, 0.0  ;;  %v2627_v13 = vadd.f32 %v4814_v3, %v2588_v42 }
 0x212   : > { %v2656_v40 = vmax.f32 %v2624_v44, 0.0  ;;  %v2625_v48 = vadd.f32 %v4814_v3, %v2586_v36 }
 0x213   : > { %v3121_v53 = vpack.c.bf16 %v2658_v63, %v2658_v63  ;;  %v2659_v18 = vmax.f32 %v2627_v13, 0.0 }
 0x214   : > { %v3119_v37 = vpack.c.bf16 %v2656_v40, %v2656_v40  ;;  %v2657_v41 = vmax.f32 %v2625_v48, 0.0 }
 0x215   : > { %2819 = vst.msk [vmem:[%s4827_s22 + $0x78] sm:$0xf] %vm2788_vm4, %v3121_v53  ;;  %v3122_v59 = vpack.c.bf16 %v2659_v18, %v2659_v18 }
 0x216   : > { %2817 = vst.msk [vmem:[%s4827_s22 + $0x70] sm:$0xf] %vm2788_vm4, %v3119_v37  ;;  %v3120_v34 = vpack.c.bf16 %v2657_v41, %v2657_v41 }
 0x217   : > { %2820 = vst.msk [vmem:[%s4827_s22 + $0x7c] sm:$0xf] %vm2788_vm4, %v3122_v59 }
 0x218   : > { %2818 = vst.msk [vmem:[%s4827_s22 + $0x74] sm:$0xf] %vm2788_vm4, %v3120_v34 }
 0x219 PF: > { %s14_s15 = sadd.s32 1, %s3901_s15  }
 0x21a   : > { %p11_p4 = scmp.ge.s32.totalorder %s14_s15, 4  }
 0x21c   :  { %13 = sbr.rel (!%p11_p4) target bundleno = 1 (0x1), region = 74 }

</bundles_post_ra>
